<compile_context>
chip_gen: v7x
topology: tpu7x:2x2x1
jax: 0.10.0
libtpu: 0.0.40
codegen_flags: <defaults>
</compile_context>

<pallas_src>
import jax
import jax.numpy as jnp
import numpy as np
from jax.experimental import pallas as pl
from jax.experimental.pallas import tpu as pltpu


def basic_block_kernel(xpad_ref, w1_ref, w2_ref, b1_ref, b2_ref,
                       out_ref, h1pad_ref):
    """One image per grid step.

    xpad_ref : (1, H+2, W+2, Cp) bf16   spatially halo-padded, channel-padded input
    w1_ref   : (9*Cp, Cp)        bf16   conv1 weights * bn1 scale, im2col layout (ky,kx,ci)
    w2_ref   : (9*Cp, Cp)        bf16   conv2 weights * bn2 scale, same layout
    b*_ref   : (1, Cp)           f32    folded BN bias   beta - mean * scale
    out_ref  : (1, H, W, Cp)     f32
    h1pad_ref: (H+2, W+2, Cp)    bf16   scratch: halo-padded conv1 activation
    """
    _, Hp, Wp, Cp = xpad_ref.shape
    H, W = Hp - 2, Wp - 2
    HW = H * W

    xp = xpad_ref[0]                                   # (Hp, Wp, Cp) bf16

    # ---- conv1 as a single MXU matmul:  (HW, 9*Cp) x (9*Cp, Cp) ----
    taps = [xp[ky:ky + H, kx:kx + W, :].reshape(HW, Cp)
            for ky in range(3) for kx in range(3)]
    p1 = jnp.concatenate(taps, axis=-1)                # (HW, 9*Cp) bf16

    h1 = jnp.dot(p1, w1_ref[...], preferred_element_type=jnp.float32)   # (HW, Cp) f32
    h1 = jnp.maximum(h1 + b1_ref[...], 0.0)            # bn1 bias + relu (scale in weights)

    # ---- halo-padded intermediate for conv2: zero only the 1-wide border ----
    zrow = jnp.zeros((1, Wp, Cp), jnp.bfloat16)
    zcol = jnp.zeros((Hp, 1, Cp), jnp.bfloat16)
    h1pad_ref[0:1, :, :] = zrow
    h1pad_ref[H + 1:H + 2, :, :] = zrow
    h1pad_ref[:, 0:1, :] = zcol
    h1pad_ref[:, W + 1:W + 2, :] = zcol
    h1pad_ref[1:1 + H, 1:1 + W, :] = h1.reshape(H, W, Cp).astype(jnp.bfloat16)

    # ---- conv2 as a single MXU matmul ----
    h1p = h1pad_ref[...]
    taps2 = [h1p[ky:ky + H, kx:kx + W, :].reshape(HW, Cp)
             for ky in range(3) for kx in range(3)]
    p2 = jnp.concatenate(taps2, axis=-1)                                 # (HW, 9*Cp) bf16

    h2 = jnp.dot(p2, w2_ref[...], preferred_element_type=jnp.float32)    # (HW, Cp) f32

    # ---- bn2 bias + residual add + relu (lane-dense VPU epilogue) ----
    residual = xp[1:1 + H, 1:1 + W, :].reshape(HW, Cp).astype(jnp.float32)
    out = jnp.maximum(h2 + b2_ref[...] + residual, 0.0)
    out_ref[...] = out.reshape(1, H, W, Cp)


def basic_block_forward(x_nchw, w1_oihw, w2_oihw, bn1, bn2, eps=1e-5):
    """NCHW in / NCHW out wrapper. Boundary transposes/pads fuse into one XLA pass."""
    N, Cin, H, W = x_nchw.shape
    Cout = w1_oihw.shape[0]
    assert Cin == Cout, "downsample=None requires inplanes == planes"
    C = Cout
    Cp = ((C + 127) // 128) * 128          # pad channels to a lane-dense multiple of 128

    # NHWC + 1-px spatial halo + channel pad, cast to bf16 (native MXU dtype).
    x = jnp.transpose(x_nchw, (0, 2, 3, 1)).astype(jnp.float32)
    xpad = jnp.pad(x, ((0, 0), (1, 1), (1, 1), (0, Cp - C))).astype(jnp.bfloat16)

    def fold_bn(g, b, m, v):
        s = g / jnp.sqrt(v + eps)          # per-channel scale
        bias = b - m * s                   # per-channel bias
        return s, bias

    s1, b1v = fold_bn(*bn1)
    s2, b2v = fold_bn(*bn2)

    def prep_w(w, s):
        # Fold the per-output-channel BN scale into the conv weights (exact:
        # bn(conv(x, w)) == conv(x, w * s) + bias). Tiny one-off wrapper op,
        # saves an (HW, Cp) VPU multiply per conv per image inside the kernel.
        w = w.astype(jnp.float32) * s[:, None, None, None]              # (Co,Ci,3,3)
        w = jnp.transpose(w, (2, 3, 1, 0))                              # (3,3,Ci,Co)
        w = jnp.pad(w, ((0, 0), (0, 0), (0, Cp - C), (0, Cp - C)))
        return w.reshape(9 * Cp, Cp).astype(jnp.bfloat16)               # rows: (ky,kx,ci)

    w1 = prep_w(w1_oihw, s1)
    w2 = prep_w(w2_oihw, s2)

    def prep_b(bias):
        return jnp.pad(bias, (0, Cp - C)).reshape(1, Cp).astype(jnp.float32)

    b1 = prep_b(b1v)
    b2 = prep_b(b2v)

    out_nhwc = pl.pallas_call(
        basic_block_kernel,
        out_shape=jax.ShapeDtypeStruct((N, H, W, Cp), jnp.float32),
        grid=(N,),
        in_specs=[
            pl.BlockSpec((1, H + 2, W + 2, Cp), lambda n: (n, 0, 0, 0)),   # per-image block
            pl.BlockSpec((9 * Cp, Cp), lambda n: (0, 0)),                  # w1 (resident)
            pl.BlockSpec((9 * Cp, Cp), lambda n: (0, 0)),                  # w2 (resident)
            pl.BlockSpec((1, Cp), lambda n: (0, 0)),                       # b1
            pl.BlockSpec((1, Cp), lambda n: (0, 0)),                       # b2
        ],
        out_specs=pl.BlockSpec((1, H, W, Cp), lambda n: (n, 0, 0, 0)),
        scratch_shapes=[pltpu.VMEM((H + 2, W + 2, Cp), jnp.bfloat16)],
        compiler_params=pltpu.CompilerParams(
            dimension_semantics=("parallel",),          # megacore-shard images on v7x
            vmem_limit_bytes=32 * 1024 * 1024),
    )(xpad, w1, w2, b1, b2)

    out = out_nhwc[..., :C]                             # drop channel padding
    return jnp.transpose(out, (0, 3, 1, 2))             # back to NCHW


def reference_forward(x, w1, w2, bn1, bn2, eps=1e-5):
    """Pure-JAX f32 reference matching the PyTorch module semantics (NCHW)."""
    prec = jax.lax.Precision.HIGHEST

    def conv(x, w):
        return jax.lax.conv_general_dilated(
            x, w, window_strides=(1, 1), padding=((1, 1), (1, 1)),
            dimension_numbers=('NCHW', 'OIHW', 'NCHW'), precision=prec)

    def bn(x, p):
        g, b, m, v = p
        inv = g / jnp.sqrt(v + eps)
        return (x - m[None, :, None, None]) * inv[None, :, None, None] + b[None, :, None, None]

    out = jax.nn.relu(bn(conv(x, w1), bn1))
    out = bn(conv(out, w2), bn2) + x
    return jax.nn.relu(out)


if __name__ == "__main__":
    N, C, H, W = 2, 8, 16, 16   # inplanes = planes = 8, stride = 1, downsample = None
    key = jax.random.PRNGKey(0)
    kx, kw1, kw2, kg1, kb1, km1, kv1, kg2, kb2, km2, kv2 = jax.random.split(key, 11)

    x = jax.random.normal(kx, (N, C, H, W), jnp.float32)
    w1 = jax.random.normal(kw1, (C, C, 3, 3), jnp.float32) * 0.1
    w2 = jax.random.normal(kw2, (C, C, 3, 3), jnp.float32) * 0.1

    bn1 = (1.0 + 0.1 * jax.random.normal(kg1, (C,), jnp.float32),         # gamma
           0.1 * jax.random.normal(kb1, (C,), jnp.float32),               # beta
           0.1 * jax.random.normal(km1, (C,), jnp.float32),               # running_mean
           0.5 + jnp.abs(jax.random.normal(kv1, (C,), jnp.float32)))      # running_var
    bn2 = (1.0 + 0.1 * jax.random.normal(kg2, (C,), jnp.float32),
           0.1 * jax.random.normal(kb2, (C,), jnp.float32),
           0.1 * jax.random.normal(km2, (C,), jnp.float32),
           0.5 + jnp.abs(jax.random.normal(kv2, (C,), jnp.float32)))

    out = jax.block_until_ready(basic_block_forward(x, w1, w2, bn1, bn2))
    ref = jax.block_until_ready(reference_forward(x, w1, w2, bn1, bn2))

    assert out.shape == ref.shape == (N, C, H, W)
    # Kernel uses native bf16 MXU matmuls (f32 accumulation); reference is f32 HIGHEST,
    # so tolerances are relaxed accordingly.
    np.testing.assert_allclose(np.asarray(out), np.asarray(ref), rtol=2e-2, atol=5e-2)

    print("KERNEL_OK")
</pallas_src>

<mosaic_0001>
module attributes {stable_mosaic.version = 11 : i64} {
  func.func @basic_block_kernel(%arg0: i32, %arg1: memref<1x18x18x128xbf16, #tpu.memory_space<vmem>>, %arg2: memref<1152x128xbf16, #tpu.memory_space<vmem>>, %arg3: memref<1152x128xbf16, #tpu.memory_space<vmem>>, %arg4: memref<1x128xf32, #tpu.memory_space<vmem>>, %arg5: memref<1x128xf32, #tpu.memory_space<vmem>>, %arg6: memref<1x16x16x128xf32, #tpu.memory_space<vmem>>, %arg7: memref<18x18x128xbf16, #tpu.memory_space<vmem>>) attributes {dimension_semantics = [#tpu.dimension_semantics<parallel>], iteration_bounds = array<i64: 2>, scalar_prefetch = 0 : i64, scratch_operands = 1 : i64, tpu.core_type = #tpu.core_type<tc>, window_params = [{transform_indices = @transform_0, window_bounds = array<i64: 1, 18, 18, 128>}, {pipeline_mode = #tpu.pipeline_mode<synchronous>, transform_indices = @transform_1, window_bounds = array<i64: 1152, 128>}, {pipeline_mode = #tpu.pipeline_mode<synchronous>, transform_indices = @transform_2, window_bounds = array<i64: 1152, 128>}, {pipeline_mode = #tpu.pipeline_mode<synchronous>, transform_indices = @transform_3, window_bounds = array<i64: 1, 128>}, {pipeline_mode = #tpu.pipeline_mode<synchronous>, transform_indices = @transform_4, window_bounds = array<i64: 1, 128>}, {transform_indices = @transform_5, window_bounds = array<i64: 1, 16, 16, 128>}]} {
    %c0 = arith.constant 0 : index
    %c0_0 = arith.constant 0 : index
    %c0_1 = arith.constant 0 : index
    %c0_2 = arith.constant 0 : index
    %0 = vector.load %arg1[%c0, %c0_0, %c0_1, %c0_2] : memref<1x18x18x128xbf16, #tpu.memory_space<vmem>>, vector<1x18x18x128xbf16>
    %1 = vector.shape_cast %0 : vector<1x18x18x128xbf16> to vector<18x18x128xbf16>
    %2 = vector.extract_strided_slice %1 {offsets = [0, 0, 0], sizes = [16, 16, 128], strides = [1, 1, 1]} : vector<18x18x128xbf16> to vector<16x16x128xbf16>
    %3 = vector.shape_cast %2 : vector<16x16x128xbf16> to vector<256x128xbf16>
    %4 = vector.extract_strided_slice %1 {offsets = [0, 1, 0], sizes = [16, 16, 128], strides = [1, 1, 1]} : vector<18x18x128xbf16> to vector<16x16x128xbf16>
    %5 = vector.shape_cast %4 : vector<16x16x128xbf16> to vector<256x128xbf16>
    %6 = vector.extract_strided_slice %1 {offsets = [0, 2, 0], sizes = [16, 16, 128], strides = [1, 1, 1]} : vector<18x18x128xbf16> to vector<16x16x128xbf16>
    %7 = vector.shape_cast %6 : vector<16x16x128xbf16> to vector<256x128xbf16>
    %8 = vector.extract_strided_slice %1 {offsets = [1, 0, 0], sizes = [16, 16, 128], strides = [1, 1, 1]} : vector<18x18x128xbf16> to vector<16x16x128xbf16>
    %9 = vector.shape_cast %8 : vector<16x16x128xbf16> to vector<256x128xbf16>
    %10 = vector.extract_strided_slice %1 {offsets = [1, 1, 0], sizes = [16, 16, 128], strides = [1, 1, 1]} : vector<18x18x128xbf16> to vector<16x16x128xbf16>
    %11 = vector.shape_cast %10 : vector<16x16x128xbf16> to vector<256x128xbf16>
    %12 = vector.extract_strided_slice %1 {offsets = [1, 2, 0], sizes = [16, 16, 128], strides = [1, 1, 1]} : vector<18x18x128xbf16> to vector<16x16x128xbf16>
    %13 = vector.shape_cast %12 : vector<16x16x128xbf16> to vector<256x128xbf16>
    %14 = vector.extract_strided_slice %1 {offsets = [2, 0, 0], sizes = [16, 16, 128], strides = [1, 1, 1]} : vector<18x18x128xbf16> to vector<16x16x128xbf16>
    %15 = vector.shape_cast %14 : vector<16x16x128xbf16> to vector<256x128xbf16>
    %16 = vector.extract_strided_slice %1 {offsets = [2, 1, 0], sizes = [16, 16, 128], strides = [1, 1, 1]} : vector<18x18x128xbf16> to vector<16x16x128xbf16>
    %17 = vector.shape_cast %16 : vector<16x16x128xbf16> to vector<256x128xbf16>
    %18 = vector.extract_strided_slice %1 {offsets = [2, 2, 0], sizes = [16, 16, 128], strides = [1, 1, 1]} : vector<18x18x128xbf16> to vector<16x16x128xbf16>
    %19 = vector.shape_cast %18 : vector<16x16x128xbf16> to vector<256x128xbf16>
    %20 = tpu.concatenate %3, %5, %7, %9, %11, %13, %15, %17, %19 in 1 : vector<256x128xbf16>, vector<256x128xbf16>, vector<256x128xbf16>, vector<256x128xbf16>, vector<256x128xbf16>, vector<256x128xbf16>, vector<256x128xbf16>, vector<256x128xbf16>, vector<256x128xbf16> -> vector<256x1152xbf16>
    %c0_3 = arith.constant 0 : index
    %c0_4 = arith.constant 0 : index
    %21 = vector.load %arg2[%c0_3, %c0_4] : memref<1152x128xbf16, #tpu.memory_space<vmem>>, vector<1152x128xbf16>
    %cst = arith.constant dense<0.000000e+00> : vector<256x128xf32>
    %22 = tpu.matmul %20, %21, %cst {dimension_numbers = #tpu.dot_dimension_numbers<[1], [0], [0], [1], [0, 0, 1, 1], [], []>} : vector<256x1152xbf16>, vector<1152x128xbf16>, vector<256x128xf32> -> vector<256x128xf32>
    %c0_5 = arith.constant 0 : index
    %c0_6 = arith.constant 0 : index
    %23 = vector.load %arg4[%c0_5, %c0_6] : memref<1x128xf32, #tpu.memory_space<vmem>>, vector<1x128xf32>
    %24 = vector.broadcast %23 : vector<1x128xf32> to vector<256x128xf32>
    %25 = arith.addf %22, %24 : vector<256x128xf32>
    %cst_7 = arith.constant 0.000000e+00 : f32
    %26 = vector.broadcast %cst_7 : f32 to vector<256x128xf32>
    %27 = arith.maximumf %25, %26 : vector<256x128xf32>
    %cst_8 = arith.constant 0.000000e+00 : bf16
    %28 = vector.broadcast %cst_8 : bf16 to vector<1x18x128xbf16>
    %cst_9 = arith.constant 0.000000e+00 : bf16
    %29 = vector.broadcast %cst_9 : bf16 to vector<18x1x128xbf16>
    %c0_10 = arith.constant 0 : index
    %c0_11 = arith.constant 0 : index
    %c0_12 = arith.constant 0 : index
    %30 = vector.load %arg7[%c0_10, %c0_11, %c0_12] : memref<18x18x128xbf16, #tpu.memory_space<vmem>>, vector<1x18x128xbf16>
    tpu.vector_store %arg7[%c0_10, %c0_11, %c0_12], %28 {strides = array<i32>} : memref<18x18x128xbf16, #tpu.memory_space<vmem>>, vector<1x18x128xbf16>,
    %c17 = arith.constant 17 : index
    %c0_13 = arith.constant 0 : index
    %c0_14 = arith.constant 0 : index
    %31 = vector.load %arg7[%c17, %c0_13, %c0_14] : memref<18x18x128xbf16, #tpu.memory_space<vmem>>, vector<1x18x128xbf16>
    tpu.vector_store %arg7[%c17, %c0_13, %c0_14], %28 {strides = array<i32>} : memref<18x18x128xbf16, #tpu.memory_space<vmem>>, vector<1x18x128xbf16>,
    %c0_15 = arith.constant 0 : index
    %c0_16 = arith.constant 0 : index
    %c0_17 = arith.constant 0 : index
    %32 = vector.load %arg7[%c0_15, %c0_16, %c0_17] : memref<18x18x128xbf16, #tpu.memory_space<vmem>>, vector<18x1x128xbf16>
    tpu.vector_store %arg7[%c0_15, %c0_16, %c0_17], %29 {strides = array<i32>} : memref<18x18x128xbf16, #tpu.memory_space<vmem>>, vector<18x1x128xbf16>,
    %c0_18 = arith.constant 0 : index
    %c17_19 = arith.constant 17 : index
    %c0_20 = arith.constant 0 : index
    %33 = vector.load %arg7[%c0_18, %c17_19, %c0_20] : memref<18x18x128xbf16, #tpu.memory_space<vmem>>, vector<18x1x128xbf16>
    tpu.vector_store %arg7[%c0_18, %c17_19, %c0_20], %29 {strides = array<i32>} : memref<18x18x128xbf16, #tpu.memory_space<vmem>>, vector<18x1x128xbf16>,
    %34 = vector.shape_cast %27 : vector<256x128xf32> to vector<16x16x128xf32>
    %35 = arith.truncf %34 : vector<16x16x128xf32> to vector<16x16x128xbf16>
    %c1 = arith.constant 1 : index
    %c1_21 = arith.constant 1 : index
    %c0_22 = arith.constant 0 : index
    %36 = vector.load %arg7[%c1, %c1_21, %c0_22] : memref<18x18x128xbf16, #tpu.memory_space<vmem>>, vector<16x16x128xbf16>
    tpu.vector_store %arg7[%c1, %c1_21, %c0_22], %35 {strides = array<i32>} : memref<18x18x128xbf16, #tpu.memory_space<vmem>>, vector<16x16x128xbf16>,
    %c0_23 = arith.constant 0 : index
    %c0_24 = arith.constant 0 : index
    %c0_25 = arith.constant 0 : index
    %37 = vector.load %arg7[%c0_23, %c0_24, %c0_25] : memref<18x18x128xbf16, #tpu.memory_space<vmem>>, vector<18x18x128xbf16>
    %38 = vector.extract_strided_slice %37 {offsets = [0, 0, 0], sizes = [16, 16, 128], strides = [1, 1, 1]} : vector<18x18x128xbf16> to vector<16x16x128xbf16>
    %39 = vector.shape_cast %38 : vector<16x16x128xbf16> to vector<256x128xbf16>
    %40 = vector.extract_strided_slice %37 {offsets = [0, 1, 0], sizes = [16, 16, 128], strides = [1, 1, 1]} : vector<18x18x128xbf16> to vector<16x16x128xbf16>
    %41 = vector.shape_cast %40 : vector<16x16x128xbf16> to vector<256x128xbf16>
    %42 = vector.extract_strided_slice %37 {offsets = [0, 2, 0], sizes = [16, 16, 128], strides = [1, 1, 1]} : vector<18x18x128xbf16> to vector<16x16x128xbf16>
    %43 = vector.shape_cast %42 : vector<16x16x128xbf16> to vector<256x128xbf16>
    %44 = vector.extract_strided_slice %37 {offsets = [1, 0, 0], sizes = [16, 16, 128], strides = [1, 1, 1]} : vector<18x18x128xbf16> to vector<16x16x128xbf16>
    %45 = vector.shape_cast %44 : vector<16x16x128xbf16> to vector<256x128xbf16>
    %46 = vector.extract_strided_slice %37 {offsets = [1, 1, 0], sizes = [16, 16, 128], strides = [1, 1, 1]} : vector<18x18x128xbf16> to vector<16x16x128xbf16>
    %47 = vector.shape_cast %46 : vector<16x16x128xbf16> to vector<256x128xbf16>
    %48 = vector.extract_strided_slice %37 {offsets = [1, 2, 0], sizes = [16, 16, 128], strides = [1, 1, 1]} : vector<18x18x128xbf16> to vector<16x16x128xbf16>
    %49 = vector.shape_cast %48 : vector<16x16x128xbf16> to vector<256x128xbf16>
    %50 = vector.extract_strided_slice %37 {offsets = [2, 0, 0], sizes = [16, 16, 128], strides = [1, 1, 1]} : vector<18x18x128xbf16> to vector<16x16x128xbf16>
    %51 = vector.shape_cast %50 : vector<16x16x128xbf16> to vector<256x128xbf16>
    %52 = vector.extract_strided_slice %37 {offsets = [2, 1, 0], sizes = [16, 16, 128], strides = [1, 1, 1]} : vector<18x18x128xbf16> to vector<16x16x128xbf16>
    %53 = vector.shape_cast %52 : vector<16x16x128xbf16> to vector<256x128xbf16>
    %54 = vector.extract_strided_slice %37 {offsets = [2, 2, 0], sizes = [16, 16, 128], strides = [1, 1, 1]} : vector<18x18x128xbf16> to vector<16x16x128xbf16>
    %55 = vector.shape_cast %54 : vector<16x16x128xbf16> to vector<256x128xbf16>
    %56 = tpu.concatenate %39, %41, %43, %45, %47, %49, %51, %53, %55 in 1 : vector<256x128xbf16>, vector<256x128xbf16>, vector<256x128xbf16>, vector<256x128xbf16>, vector<256x128xbf16>, vector<256x128xbf16>, vector<256x128xbf16>, vector<256x128xbf16>, vector<256x128xbf16> -> vector<256x1152xbf16>
    %c0_26 = arith.constant 0 : index
    %c0_27 = arith.constant 0 : index
    %57 = vector.load %arg3[%c0_26, %c0_27] : memref<1152x128xbf16, #tpu.memory_space<vmem>>, vector<1152x128xbf16>
    %cst_28 = arith.constant dense<0.000000e+00> : vector<256x128xf32>
    %58 = tpu.matmul %56, %57, %cst_28 {dimension_numbers = #tpu.dot_dimension_numbers<[1], [0], [0], [1], [0, 0, 1, 1], [], []>} : vector<256x1152xbf16>, vector<1152x128xbf16>, vector<256x128xf32> -> vector<256x128xf32>
    %59 = vector.extract_strided_slice %1 {offsets = [1, 1, 0], sizes = [16, 16, 128], strides = [1, 1, 1]} : vector<18x18x128xbf16> to vector<16x16x128xbf16>
    %60 = vector.shape_cast %59 : vector<16x16x128xbf16> to vector<256x128xbf16>
    %61 = arith.extf %60 : vector<256x128xbf16> to vector<256x128xf32>
    %c0_29 = arith.constant 0 : index
    %c0_30 = arith.constant 0 : index
    %62 = vector.load %arg5[%c0_29, %c0_30] : memref<1x128xf32, #tpu.memory_space<vmem>>, vector<1x128xf32>
    %63 = vector.broadcast %62 : vector<1x128xf32> to vector<256x128xf32>
    %64 = arith.addf %58, %63 : vector<256x128xf32>
    %65 = arith.addf %64, %61 : vector<256x128xf32>
    %cst_31 = arith.constant 0.000000e+00 : f32
    %66 = vector.broadcast %cst_31 : f32 to vector<256x128xf32>
    %67 = arith.maximumf %65, %66 : vector<256x128xf32>
    %68 = vector.shape_cast %67 : vector<256x128xf32> to vector<1x16x16x128xf32>
    %c0_32 = arith.constant 0 : index
    %c0_33 = arith.constant 0 : index
    %c0_34 = arith.constant 0 : index
    %c0_35 = arith.constant 0 : index
    %69 = vector.load %arg6[%c0_32, %c0_33, %c0_34, %c0_35] : memref<1x16x16x128xf32, #tpu.memory_space<vmem>>, vector<1x16x16x128xf32>
    tpu.vector_store %arg6[%c0_32, %c0_33, %c0_34, %c0_35], %68 {strides = array<i32>} : memref<1x16x16x128xf32, #tpu.memory_space<vmem>>, vector<1x16x16x128xf32>,
    return
  }
  func.func @transform_0(%arg0: i32) -> (i32, i32, i32, i32) {
    %c0_i32 = arith.constant 0 : i32
    %c0_i32_0 = arith.constant 0 : i32
    %c0_i32_1 = arith.constant 0 : i32
    %c0_i32_2 = arith.constant 0 : i32
    return %arg0, %c0_i32, %c0_i32_0, %c0_i32_1 : i32, i32, i32, i32
  }
  func.func @transform_1(%arg0: i32) -> (i32, i32) {
    %c0_i32 = arith.constant 0 : i32
    %c0_i32_0 = arith.constant 0 : i32
    %c0_i32_1 = arith.constant 0 : i32
    return %c0_i32, %c0_i32_0 : i32, i32
  }
  func.func @transform_2(%arg0: i32) -> (i32, i32) {
    %c0_i32 = arith.constant 0 : i32
    %c0_i32_0 = arith.constant 0 : i32
    %c0_i32_1 = arith.constant 0 : i32
    return %c0_i32, %c0_i32_0 : i32, i32
  }
  func.func @transform_3(%arg0: i32) -> (i32, i32) {
    %c0_i32 = arith.constant 0 : i32
    %c0_i32_0 = arith.constant 0 : i32
    %c0_i32_1 = arith.constant 0 : i32
    return %c0_i32, %c0_i32_0 : i32, i32
  }
  func.func @transform_4(%arg0: i32) -> (i32, i32) {
    %c0_i32 = arith.constant 0 : i32
    %c0_i32_0 = arith.constant 0 : i32
    %c0_i32_1 = arith.constant 0 : i32
    return %c0_i32, %c0_i32_0 : i32, i32
  }
  func.func @transform_5(%arg0: i32) -> (i32, i32, i32, i32) {
    %c0_i32 = arith.constant 0 : i32
    %c0_i32_0 = arith.constant 0 : i32
    %c0_i32_1 = arith.constant 0 : i32
    %c0_i32_2 = arith.constant 0 : i32
    return %arg0, %c0_i32, %c0_i32_0, %c0_i32_1 : i32, i32, i32, i32
  }
}

</mosaic_0001>

<bundles_post_ra>
// kernel: tpu_custom_call.1
= control target key start
LH: loop header
LB: loop body
LE: loop exit
PB: predicated region body
PF: predicated region fallthrough
CT: control target
= control target key end

     0   :  { %10 = vsyncpa [#allocation4], 0  ;;  %s10148_s0 = inlined_call_operand.vmem [shape: bf16[2,18,18,128], index: 0, kind: input, shape index: {}]   ;;  %s10149_s1 = inlined_call_operand.vmem [shape: bf16[1152,128], index: 1, kind: input, shape index: {}]   ;;  %s10150_s2 = inlined_call_operand.hbm [shape: bf16[1152,128], index: 2, kind: input, shape index: {}]   ;;  %s10151_s3 = inlined_call_operand.vmem [shape: f32[1,128], index: 3, kind: input, shape index: {}]   ;;  %s10152_s4 = inlined_call_operand.vmem [shape: f32[1,128], index: 4, kind: input, shape index: {}]   ;;  %s10153_s5 = inlined_call_operand.hbm [shape: f32[2,16,16,128], index: 5, kind: output, shape index: {}]  }
   0x1   :  { %11 = vsyncpa [#allocation5], 0 }
   0x2   :  { %13 = vsyncpa [#allocation5 + $0x1], 0  ;;  %s7496_s18 = smov 0   ;;  %s7498_s19 = smov 0  }
   0x3   :  { %s7500_s20 = smov 0   ;;  %s7502_s21 = smov 0  }
   0x4 LB: > { %s7517_s22 = sadd.s32 4294967295, %s7457_s21   ;;  %s5718_s23 = sadd.s32 4294967294, %s7457_s21   ;;  %s7457_s21 = sphi %s7502_s21, %s10388_s21   ;;  %s7453_s20 = sphi %s7500_s20, %s10387_s20   ;;  %s7449_s19 = sphi %s7498_s19, %s10386_s19   ;;  %s7445_s18 = sphi %s7496_s18, %s10385_s18  }
   0x5   : > { %s7521_s24 = sadd.s32 1, %s7457_s21   ;;  %s136_s25 = sadd.s32 1, %s7453_s20 }
   0x6   : > { %s133_s26 = ssub.s32 %s7457_s21, %s7521_s24  ;;  %p146_p0 = scmp.ne.s32.totalorder %s7453_s20, %s7449_s19 }
   0x7   : > { %p134_p1 = scmp.eq.s32.totalorder %s133_s26, 0  ;;  %p147_p2 = scmp.eq.s32.totalorder %s7517_s22, 1 }
   0x8   : > { %p152_p3 = scmp.ne.s32.totalorder %s7449_s19, %s7445_s18  ;;  %p153_p4 = scmp.eq.s32.totalorder %s5718_s23, 1 }
   0x9   : > { %s7532_s27 = scalar_select %p134_p1, %s7453_s20, %s136_s25  }
   0xa   : > { %p7534_p5 = por %p147_p2, %p146_p0  ;;  %p7538_p6 = por %p153_p4, %p152_p3 }
   0xb   : > { %p5719_p7 = scmp.ge.s32.totalorder %s7457_s21, 1  ;;  %p160_p8 = scmp.lt.s32.totalorder %s7457_s21, 3 }
   0xc   : > { %s10238_s28 = scalar_select %p7534_p5, 1, 0 }
   0xd   : > { %s10239_s29 = scalar_select %p7538_p6, 1, 0 }
   0xe   : > { %p10154_p9 = scmp.eq.s32.totalorder %s7517_s22, 0  ;;  %p7545_p10 = pnand %p5719_p7, %p160_p8 }
   0xf   : > { %s7459_s6 = smov [#allocation3]   ;;  %s7363_s11 = scalar_lea.hbm %s10150_s2, 9216 }
  0x10   : > { %s10240_s30 = scalar_select %p7545_p10, 1, 0 }
  0x11   : > { %s175_s7 = sshll.u32 %s7459_s6, 4  ;;  %p7133_p11 = pneg %p7545_p10  ;;  %s176_s7 = int_to_ptr.vmem [resolvable:$true] %s175_s7 }
  0x12   : > { %p7364_p13 = scmp.ne.s32.totalorder %s10150_s2, %s7363_s11  ;;  %p7370_p3 = scmp.lt.u32.totalorder %s7363_s11, %s10150_s2 }
  0x13   : > { %p7553_p12 = pnand %p10154_p9, %p7133_p11 }
  0x15   : > { %p7365_p0 = pneg %p7553_p12 }
  0x17   : > { %p7366_p1 = pnand %p7365_p0, %p7364_p13 }
  0x19   : > { %p7367_p2 = pneg %p7366_p1 }
  0x1b   : > { %p7372_p4 = pnand %p7370_p3, %p7367_p2 }
  0x1d   : > { %7375 = shalt.err (!%p7372_p4)
}
  0x1e   : > { %s7376_s16 = scalar_lea.vmem %s176_s7, 9216  ;;  %p7384_p9 = scmp.lt.s32.totalorder %s176_s7, %s176_s7 }
  0x1f   : > { %p7377_p7 = scmp.ne.s32.totalorder %s176_s7, %s7376_s16  ;;  %p7385_p6 = scmp.lt.s32.totalorder %s7376_s16, %s7376_s16 }
  0x21   : > { %p7379_p8 = pnand %p7377_p7, %p7365_p0  ;;  %p7386_p5 = por %p7385_p6, %p7384_p9 }
  0x23   : > { %p7380_p11 = pneg %p7379_p8 }
  0x25   : > { %p7387_p10 = pnand %p7386_p5, %p7380_p11 }
  0x27   : > { %7390 = shalt.err (!%p7387_p10)
}
  0x28   : > { %s7460_s17 = smov 64   ;;  %s7461_s23 = smov 4  }
  0x29   : > { %7136 = dma.hbm_to_vmem [thread:$0]  (!%p7553_p12), %s10150_s2, 9216, %s176_s7, [#allocation4], %s7460_s17, %s7460_s17, %s7461_s23  }
  0x2a   : > { %p10242_p13 = scmp.ne.s32.totalorder %s10240_s30, 0 }
  0x2c   : > { %205 = sbr.rel (%p10242_p13) target bundleno = 1185 (0x4a1), region = 40 }
  0x33   : > { %p10243_p1 = scmp.eq.s32.totalorder %s7517_s22, 0 }
  0x35   : > { %7436 = dma.done.wait (%p10243_p1), [#allocation4], 9216   ;;  %p10244_p0 = pmov %p10243_p1 }
  0x36   : > { %v7182_v0 = vld [vmem:[%s10149_s1 + $0x40] sm:$0xff]   ;;  %v7186_v4 = vld [vmem:[%s10149_s1 + $0x48] sm:$0xff]   ;;  %v7190_v8 = vld [vmem:[%s10149_s1 + $0x50] sm:$0xff]   ;;  %p233_p5 = scmp.lt.s32.totalorder %s7517_s22, 1  ;;  %vm293_vm0 = vsmask.f32 3328 }
  0x37   : > { %7438 = vsyncadd (%p10244_p0), [#allocation4], 4294958080  ;;  %v7183_v1 = vld [vmem:[%s10149_s1] sm:$0xff]   ;;  %6086 = vmatprep.subr.bf16.mxu0 %v7182_v0  ;;  %v7187_v5 = vld [vmem:[%s10149_s1 + $0x8] sm:$0xff]   ;;  %vm294_vm1 = vsmask.f32 7440 }
  0x38   : > { %v7184_v2 = vld [vmem:[%s10149_s1 + $0xc0] sm:$0xff]   ;;  %6087 = vmatpush3.bf16.msra.mxu0 %v7183_v1  ;;  %v7188_v6 = vld [vmem:[%s10149_s1 + $0xc8] sm:$0xff]   ;;  %v7191_v9 = vld [vmem:[%s10149_s1 + $0x10] sm:$0xff]   ;;  %s234_s15 = scalar_select %p233_p5, %s7517_s22, 1  ;;  %vm728_vm2 = vcmask 1042432   ;;  %vm729_vm3 = vcmask 1046532  }
  0x39   : > { %v7185_v3 = vld [vmem:[%s10149_s1 + $0x80] sm:$0xff]   ;;  %6198 = vmatprep.subr.bf16.mxu1 %v7184_v2  ;;  %6088 = vmatprep.subr.bf16.mxu0 %v7186_v4  ;;  %v7189_v7 = vld [vmem:[%s10149_s1 + $0x88] sm:$0xff]   ;;  %v7192_v10 = vld [vmem:[%s10149_s1 + $0xd0] sm:$0xff]   ;;  %vm2586_vm6 = vcmask 1040384   ;;  %vm2587_vm7 = vsmask.f32 256 }
  0x3a   : > { %6199 = vmatpush3.bf16.msra.mxu1 %v7185_v3  ;;  %v7193_v11 = vld [vmem:[%s10149_s1 + $0x90] sm:$0xff]   ;;  %v7194_v12 = vld [vmem:[%s10149_s1 + $0x58] sm:$0xff]   ;;  %v7198_v16 = vld [vmem:[%s10149_s1 + $0x60] sm:$0xff]   ;;  %s7126_s11 = smul.u32 216, %s234_s15  ;;  %vm2643_vm9 = vsmask.f32 7938 }
  0x3b   : > { %6200 = vmatprep.subr.bf16.mxu1 %v7188_v6  ;;  %v7195_v13 = vld [vmem:[%s10149_s1 + $0x18] sm:$0xff]   ;;  %v7199_v17 = vld [vmem:[%s10149_s1 + $0x20] sm:$0xff]   ;;  %v7202_v20 = vld [vmem:[%s10149_s1 + $0x68] sm:$0xff]   ;;  %vm3118_vm11 = vcmask 1043456   ;;  %vm2795_vm12 = vsmask.f32 4368 }
  0x3c   : > { %6089 = vmatpush3.bf16.msra.mxu0 %v7187_v5  ;;  %v7196_v14 = vld [vmem:[%s10149_s1 + $0xd8] sm:$0xff]   ;;  %v7200_v18 = vld [vmem:[%s10149_s1 + $0xe0] sm:$0xff]   ;;  %v7203_v21 = vld [vmem:[%s10149_s1 + $0x28] sm:$0xff]   ;;  %s7671_s25 = scalar_lea.vmem %s10148_s0, %s7126_s11  ;;  %s230_s23 = sand.u32 1, %s7449_s19  }
  0x3d   : > { %6090 = vmatprep.subr.bf16.mxu0 %v7190_v8  ;;  %v7197_v15 = vld [vmem:[%s10149_s1 + $0x98] sm:$0xff]   ;;  %v7201_v19 = vld [vmem:[%s10149_s1 + $0xa0] sm:$0xff]   ;;  %v7204_v22 = vld [vmem:[%s10149_s1 + $0xe8] sm:$0xff]   ;;  %s5724_s26 = sshll.u32 %s230_s23, 8  ;;  %s6085_s9 = sshll.u32 %s7517_s22, 12 }
  0x3e   : > { %6201 = vmatpush3.bf16.msra.mxu1 %v7189_v7  ;;  %v7205_v23 = vld [vmem:[%s10149_s1 + $0xa8] sm:$0xff]   ;;  %v7206_v24 = vld [vmem:[%s10149_s1 + $0x70] sm:$0xff]   ;;  %v7210_v28 = vld [vmem:[%s10149_s1 + $0x78] sm:$0xff]   ;;  %s10006_s6 = scalar_lea.vmem [#allocation6], %s5724_s26  ;;  %s10098_s7 = scalar_lea.hbm %s10153_s5, %s6085_s9 }
  0x3f   : > { %6202 = vmatprep.subr.bf16.mxu1 %v7192_v10  ;;  %v7207_v25 = vld [vmem:[%s10149_s1 + $0x30] sm:$0xff]   ;;  %v7211_v29 = vld [vmem:[%s10149_s1 + $0x38] sm:$0xff]   ;;  %v7680_v31 = vld [vmem:[%s7671_s25] sm:$0xf]  ;;  %s5644_s10 = sshll.u32 %s10006_s6, 4  ;;  %s10107_s22 = scalar_lea.sflag [#allocation5], %s230_s23  ;;  %s10100_s10 = int_to_ptr.vmem [resolvable:$true] %s5644_s10 }
  0x40   : > { %6091 = vmatpush3.bf16.msra.mxu0 %v7191_v9  ;;  %v7208_v26 = vld [vmem:[%s10149_s1 + $0xf0] sm:$0xff]   ;;  %v7212_v30 = vld [vmem:[%s10149_s1 + $0xf8] sm:$0xff]   ;;  %v7683_v32 = vld [vmem:[%s7671_s25 + $0x4] sm:$0xf]  ;;  %v297_v34 = vshrl.u32 %v7680_v31, 16  ;;  %v300_v35 = vshll.u32 %v7680_v31, 16 }
  0x41   : > { %6092 = vmatprep.subr.bf16.mxu0 %v7194_v12  ;;  %v7209_v27 = vld [vmem:[%s10149_s1 + $0xb0] sm:$0xff]   ;;  %v241_v33 = vld [vmem:[%s7671_s25 + $0x8] sm:$0x1]  ;;  %v306_v36 = vshll.u32 %v7683_v32, 16  ;;  %v310_v37 = vshrl.u32 %v7683_v32, 16  ;;  %v7213_v39 = vld [vmem:[%s10149_s1 + $0xb8] sm:$0xff]   ;;  %v5744_v47 = vcombine.low %v7680_v31, %v7683_v32 }
  0x42   : > { %6203 = vmatpush3.bf16.msra.mxu1 %v7193_v11  ;;  %v316_v38 = vshll.u32 %v241_v33, 16  ;;  %v7215_v40 = vld [vmem:[%s10149_s1 + $0x140] sm:$0xff]   ;;  %v299_v41 = vrot.slane %v297_v34, 4  ;;  %v302_v42 = vrot.slane %v300_v35, 5  ;;  %v736_v46 = vrot.slane %v241_v33, 5  ;;  %vm7702_vm4 = vmor %vm293_vm0, %vm294_vm1  ;;  %s7391_s30 = scalar_lea.vmem %s10100_s10, 4096 }
  0x43   : > { %6204 = vmatprep.subr.bf16.mxu1 %v7196_v14  ;;  %v308_v43 = vrot.slane %v306_v36, 5  ;;  %v312_v44 = vrot.slane %v310_v37, 4  ;;  %v242_v48 = vld [vmem:[%s7671_s25 + $0xc] sm:$0xf]  ;;  %v243_v51 = vld [vmem:[%s7671_s25 + $0x10] sm:$0xf]  ;;  %vm7711_vm5 = vmor %vm728_vm2, %vm729_vm3  ;;  %p7392_p6 = scmp.ne.s32.totalorder %s10100_s10, %s7391_s30 }
  0x44   : > { %6093 = vmatpush3.bf16.msra.mxu0 %v7195_v13  ;;  %v318_v45 = vrot.slane %v316_v38, 5  ;;  %v303_v49 = vor.u32 %v302_v42, %v299_v41  ;;  %v321_v52 = vshrl.u32 %v242_v48, 16  ;;  %v324_v53 = vshll.u32 %v242_v48, 16  ;;  %v244_v0 = vld [vmem:[%s7671_s25 + $0x14] sm:$0x1]  ;;  %v7217_v12 = vld [vmem:[%s10149_s1 + $0x100] sm:$0xff]   ;;  %vm8726_vm8 = vmand %vm2586_vm6, %vm2587_vm7 }
  0x45   : > { %6094 = vmatprep.subr.bf16.mxu0 %v7198_v16  ;;  %v313_v50 = vor.u32 %v312_v44, %v308_v43  ;;  %v330_v55 = vshll.u32 %v243_v51, 16  ;;  %v334_v56 = vshrl.u32 %v243_v51, 16  ;;  %v7706_v57 = vcombine.low %v242_v48, %v243_v51  ;;  %v7719_v5 = vld [vmem:[%s7671_s25 + $0x18] sm:$0xf]  ;;  %v7726_v9 = vld [vmem:[%s7671_s25 + $0x1c] sm:$0xf]  ;;  %vm8734_vm10 = vmand %vm2586_vm6, %vm2643_vm9 }
  0x46   : > { %6205 = vmatpush3.bf16.msra.mxu1 %v7197_v15  ;;  %v5726_v58 = vrot.slane %v7680_v31, 9  ;;  %v304_v59 = vrot.slane %v303_v49, 4  ;;  %v323_v61 = vrot.slane %v321_v52, 4  ;;  %v326_v62 = vrot.slane %v324_v53, 5  ;;  %v7761_v35 = vld [vmem:[%s7671_s25 + $0x28] sm:$0xf]  ;;  %vm8939_vm13 = vmand %vm3118_vm11, %vm2643_vm9 }
  0x47   : > { %6206 = vmatprep.subr.bf16.mxu1 %v7200_v18  ;;  %v314_v60 = vrot.slane %v313_v50, 4  ;;  %v336_v1 = vrot.slane %v334_v56, 4  ;;  %1935 = vmatprep.mubr.bf16.mxu1 %v7706_v57  ;;  %v733_v2 = vrot.slane %v7683_v32, 5  ;;  %v332_v3 = vrot.slane %v330_v55, 5  ;;  %v7221_v36 = vld [vmem:[%s10149_s1 + $0x108] sm:$0xff]   ;;  %v7223_v41 = vld [vmem:[%s10149_s1 + $0x150] sm:$0xff]   ;;  %vm8946_vm14 = vmor %vm2587_vm7, %vm2795_vm12 }
  0x48   : > { %6095 = vmatpush3.bf16.msra.mxu0 %v7199_v17  ;;  %v340_v4 = vshll.u32 %v244_v0, 16  ;;  %v309_v6 = vsel %vm7702_vm4, %v304_v59, %v308_v43  ;;  %v327_v8 = vor.u32 %v326_v62, %v323_v61  ;;  %v345_v10 = vshrl.u32 %v7719_v5, 16  ;;  %v7227_v59 = vld [vmem:[%s10149_s1 + $0x158] sm:$0xff]   ;;  %v7358_v63 = vld [vmem:[#allocation3 + $0x228] sm:$0xff]   ;;  %p10383_p9 = scmp.ne.s32.totalorder %s10238_s28, 0  ;;  %s7463_s12 = smov [#allocation6]  }
  0x49   : > { %6096 = vmatprep.subr.bf16.mxu0 %v7202_v20  ;;  %v319_v7 = vsel %vm7702_vm4, %v314_v60, %v318_v45  ;;  %v734_v13 = vsel %vm7711_vm5, %v5726_v58, %v733_v2  ;;  %v735_v14 = vrot.slane %v733_v2, 4  ;;  %v337_v15 = vor.u32 %v336_v1, %v332_v3  ;;  %v7219_v20 = vld [vmem:[%s10149_s1 + $0x148] sm:$0xff]   ;;  %v7225_v58 = vld [vmem:[%s10149_s1 + $0x110] sm:$0xff]   ;;  %s7395_s13 = sshll.u32 %s7463_s12, 4  ;;  %s7396_s13 = int_to_ptr.vmem [resolvable:$false] %s7395_s13 }
  0x4a   : > { %6207 = vmatpush3.bf16.msra.mxu1 %v7201_v19  ;;  %v5760_v11 = vcombine.low %v309_v6, %v319_v7  ;;  %v328_v16 = vrot.slane %v327_v8, 4  ;;  %v342_v17 = vrot.slane %v340_v4, 5  ;;  %v348_v18 = vshll.u32 %v7719_v5, 16  ;;  %p7393_p10 = pnand %p7392_p6, %p10383_p9  ;;  %s7397_s14 = scalar_lea.vmem %s7396_s13, 8192 }
  0x4b   : > { %6208 = vmatprep.subr.bf16.mxu1 %v7204_v22  ;;  %v358_v19 = vshrl.u32 %v7726_v9, 16  ;;  %v338_v22 = vrot.slane %v337_v15, 4  ;;  %v347_v32 = vrot.slane %v345_v10, 4  ;;  %v354_v34 = vshll.u32 %v7726_v9, 16  ;;  %p7398_p2 = scmp.lt.s32.totalorder %s10100_s10, %s7396_s13  ;;  %p7399_p3 = scmp.lt.s32.totalorder %s7397_s14, %s7391_s30 }
  0x4c   : > { %6097 = vmatpush3.bf16.msra.mxu0 %v7203_v21  ;;  %1774 = vmatprep.mubr.bf16.mxu0 %v5760_v11  ;;  %v737_v21 = vsel %vm7711_vm5, %v735_v14, %v736_v46  ;;  %v350_v33 = vrot.slane %v348_v18, 5  ;;  %v7779_v46 = vld [vmem:[%s7671_s25 + $0x2c] sm:$0x1]  ;;  %v382_v49 = vshrl.u32 %v7761_v35, 16  ;;  %v5728_v60 = vrot.slane %v7719_v5, 9  ;;  %v7231_v14 = vld [vmem:[%s10149_s1 + $0x160] sm:$0xff]   ;;  %p7394_p12 = pneg %p7393_p10 }
  0x4d   : > { %6098 = vmatprep.subr.bf16.mxu0 %v7206_v24  ;;  %v5727_v24 = vrot.slane %v242_v48, 9  ;;  %v7757_v31 = vsel %vm7702_vm4, %v338_v22, %v342_v17  ;;  %v356_v43 = vrot.slane %v354_v34, 5  ;;  %v747_v61 = vrot.slane %v7726_v9, 5  ;;  %p7400_p4 = por %p7399_p3, %p7398_p2 }
  0x4e   : > { %6209 = vmatpush3.bf16.msra.mxu1 %v7205_v23  ;;  %v7743_v23 = vcombine.low %v7719_v5, %v7726_v9  ;;  %10250 = vst [vmem:[#allocation10_spill] sm:$0xff] %v7757_v31  ;;  %v351_v42 = vor.u32 %v350_v33, %v347_v32  ;;  %v378_v4 = vshll.u32 %v7761_v35, 16  ;;  %v384_v7 = vrot.slane %v382_v49, 4  ;;  %v7814_v9 = vld [vmem:[%s7671_s25 + $0x34] sm:$0xf] }
  0x4f   : > { %6210 = vmatprep.subr.bf16.mxu1 %v7208_v26  ;;  %v5776_v26 = vcombine.low %v734_v13, %v737_v21  ;;  %v748_v6 = vsel %vm7711_vm5, %v5728_v60, %v747_v61  ;;  %v749_v5 = vrot.slane %v747_v61, 4  ;;  %v388_v8 = vshll.u32 %v7779_v46, 16  ;;  %p7401_p7 = pnand %p7400_p4, %p7394_p12 }
  0x50   : > { %6099 = vmatpush3.bf16.msra.mxu0 %v7207_v25  ;;  %v7746_v25 = vld [vmem:[%s7671_s25 + $0x20] sm:$0x1]  ;;  %v352_v53 = vrot.slane %v351_v42, 4  ;;  %v406_v22 = vshrl.u32 %v7814_v9, 16  ;;  %v757_v32 = vrot.slane %v7779_v46, 5 }
  0x51   : > { %6100 = vmatprep.subr.bf16.mxu0 %v7210_v28  ;;  %v740_v28 = vrot.slane %v243_v51, 5  ;;  %v364_v44 = vshll.u32 %v7746_v25, 16  ;;  %v7791_v51 = vld [vmem:[%s7671_s25 + $0x30] sm:$0xf]  ;;  %v750_v62 = vrot.slane %v7746_v25, 5  ;;  %v390_v17 = vrot.slane %v388_v8, 5 }
  0x52   : > { %6211 = vmatpush3.bf16.msra.mxu1 %v7209_v27  ;;  %v7750_v27 = vsel %vm7702_vm4, %v328_v16, %v332_v3  ;;  %v7806_v1 = vsel %vm7702_vm4, %v352_v53, %v356_v43  ;;  %v393_v13 = vshrl.u32 %v7791_v51, 16  ;;  %v396_v18 = vshll.u32 %v7791_v51, 16  ;;  %v7843_v25 = vld [vmem:[%s7671_s25 + $0x3c] sm:$0xf]  ;;  %v7864_v42 = vld [vmem:[%s7671_s25 + $0x40] sm:$0xf] }
  0x53   : > { %6212 = vmatprep.subr.bf16.mxu1 %v7212_v30  ;;  %10249 = vst [vmem:[#allocation9_spill] sm:$0xff] %v7750_v27  ;;  %v7753_v30 = vld [vmem:[%s7671_s25 + $0x24] sm:$0xf]  ;;  %v7768_v37 = vcombine.low %v7750_v27, %v7757_v31  ;;  %v741_v38 = vsel %vm7711_vm5, %v5727_v24, %v740_v28  ;;  %v366_v56 = vrot.slane %v364_v44, 5  ;;  %10251 = vst [vmem:[#allocation11_spill] sm:$0xff] %v7806_v1  ;;  %v417_v46 = vshrl.u32 %v7843_v25, 16 }
  0x54   : > { %6101 = vmatpush3.bf16.msra.mxu0 %v7211_v29  ;;  %v743_v29 = vrot.slane %v244_v0, 5  ;;  %v369_v45 = vshrl.u32 %v7753_v30, 16  ;;  %v372_v48 = vshll.u32 %v7753_v30, 16  ;;  %v7788_v50 = vcombine.low %v7753_v30, %v7761_v35  ;;  %v7840_v24 = vld [vmem:[%s7671_s25 + $0x38] sm:$0x1] }
  0x55   : > { %6310 = vmatprep.subr.bf16.mxu0 %v7215_v40  ;;  %v360_v40 = vrot.slane %v358_v19, 4  ;;  %v751_v16 = vsel %vm7711_vm5, %v749_v5, %v750_v62  ;;  %v419_v5 = vrot.slane %v417_v46, 4  ;;  %v7904_v8 = vld [vmem:[%s7671_s25 + $0x4c] sm:$0xf] }
  0x56   : > { %6213 = vmatpush3.bf16.msra.mxu1 %v7213_v39  ;;  %v742_v39 = vrot.slane %v740_v28, 4  ;;  %v371_v0 = vrot.slane %v369_v45, 4  ;;  %v374_v3 = vrot.slane %v372_v48, 5  ;;  %v7836_v19 = vcombine.low %v748_v6, %v751_v16 }
  0x57   : > { %1775 = vmatmul.mubr.bf16.vlgmr.msra.gmra.mrb[0].mxu0 %v5744_v47  ;;  %v361_v55 = vor.u32 %v360_v40, %v356_v43  ;;  %v5729_v28 = vrot.slane %v7753_v30, 9  ;;  %v412_v45 = vshll.u32 %v7840_v24, 16  ;;  %v761_v6 = vrot.slane %v7814_v9, 5 }
  0x58   : > { %6311 = vmatpush3.bf16.msra.mxu0 %v7217_v12  ;;  %1782 = vmatprep.mubr.bf16.mxu0 %v7768_v37  ;;  %v744_v47 = vsel %vm7711_vm5, %v742_v39, %v743_v29  ;;  %v375_v11 = vor.u32 %v374_v3, %v371_v0  ;;  %v380_v12 = vrot.slane %v378_v4, 5  ;;  %v754_v29 = vrot.slane %v7761_v35, 5  ;;  %v7233_v39 = vld [vmem:[%s10149_s1 + $0x120] sm:$0xff]   ;;  %v7239_v3 = vld [vmem:[%s10149_s1 + $0x170] sm:$0xff]  }
  0x59   : > { %1936 = vmatmul.mubr.bf16.vlgmr.msra.gmra.mrb[0].mxu1 %v5776_v26  ;;  %6312 = vmatprep.subr.bf16.mxu0 %v7219_v20  ;;  %v7793_v52 = vcombine.low %v741_v38, %v744_v47  ;;  %v362_v2 = vrot.slane %v361_v55, 4  ;;  %v7848_v26 = vcombine.low %v7791_v51, %v7814_v9  ;;  %v398_v38 = vrot.slane %v396_v18, 5  ;;  %v7235_v47 = vld [vmem:[%s10149_s1 + $0x168] sm:$0xff]   ;;  %v7892_v0 = vld [vmem:[%s7671_s25 + $0x44] sm:$0x1]  ;;  %v7241_v18 = vld [vmem:[%s10149_s1 + $0x130] sm:$0xff]  }
  0x5a   : > { %1943 = vmatprep.mubr.bf16.mxu1 %v7743_v23  ;;  %v376_v20 = vrot.slane %v375_v11, 4  ;;  %v385_v21 = vor.u32 %v384_v7, %v380_v12  ;;  %v755_v40 = vsel %vm7711_vm5, %v5729_v28, %v754_v29  ;;  %v756_v30 = vrot.slane %v754_v29, 4 }
  0x5b   : > { %v7818_v10 = vsel %vm7702_vm4, %v362_v2, %v366_v56  ;;  %v402_v35 = vshll.u32 %v7814_v9, 16  ;;  %v420_v55 = vshll.u32 %v7843_v25, 16  ;;  %v414_v62 = vrot.slane %v412_v45, 5  ;;  %v7895_v2 = vld [vmem:[%s7671_s25 + $0x48] sm:$0xf] }
  0x5c   : > { %6313 = vmatpush3.bf16.msra.mxu0 %v7221_v36  ;;  %10252 = vst [vmem:[#allocation12_spill] sm:$0xff] %v7818_v10  ;;  %v7830_v15 = vcombine.low %v7806_v1, %v7818_v10  ;;  %v7855_v33 = vsel %vm7702_vm4, %v376_v20, %v380_v12  ;;  %v386_v34 = vrot.slane %v385_v21, 4  ;;  %v395_v36 = vrot.slane %v393_v13, 4  ;;  %v7243_v20 = vld [vmem:[%s10149_s1 + $0x180] sm:$0xff]  }
  0x5d   : > { %6314 = vmatprep.subr.bf16.mxu0 %v7223_v41  ;;  %10253 = vst [vmem:[#allocation13_spill] sm:$0xff] %v7855_v33  ;;  %v408_v41 = vrot.slane %v406_v22, 4  ;;  %v758_v49 = vsel %vm7711_vm5, %v756_v30, %v757_v32  ;;  %v404_v53 = vrot.slane %v402_v35, 5  ;;  %v5730_v4 = vrot.slane %v7791_v51, 9  ;;  %v7242_v51 = vld [vmem:[%s10149_s1 + $0x1c0] sm:$0xff]  }
  0x5e   : > { %v7868_v43 = vsel %vm7702_vm4, %v386_v34, %v390_v17  ;;  %v399_v44 = vor.u32 %v398_v38, %v395_v36  ;;  %v7889_v60 = vcombine.low %v755_v40, %v758_v49  ;;  %v422_v7 = vrot.slane %v420_v55, 5  ;;  %v7933_v32 = vld [vmem:[%s7671_s25 + $0x50] sm:$0x1]  ;;  %6422 = vmatprep.subr.bf16.mxu1 %v7242_v51  ;;  %v7942_v40 = vld [vmem:[%s7671_s25 + $0x54] sm:$0xf] }
  0x5f   : > { %1783 = vmatmul.mubr.bf16.gmra.mrb[4].mxu0 %v7706_v57  ;;  %v7229_v57 = vld [vmem:[%s10149_s1 + $0x118] sm:$0xff]   ;;  %10254 = vst [vmem:[#allocation14_spill] sm:$0xff] %v7868_v43  ;;  %v7878_v48 = vcombine.low %v7855_v33, %v7868_v43  ;;  %v409_v61 = vor.u32 %v408_v41, %v404_v53  ;;  %v7912_v13 = vcombine.low %v7843_v25, %v7864_v42  ;;  %v436_v16 = vshll.u32 %v7892_v0, 16 }
  0x60   : > { %6315 = vmatpush3.bf16.msra.mxu0 %v7225_v58  ;;  %1790 = vmatprep.mubr.bf16.mxu0 %v7830_v15  ;;  %v400_v56 = vrot.slane %v399_v44, 4  ;;  %v430_v58 = vshrl.u32 %v7864_v42, 16  ;;  %v423_v9 = vor.u32 %v422_v7, %v419_v5  ;;  %v441_v17 = vshrl.u32 %v7895_v2, 16  ;;  %v7955_v49 = vld [vmem:[%s7671_s25 + $0x58] sm:$0xf] }
  0x61   : > { %1944 = vmatmul.mubr.bf16.gmra.mrb[4].mxu1 %v7793_v52  ;;  %6316 = vmatprep.subr.bf16.mxu0 %v7227_v59  ;;  %v7237_v59 = vld [vmem:[%s10149_s1 + $0x128] sm:$0xff]   ;;  %v410_v12 = vrot.slane %v409_v61, 4  ;;  %v764_v22 = vrot.slane %v7840_v24, 5  ;;  %v444_v29 = vshll.u32 %v7895_v2, 16  ;;  %v762_v36 = vsel %vm7711_vm5, %v5730_v4, %v761_v6  ;;  %v7981_v51 = vld [vmem:[%s7671_s25 + $0x5c] sm:$0x1] }
  0x62   : > { %1951 = vmatprep.mubr.bf16.mxu1 %v7788_v50  ;;  %v7908_v11 = vsel %vm7702_vm4, %v400_v56, %v404_v53  ;;  %v763_v38 = vrot.slane %v761_v6, 4  ;;  %6423 = vmatpush3.bf16.msra.mxu1 %v7243_v20  ;;  %v438_v30 = vrot.slane %v436_v16, 5  ;;  %v454_v35 = vshrl.u32 %v7904_v8, 16  ;;  %v7244_v53 = vld [vmem:[%s10149_s1 + $0x1c8] sm:$0xff]  }
  0x63   : > { %10255 = vst [vmem:[#allocation15_spill] sm:$0xff] %v7908_v11  ;;  %v7928_v21 = vsel %vm7702_vm4, %v410_v12, %v414_v62  ;;  %v5731_v41 = vrot.slane %v7843_v25, 9  ;;  %v768_v45 = vrot.slane %v7864_v42, 5  ;;  %v771_v46 = vrot.slane %v7892_v0, 5  ;;  %6424 = vmatprep.subr.bf16.mxu1 %v7244_v53  ;;  %v7245_v0 = vld [vmem:[%s10149_s1 + $0x188] sm:$0xff]  }
  0x64   : > { %6317 = vmatpush3.bf16.msra.mxu0 %v7229_v57  ;;  %v426_v57 = vshll.u32 %v7864_v42, 16  ;;  %10256 = vst [vmem:[#allocation16_spill] sm:$0xff] %v7928_v21  ;;  %v7937_v34 = vcombine.low %v7908_v11, %v7928_v21  ;;  %v446_v55 = vrot.slane %v444_v29, 5  ;;  %v450_v56 = vshll.u32 %v7904_v8, 16  ;;  %v8232_v11 = vld [vmem:[%s7671_s25 + $0xa0] sm:$0xf] }
  0x65   : > { %6318 = vmatprep.subr.bf16.mxu0 %v7231_v14  ;;  %v432_v14 = vrot.slane %v430_v58, 4  ;;  %v456_v58 = vrot.slane %v454_v35, 4  ;;  %v765_v42 = vsel %vm7711_vm5, %v763_v38, %v764_v22  ;;  %v460_v61 = vshll.u32 %v7933_v32, 16 }
  0x66   : > { %v428_v28 = vrot.slane %v426_v57, 5  ;;  %v465_v62 = vshrl.u32 %v7942_v40, 16  ;;  %v452_v6 = vrot.slane %v450_v56, 5  ;;  %v468_v5 = vshll.u32 %v7942_v40, 16  ;;  %6425 = vmatpush3.bf16.msra.mxu1 %v7245_v0  ;;  %v8033_v0 = vld [vmem:[%s7671_s25 + $0x68] sm:$0x1] }
  0x67   : > { %1791 = vmatmul.mubr.bf16.gmra.mrb[8].mxu0 %v7743_v23  ;;  %v462_v12 = vrot.slane %v460_v61, 5  ;;  %v478_v57 = vshrl.u32 %v7955_v49, 16  ;;  %v769_v20 = vsel %vm7711_vm5, %v5731_v41, %v768_v45  ;;  %v775_v41 = vrot.slane %v7904_v8, 5 }
  0x68   : > { %6319 = vmatpush3.bf16.msra.mxu0 %v7233_v39  ;;  %1798 = vmatprep.mubr.bf16.mxu0 %v7878_v48  ;;  %v424_v39 = vrot.slane %v423_v9, 4  ;;  %v433_v24 = vor.u32 %v432_v14, %v428_v28  ;;  %v7983_v9 = vcombine.low %v762_v36, %v765_v42  ;;  %v457_v16 = vor.u32 %v456_v58, %v452_v6  ;;  %v8026_v58 = vld [vmem:[%s7671_s25 + $0x6c] sm:$0xf] }
  0x69   : > { %1952 = vmatmul.mubr.bf16.gmra.mrb[8].mxu1 %v7836_v19  ;;  %6320 = vmatprep.subr.bf16.mxu0 %v7235_v47  ;;  %v443_v47 = vrot.slane %v441_v17, 4  ;;  %v7247_v17 = vld [vmem:[%s10149_s1 + $0x1d0] sm:$0xff]   ;;  %v467_v22 = vrot.slane %v465_v62, 4  ;;  %v470_v38 = vrot.slane %v468_v5, 5  ;;  %v778_v5 = vrot.slane %v7933_v32, 5 }
  0x6a   : > { %1959 = vmatprep.mubr.bf16.mxu1 %v7848_v26  ;;  %v7950_v44 = vsel %vm7702_vm4, %v424_v39, %v428_v28  ;;  %v434_v25 = vrot.slane %v433_v24, 4  ;;  %v7995_v28 = vld [vmem:[%s7671_s25 + $0x60] sm:$0xf]  ;;  %v458_v36 = vrot.slane %v457_v16, 4  ;;  %v474_v39 = vshll.u32 %v7955_v49, 16  ;;  %6426 = vmatprep.subr.bf16.mxu1 %v7247_v17 }
  0x6b   : > { %10257 = vst [vmem:[#allocation17_spill] sm:$0xff] %v7950_v44  ;;  %v447_v4 = vor.u32 %v446_v55, %v443_v47  ;;  %v8002_v24 = vld [vmem:[%s7671_s25 + $0x64] sm:$0xf]  ;;  %v7249_v47 = vld [vmem:[%s10149_s1 + $0x1d8] sm:$0xff]   ;;  %v489_v56 = vshrl.u32 %v7995_v28, 16  ;;  %v782_v32 = vrot.slane %v7955_v49, 5 }
  0x6c   : > { %6321 = vmatpush3.bf16.msra.mxu0 %v7237_v59  ;;  %v770_v59 = vrot.slane %v768_v45, 4  ;;  %v480_v45 = vrot.slane %v478_v57, 4  ;;  %v8020_v53 = vsel %vm7702_vm4, %v458_v36, %v462_v12  ;;  %v476_v55 = vrot.slane %v474_v39, 5  ;;  %v8041_v57 = vld [vmem:[%s7671_s25 + $0x70] sm:$0xf]  ;;  %v7253_v39 = vld [vmem:[%s10149_s1 + $0x138] sm:$0xff]  }
  0x6d   : > { %6322 = vmatprep.subr.bf16.mxu0 %v7239_v3  ;;  %v7972_v3 = vsel %vm7702_vm4, %v434_v25, %v438_v30  ;;  %v448_v14 = vrot.slane %v447_v4, 4  ;;  %v7248_v30 = vld [vmem:[%s10149_s1 + $0x190] sm:$0xff]   ;;  %10260 = vst [vmem:[#allocation20_spill] sm:$0xff] %v8020_v53  ;;  %v471_v25 = vor.u32 %v470_v38, %v467_v22  ;;  %v502_v62 = vshrl.u32 %v8002_v24, 16  ;;  %v7251_v22 = vld [vmem:[%s10149_s1 + $0x178] sm:$0xff]  }
  0x6e   : > { %10258 = vst [vmem:[#allocation18_spill] sm:$0xff] %v7972_v3  ;;  %v7977_v7 = vcombine.low %v7950_v44, %v7972_v3  ;;  %v772_v29 = vsel %vm7711_vm5, %v770_v59, %v771_v46  ;;  %v484_v46 = vshll.u32 %v7981_v51, 16  ;;  %6427 = vmatpush3.bf16.msra.mxu1 %v7248_v30  ;;  %v5732_v59 = vrot.slane %v7895_v2, 9 }
  0x6f   : > { %1799 = vmatmul.mubr.bf16.gmra.mrb[12].mxu0 %v7788_v50  ;;  %v8010_v35 = vsel %vm7702_vm4, %v448_v14, %v452_v6  ;;  %v8028_v42 = vcombine.low %v769_v20, %v772_v29  ;;  %v481_v61 = vor.u32 %v480_v45, %v476_v55  ;;  %6428 = vmatprep.subr.bf16.mxu1 %v7249_v47  ;;  %v777_v6 = vrot.slane %v775_v41, 4 }
  0x70   : > { %1806 = vmatprep.mubr.bf16.mxu0 %v7937_v34  ;;  %6323 = vmatpush3.bf16.msra.mxu0 %v7241_v18  ;;  %v7990_v18 = vcombine.low %v7895_v2, %v7904_v8  ;;  %10259 = vst [vmem:[#allocation19_spill] sm:$0xff] %v8010_v35  ;;  %v492_v8 = vshll.u32 %v7995_v28, 16  ;;  %v8037_v4 = vcombine.low %v8010_v35, %v8020_v53  ;;  %v486_v12 = vrot.slane %v484_v46, 5  ;;  %v7250_v2 = vld [vmem:[%s10149_s1 + $0x198] sm:$0xff]   ;;  %v8145_v53 = vld [vmem:[%s7671_s25 + $0x80] sm:$0x1] }
  0x71   : > { %1960 = vmatmul.mubr.bf16.gmra.mrb[12].mxu1 %v7889_v60  ;;  %v472_v14 = vrot.slane %v471_v25, 4  ;;  %v482_v16 = vrot.slane %v481_v61, 4  ;;  %v491_v17 = vrot.slane %v489_v56, 4  ;;  %v8051_v29 = vcombine.low %v7942_v40, %v7955_v49  ;;  %6324 = vmatprep.subr.bf16.mxu0 %v7251_v22  ;;  %v8071_v61 = vld [vmem:[%s7671_s25 + $0x78] sm:$0xf] }
  0x72   : > { %1967 = vmatprep.mubr.bf16.mxu1 %v7912_v13  ;;  %v494_v20 = vrot.slane %v492_v8, 5  ;;  %v498_v36 = vshll.u32 %v8002_v24, 16  ;;  %v504_v38 = vrot.slane %v502_v62, 4  ;;  %6429 = vmatpush3.bf16.msra.mxu1 %v7250_v2  ;;  %v776_v30 = vsel %vm7711_vm5, %v5732_v59, %v775_v41  ;;  %v8068_v8 = vld [vmem:[%s7671_s25 + $0x74] sm:$0x1] }
  0x73   : > { %10261 = vst [vmem:[#allocation21_spill] sm:$0xff] %v8051_v29  ;;  %v513_v46 = vshrl.u32 %v8026_v58, 16  ;;  %v779_v49 = vsel %vm7711_vm5, %v777_v6, %v778_v5  ;;  %v508_v25 = vshll.u32 %v8033_v0, 16  ;;  %v516_v56 = vshll.u32 %v8026_v58, 16  ;;  %v7254_v5 = vld [vmem:[%s10149_s1 + $0x1e0] sm:$0xff]  }
  0x74   : > { %v495_v45 = vor.u32 %v494_v20, %v491_v17  ;;  %v500_v47 = vrot.slane %v498_v36, 5  ;;  %6325 = vmatpush3.bf16.msra.mxu0 %v7253_v39  ;;  %v8076_v41 = vsel %vm7702_vm4, %v472_v14, %v476_v55  ;;  %v8080_v59 = vsel %vm7702_vm4, %v482_v16, %v486_v12  ;;  %6430 = vmatprep.subr.bf16.mxu1 %v7254_v5 }
  0x75   : > { %10262 = vst [vmem:[#allocation22_spill] sm:$0xff] %v8076_v41  ;;  %10263 = vst [vmem:[#allocation23_spill] sm:$0xff] %v8080_v59  ;;  %v5733_v62 = vrot.slane %v7942_v40, 9  ;;  %v526_v6 = vshrl.u32 %v8041_v57, 16  ;;  %v784_v2 = vrot.slane %v782_v32, 4  ;;  %v785_v17 = vrot.slane %v7981_v51, 5 }
  0x76   : > { %v505_v55 = vor.u32 %v504_v38, %v500_v47  ;;  %v8089_v14 = vcombine.low %v776_v30, %v779_v49  ;;  %v496_v20 = vrot.slane %v495_v45, 4  ;;  %v515_v12 = vrot.slane %v513_v46, 4  ;;  %v7255_v40 = vld [vmem:[%s10149_s1 + $0x1a0] sm:$0xff]   ;;  %v7256_v38 = vld [vmem:[%s10149_s1 + $0x1e8] sm:$0xff]   ;;  %v8105_v49 = vld [vmem:[%s7671_s25 + $0x7c] sm:$0xf] }
  0x77   : > { %1807 = vmatmul.mubr.bf16.gmra.mrb[16].mxu0 %v7848_v26  ;;  %v518_v16 = vrot.slane %v516_v56, 5  ;;  %v8096_v22 = vcombine.low %v8076_v41, %v8080_v59  ;;  %v510_v36 = vrot.slane %v508_v25, 5  ;;  %v789_v39 = vrot.slane %v8002_v24, 5  ;;  %6431 = vmatpush3.bf16.msra.mxu1 %v7255_v40 }
  0x78   : > { %1814 = vmatprep.mubr.bf16.mxu0 %v7977_v7  ;;  %v522_v51 = vshll.u32 %v8041_v57, 16  ;;  %v506_v30 = vrot.slane %v505_v55, 4  ;;  %v528_v45 = vrot.slane %v526_v6, 4  ;;  %v532_v46 = vshll.u32 %v8068_v8, 16  ;;  %6432 = vmatprep.subr.bf16.mxu1 %v7256_v38  ;;  %v7257_v6 = vld [vmem:[%s10149_s1 + $0x1a8] sm:$0xff]  }
  0x79   : > { %1968 = vmatmul.mubr.bf16.gmra.mrb[16].mxu1 %v7983_v9  ;;  %10264 = vst [vmem:[#allocation24_spill] sm:$0xff] %v8096_v22  ;;  %v537_v56 = vshrl.u32 %v8071_v61, 16  ;;  %v8110_v25 = vcombine.low %v7995_v28, %v8002_v24  ;;  %v519_v5 = vor.u32 %v518_v16, %v515_v12  ;;  %v783_v55 = vsel %vm7711_vm5, %v5733_v62, %v782_v32  ;;  %v8128_v38 = vld [vmem:[%s7671_s25 + $0x88] sm:$0xf] }
  0x7a   : > { %1975 = vmatprep.mubr.bf16.mxu1 %v7990_v18  ;;  %v524_v59 = vrot.slane %v522_v51, 5  ;;  %v540_v41 = vshll.u32 %v8071_v61, 16  ;;  %v786_v24 = vsel %vm7711_vm5, %v784_v2, %v785_v17  ;;  %v5734_v12 = vrot.slane %v7995_v28, 9  ;;  %v8125_v51 = vld [vmem:[%s7671_s25 + $0x84] sm:$0xf]  ;;  %v7259_v17 = vld [vmem:[%s10149_s1 + $0x1f0] sm:$0xff]  }
  0x7b   : > { %10265 = vst [vmem:[#allocation25_spill] sm:$0xff] %v8110_v25  ;;  %v550_v40 = vshrl.u32 %v8105_v49, 16  ;;  %v8133_v32 = vsel %vm7702_vm4, %v496_v20, %v500_v47  ;;  %v8137_v62 = vsel %vm7702_vm4, %v506_v30, %v510_v36  ;;  %v791_v2 = vrot.slane %v789_v39, 4  ;;  %6433 = vmatpush3.bf16.msra.mxu1 %v7257_v6 }
  0x7c   : > { %v529_v16 = vor.u32 %v528_v45, %v524_v59  ;;  %10266 = vst [vmem:[#allocation26_spill] sm:$0xff] %v8133_v32  ;;  %10267 = vst [vmem:[#allocation27_spill] sm:$0xff] %v8137_v62  ;;  %v792_v28 = vrot.slane %v8033_v0, 5  ;;  %v520_v45 = vrot.slane %v519_v5, 4  ;;  %v534_v3 = vrot.slane %v532_v46, 5  ;;  %6434 = vmatprep.subr.bf16.mxu1 %v7259_v17  ;;  %v7260_v0 = vld [vmem:[%s10149_s1 + $0x1b0] sm:$0xff]  }
  0x7d   : > { %v539_v44 = vrot.slane %v537_v56, 4  ;;  %v546_v47 = vshll.u32 %v8105_v49, 16  ;;  %v542_v36 = vrot.slane %v540_v41, 5  ;;  %v552_v30 = vrot.slane %v550_v40, 4 }
  0x7e   : > { %v530_v20 = vrot.slane %v529_v16, 4  ;;  %v8153_v35 = vcombine.low %v8133_v32, %v8137_v62  ;;  %v561_v46 = vshrl.u32 %v8125_v51, 16  ;;  %v564_v5 = vshll.u32 %v8125_v51, 16  ;;  %v7261_v16 = vld [vmem:[%s10149_s1 + $0x1f8] sm:$0xff]  }
  0x7f   : > { %1815 = vmatmul.mubr.bf16.gmra.mrb[20].mxu0 %v7912_v13  ;;  %v8157_v56 = vcombine.low %v783_v55, %v786_v24  ;;  %v548_v43 = vrot.slane %v546_v47, 5  ;;  %v574_v6 = vshrl.u32 %v8128_v38, 16  ;;  %v8162_v41 = vcombine.low %v8026_v58, %v8041_v57  ;;  %6435 = vmatpush3.bf16.msra.mxu1 %v7260_v0 }
  0x80   : > { %1822 = vmatprep.mubr.bf16.mxu0 %v8037_v4  ;;  %10268 = vst [vmem:[#allocation28_spill] sm:$0xff] %v8153_v35  ;;  %v790_v40 = vsel %vm7711_vm5, %v5734_v12, %v789_v39  ;;  %v793_v55 = vsel %vm7711_vm5, %v791_v2, %v792_v28  ;;  %v796_v24 = vrot.slane %v8041_v57, 5  ;;  %v556_v17 = vshll.u32 %v8145_v53, 16  ;;  %6436 = vmatprep.subr.bf16.mxu1 %v7261_v16  ;;  %v7262_v39 = vld [vmem:[%s10149_s1 + $0x1b8] sm:$0xff]   ;;  %v8201_v16 = vld [vmem:[%s7671_s25 + $0x94] sm:$0xf] }
  0x81   : > { %1976 = vmatmul.mubr.bf16.gmra.mrb[20].mxu1 %v8028_v42  ;;  %10269 = vst [vmem:[#allocation29_spill] sm:$0xff] %v8157_v56  ;;  %10270 = vst [vmem:[#allocation30_spill] sm:$0xff] %v8162_v41  ;;  %v8177_v47 = vsel %vm7702_vm4, %v520_v45, %v524_v59  ;;  %v563_v0 = vrot.slane %v561_v46, 4  ;;  %v566_v62 = vrot.slane %v564_v5, 5  ;;  %v570_v32 = vshll.u32 %v8128_v38, 16  ;;  %v8197_v46 = vld [vmem:[%s10149_s1 + $0x200] sm:$0xff]  }
  0x82   : > { %1983 = vmatprep.mubr.bf16.mxu1 %v8051_v29  ;;  %10271 = vst [vmem:[#allocation31_spill] sm:$0xff] %v8177_v47  ;;  %v8186_v57 = vsel %vm7702_vm4, %v530_v20, %v534_v3  ;;  %v543_v12 = vor.u32 %v542_v36, %v539_v44  ;;  %v553_v2 = vor.u32 %v552_v30, %v548_v43  ;;  %v8189_v59 = vld [vmem:[%s7671_s25 + $0x8c] sm:$0x1]  ;;  %v576_v28 = vrot.slane %v574_v6, 4  ;;  %v8192_v45 = vld [vmem:[%s7671_s25 + $0x90] sm:$0xf] }
  0x83   : > { %10272 = vst [vmem:[#allocation32_spill] sm:$0xff] %v8186_v57  ;;  %v572_v5 = vrot.slane %v570_v32, 5  ;;  %6437 = vmatpush3.bf16.msra.mxu1 %v7262_v39  ;;  %v8203_v3 = vcombine.low %v790_v40, %v793_v55  ;;  %v5735_v44 = vrot.slane %v8026_v58, 9  ;;  %v799_v20 = vrot.slane %v8068_v8, 5  ;;  %7030 = vmatprep.subr.bf16.mxu0 %v8197_v46 }
  0x84   : > { %v8210_v36 = vcombine.low %v8177_v47, %v8186_v57  ;;  %v798_v30 = vrot.slane %v796_v24, 4  ;;  %v567_v6 = vor.u32 %v566_v62, %v563_v0  ;;  %v580_v32 = vshll.u32 %v8189_v59, 16 }
  0x85   : > { %10273 = vst [vmem:[#allocation33_spill] sm:$0xff] %v8203_v3  ;;  %v544_v21 = vrot.slane %v543_v12, 4  ;;  %v554_v33 = vrot.slane %v553_v2, 4  ;;  %v558_v40 = vrot.slane %v556_v17, 5  ;;  %v577_v55 = vor.u32 %v576_v28, %v572_v5  ;;  %v8224_v12 = vld [vmem:[%s7671_s25 + $0x9c] sm:$0xf] }
  0x86   : > { %10274 = vst [vmem:[#allocation34_spill] sm:$0xff] %v8210_v36  ;;  %v8215_v58 = vcombine.low %v8071_v61, %v8105_v49  ;;  %v585_v8 = vshrl.u32 %v8192_v45, 16  ;;  %v588_v39 = vshll.u32 %v8192_v45, 16  ;;  %v598_v57 = vshrl.u32 %v8201_v16, 16 }
  0x87   : > { %1823 = vmatmul.mubr.bf16.gmra.mrb[24].mxu0 %v7990_v18  ;;  %v803_v62 = vrot.slane %v8105_v49, 5  ;;  %v594_v0 = vshll.u32 %v8201_v16, 16  ;;  %v797_v17 = vsel %vm7711_vm5, %v5735_v44, %v796_v24  ;;  %v800_v2 = vsel %vm7711_vm5, %v798_v30, %v799_v20  ;;  %v8245_v44 = vld [vmem:[%s7671_s25 + $0x98] sm:$0x1] }
  0x88   : > { %1830 = vmatprep.mubr.bf16.mxu0 %v8096_v22  ;;  %10275 = vst [vmem:[#allocation35_spill] sm:$0xff] %v8215_v58  ;;  %v568_v28 = vrot.slane %v567_v6, 4  ;;  %v582_v47 = vrot.slane %v580_v32, 5  ;;  %v8237_v49 = vsel %vm7702_vm4, %v544_v21, %v548_v43  ;;  %v8241_v31 = vsel %vm7702_vm4, %v554_v33, %v558_v40  ;;  %v8257_v40 = vld [vmem:[%s7671_s25 + $0xa8] sm:$0xf] }
  0x89   : > { %1984 = vmatmul.mubr.bf16.gmra.mrb[24].mxu1 %v8089_v14  ;;  %10276 = vst [vmem:[#allocation36_spill] sm:$0xff] %v8237_v49  ;;  %10277 = vst [vmem:[#allocation37_spill] sm:$0xff] %v8241_v31  ;;  %v578_v10 = vrot.slane %v577_v55, 4  ;;  %v810_v24 = vrot.slane %v8128_v38, 5  ;;  %v587_v20 = vrot.slane %v585_v8, 4  ;;  %v590_v30 = vrot.slane %v588_v39, 5 }
  0x8a   : > { %1991 = vmatprep.mubr.bf16.mxu1 %v8110_v25  ;;  %v600_v6 = vrot.slane %v598_v57, 4  ;;  %v609_v32 = vshrl.u32 %v8224_v12, 16  ;;  %v8249_v27 = vcombine.low %v797_v17, %v800_v2  ;;  %v8253_v43 = vcombine.low %v8125_v51, %v8128_v38 }
  0x8b   : > { %v596_v33 = vrot.slane %v594_v0, 5  ;;  %v612_v21 = vshll.u32 %v8224_v12, 16  ;;  %v8261_v55 = vcombine.low %v8237_v49, %v8241_v31  ;;  %v5736_v57 = vrot.slane %v8071_v61, 9  ;;  %v8275_v61 = vld [vmem:[%s7671_s25 + $0xac] sm:$0xf] }
  0x8c   : > { %10278 = vst [vmem:[#allocation38_spill] sm:$0xff] %v8249_v27  ;;  %v805_v8 = vrot.slane %v803_v62, 4  ;;  %v806_v39 = vrot.slane %v8145_v53, 5  ;;  %v5737_v17 = vrot.slane %v8125_v51, 9  ;;  %v813_v38 = vrot.slane %v8189_v59, 5 }
  0x8d   : > { %10279 = vst [vmem:[#allocation39_spill] sm:$0xff] %v8261_v55  ;;  %v622_v0 = vshrl.u32 %v8232_v11, 16  ;;  %v618_v2 = vshll.u32 %v8232_v11, 16  ;;  %v8271_v1 = vsel %vm7702_vm4, %v568_v28, %v572_v5  ;;  %v812_v31 = vrot.slane %v810_v24, 4  ;;  %v8283_v59 = vld [vmem:[%s7671_s25 + $0xa4] sm:$0x1] }
  0x8e   : > { %10280 = vst [vmem:[#allocation40_spill] sm:$0xff] %v8271_v1  ;;  %v591_v49 = vor.u32 %v590_v30, %v587_v20  ;;  %v8280_v53 = vsel %vm7702_vm4, %v578_v10, %v582_v47  ;;  %v601_v51 = vor.u32 %v600_v6, %v596_v33  ;;  %v633_v5 = vshrl.u32 %v8257_v40, 16 }
  0x8f   : > { %1831 = vmatmul.mubr.bf16.gmra.mrb[28].mxu0 %v8051_v29  ;;  %10281 = vst [vmem:[#allocation41_spill] sm:$0xff] %v8280_v53  ;;  %v636_v28 = vshll.u32 %v8257_v40, 16  ;;  %v804_v20 = vsel %vm7711_vm5, %v5736_v57, %v803_v62  ;;  %v807_v10 = vsel %vm7711_vm5, %v805_v8, %v806_v39  ;;  %v8293_v47 = vrot.slane %v618_v2, 5 }
  0x90   : > { %1838 = vmatprep.mubr.bf16.mxu0 %v8153_v35  ;;  %v624_v30 = vrot.slane %v622_v0, 4  ;;  %v8298_v6 = vcombine.low %v8271_v1, %v8280_v53  ;;  %v602_v62 = vrot.slane %v601_v51, 4  ;;  %v817_v8 = vrot.slane %v8201_v16, 5  ;;  %v8314_v51 = vld [vmem:[%s7671_s25 + $0xb4] sm:$0xf] }
  0x91   : > { %1992 = vmatmul.mubr.bf16.gmra.mrb[28].mxu1 %v8157_v56  ;;  %v642_v39 = vshll.u32 %v8275_v61, 16  ;;  %v628_v2 = vshll.u32 %v8283_v59, 16  ;;  %v638_v53 = vrot.slane %v636_v28, 5  ;;  %v8308_v1 = vcombine.low %v804_v20, %v807_v10 }
  0x92   : > { %1999 = vmatprep.mubr.bf16.mxu1 %v8162_v41  ;;  %10282 = vst [vmem:[#allocation42_spill] sm:$0xff] %v8298_v6  ;;  %v10191_v35 = vrot.slane %v8232_v11, 5  ;;  %v8318_v57 = vcombine.low %v8192_v45, %v8201_v16  ;;  %v819_v20 = vrot.slane %v817_v8, 4 }
  0x93   : > { %10283 = vst [vmem:[#allocation43_spill] sm:$0xff] %v8308_v1 }
  0x97   : > { %1839 = vmatmul.mubr.bf16.gmra.mrb[32].mxu0 %v8110_v25  ;;  %v611_v25 = vrot.slane %v609_v32, 4  ;;  %v592_v32 = vrot.slane %v591_v49, 4  ;;  %v625_v49 = vor.u32 %v624_v30, %v8293_v47  ;;  %v8336_v30 = vld [vmem:[%s7671_s25 + $0xb8] sm:$0xf] }
  0x98   : > { %1846 = vmatprep.mubr.bf16.mxu0 %v8210_v36  ;;  %v604_v36 = vshll.u32 %v8245_v44, 16 }
  0x99   : > { %2000 = vmatmul.mubr.bf16.gmra.mrb[32].mxu1 %v8203_v3  ;;  %v614_v3 = vrot.slane %v612_v21, 5  ;;  %v8327_v28 = vsel %vm7702_vm4, %v592_v32, %v596_v33  ;;  %v5739_v33 = vrot.slane %v8224_v12, 9  ;;  %v827_v32 = vrot.slane %v8283_v59, 5 }
  0x9a   : > { %2007 = vmatprep.mubr.bf16.mxu1 %v8215_v58  ;;  %v606_v21 = vrot.slane %v604_v36, 5  ;;  %v820_v36 = vrot.slane %v8245_v44, 5  ;;  %v814_v44 = vsel %vm7711_vm5, %v812_v31, %v813_v38  ;;  %10284 = vst [vmem:[#allocation44_spill] sm:$0xff] %v8327_v28  ;;  %v626_v31 = vrot.slane %v625_v49, 4 }
  0x9b   : > { %v615_v0 = vor.u32 %v614_v3, %v611_v25  ;;  %v811_v25 = vsel %vm7711_vm5, %v5737_v17, %v810_v24  ;;  %v644_v3 = vrot.slane %v642_v39, 5  ;;  %v826_v38 = vrot.slane %v10191_v35, 4  ;;  %v8348_v39 = vld [vmem:[%s7671_s25 + $0xbc] sm:$0x1] }
  0x9c   : > { %v8333_v16 = vsel %vm7702_vm4, %v602_v62, %v606_v21  ;;  %v657_v62 = vshrl.u32 %v8314_v51, 16  ;;  %v666_v35 = vshll.u32 %v8336_v30, 16 }
  0x9d   : > { %10285 = vst [vmem:[#allocation45_spill] sm:$0xff] %v8333_v16  ;;  %v616_v24 = vrot.slane %v615_v0, 4  ;;  %v8353_v49 = vcombine.low %v8327_v28, %v8333_v16 }
  0x9e   : > { %v659_v22 = vrot.slane %v657_v62, 4  ;;  %v10288_v62 = vrot.slane %v8192_v45, 9 }
  0x9f   : > { %1847 = vmatmul.mubr.bf16.gmra.mrb[36].mxu0 %v8162_v41  ;;  %v8302_v41 = vld [vmem:[%s7671_s25 + $0xb0] sm:$0x1] }
  0xa0   : > { %1854 = vmatprep.mubr.bf16.mxu0 %v8261_v55  ;;  %v646_v55 = vshrl.u32 %v8275_v61, 16  ;;  %v652_v10 = vshll.u32 %v8302_v41, 16 }
  0xa1   : > { %2008 = vmatmul.mubr.bf16.gmra.mrb[36].mxu1 %v8249_v27  ;;  %v635_v27 = vrot.slane %v633_v5, 4 }
  0xa2   : > { %2015 = vmatprep.mubr.bf16.mxu1 %v8253_v43  ;;  %v648_v5 = vrot.slane %v646_v55, 4  ;;  %v630_v55 = vrot.slane %v628_v2, 5  ;;  %v654_v0 = vrot.slane %v652_v10, 5  ;;  %v670_v2 = vshrl.u32 %v8336_v30, 16  ;;  %v8365_v10 = vld [vmem:[%s7671_s25 + $0xc0] sm:$0xf] }
  0xa3   : > { %v639_v17 = vor.u32 %v638_v53, %v635_v27  ;;  %v660_v27 = vshll.u32 %v8314_v51, 16  ;;  %v831_v53 = vrot.slane %v8275_v61, 5 }
  0xa4   : > { %v649_v21 = vor.u32 %v648_v5, %v644_v3  ;;  %v8360_v5 = vcombine.low %v8224_v12, %v8232_v11  ;;  %v844_v12 = vshrl.u32 %v8365_v10, 16 }
  0xa5   : > { %v640_v59 = vrot.slane %v639_v17, 4  ;;  %v833_v56 = vrot.slane %v831_v53, 4  ;;  %v662_v16 = vrot.slane %v660_v27, 5  ;;  %v672_v17 = vrot.slane %v670_v2, 4 }
  0xa6   : > { %v650_v29 = vrot.slane %v649_v21, 4  ;;  %v8379_v21 = vsel %vm7702_vm4, %v626_v31, %v630_v55  ;;  %v821_v27 = vsel %vm7711_vm5, %v819_v20, %v820_v36 }
  0xa7   : > { %1855 = vmatmul.mubr.bf16.gmra.mrb[40].mxu0 %v8215_v58  ;;  %v5740_v58 = vrot.slane %v8257_v40, 9  ;;  %10287 = vst [vmem:[#allocation47_spill] sm:$0xff] %v8379_v21  ;;  %v8404_v36 = vsel %vm7702_vm4, %v640_v59, %v644_v3  ;;  %v663_v55 = vor.u32 %v662_v16, %v659_v22  ;;  %v8422_v59 = vld [vmem:[%s7671_s25 + $0xc4] sm:$0xf] }
  0xa8   : > { %1862 = vmatprep.mubr.bf16.mxu0 %v8298_v6  ;;  %v8356_v6 = vcombine.low %v811_v25, %v814_v44  ;;  %v676_v25 = vshll.u32 %v8348_v39, 16  ;;  %v668_v44 = vrot.slane %v666_v35, 5  ;;  %v818_v35 = vsel %vm7711_vm5, %v10288_v62, %v817_v8  ;;  %10289 = vst [vmem:[#allocation48_spill] sm:$0xff] %v8404_v36 }
  0xa9   : > { %2016 = vmatmul.mubr.bf16.gmra.mrb[40].mxu1 %v8308_v1  ;;  %v834_v1 = vrot.slane %v8302_v41, 5  ;;  %v8375_v41 = vsel %vm7702_vm4, %v616_v24, %v8293_v47  ;;  %v8392_v47 = vcombine.low %v818_v35, %v821_v27  ;;  %v8396_v24 = vcombine.low %v8257_v40, %v8275_v61 }
  0xaa   : > { %2023 = vmatprep.mubr.bf16.mxu1 %v8318_v57  ;;  %10286 = vst [vmem:[#allocation46_spill] sm:$0xff] %v8375_v41  ;;  %v8390_v2 = vcombine.low %v8375_v41, %v8379_v21  ;;  %v678_v45 = vrot.slane %v676_v25, 5  ;;  %v847_v8 = vshll.u32 %v8365_v10, 16  ;;  %v8408_v20 = vsel %vm7702_vm4, %v650_v29, %v654_v0 }
  0xab   : > { %10290 = vst [vmem:[#allocation49_spill] sm:$0xff] %v8408_v20  ;;  %v673_v40 = vor.u32 %v672_v17, %v668_v44  ;;  %v10291_v61 = vrot.slane %v8232_v11, 5  ;;  %v828_v25 = vsel %vm7711_vm5, %v826_v38, %v827_v32  ;;  %v8419_v3 = vcombine.low %v8404_v36, %v8408_v20  ;;  %v7301_v20 = vld [vmem:[#allocation3 + $0xb0] sm:$0xff]  }
  0xac   : > { %v664_v22 = vrot.slane %v663_v55, 4  ;;  %v8428_v0 = vcombine.low %v8314_v51, %v8336_v30  ;;  %v846_v11 = vrot.slane %v844_v12, 4  ;;  %v853_v38 = vshll.u32 %v8422_v59, 16 }
  0xad   : > { %v825_v31 = vsel %vm7711_vm5, %v5739_v33, %v10291_v61  ;;  %v674_v16 = vrot.slane %v673_v40, 4  ;;  %v849_v33 = vrot.slane %v847_v8, 5  ;;  %v838_v62 = vrot.slane %v8336_v30, 5  ;;  %v8471_v61 = vld [vmem:[%s7671_s25 + $0xc8] sm:$0x1] }
  0xae   : > { %v8424_v29 = vcombine.low %v825_v31, %v828_v25  ;;  %v8436_v32 = vsel %vm7702_vm4, %v664_v22, %v668_v44  ;;  %v832_v12 = vsel %vm7711_vm5, %v5740_v58, %v831_v53  ;;  %v835_v27 = vsel %vm7711_vm5, %v833_v56, %v834_v1 }
  0xaf   : > { %1863 = vmatmul.mubr.bf16.gmra.mrb[44].mxu0 %v8253_v43  ;;  %10292 = vst [vmem:[#allocation50_spill] sm:$0xff] %v8436_v32  ;;  %v8440_v17 = vsel %vm7702_vm4, %v674_v16, %v678_v45  ;;  %v850_v35 = vor.u32 %v849_v33, %v846_v11  ;;  %v8448_v55 = vrot.slane %v853_v38, 5  ;;  %v8454_v45 = vcombine.low %v832_v12, %v835_v27  ;;  %v7264_v38 = vld [vmem:[%s10149_s1 + $0x208] sm:$0xff]   ;;  %v10303_v12 = vld [vmem:[#allocation30_spill] sm:$0xff] }
  0xb0   : > { %1870 = vmatprep.mubr.bf16.mxu0 %v8353_v49  ;;  %10293 = vst [vmem:[#allocation51_spill] sm:$0xff] %v8440_v17  ;;  %v8452_v44 = vcombine.low %v8436_v32, %v8440_v17  ;;  %v5741_v30 = vrot.slane %v8314_v51, 9  ;;  %v8464_v58 = vcombine.low %v8365_v10, %v8422_v59  ;;  %v840_v1 = vrot.slane %v838_v62, 4  ;;  %v10305_v27 = vld [vmem:[#allocation43_spill] sm:$0xff] }
  0xb1   : > { %2024 = vmatmul.mubr.bf16.gmra.mrb[44].mxu1 %v8356_v6  ;;  %v851_v8 = vrot.slane %v850_v35, 4  ;;  %v841_v56 = vrot.slane %v8348_v39, 5  ;;  %v904_v53 = vrot.slane %v8422_v59, 5  ;;  %v5742_v51 = vrot.slane %v8365_v10, 9  ;;  %v10300_v35 = vld [vmem:[#allocation25_spill] sm:$0xff] }
  0xb2   : > { %2031 = vmatprep.mubr.bf16.mxu1 %v8360_v5  ;;  %v907_v25 = vrot.slane %v8471_v61, 5  ;;  %v839_v39 = vsel %vm7711_vm5, %v5741_v30, %v838_v62  ;;  %v7265_v62 = vld [vmem:[%s10149_s1 + $0x210] sm:$0xff]   ;;  %v10307_v30 = vld [vmem:[#allocation42_spill] sm:$0xff] }
  0xb3   : > { %v8460_v40 = vsel %vm7702_vm4, %v851_v8, %v8448_v55  ;;  %v906_v31 = vrot.slane %v904_v53, 4  ;;  %v842_v22 = vsel %vm7711_vm5, %v840_v1, %v841_v56  ;;  %v905_v16 = vsel %vm7711_vm5, %v5742_v51, %v904_v53  ;;  %v10306_v8 = vld [vmem:[#allocation35_spill] sm:$0xff]  ;;  %v8563_v53 = vld [vmem:[%s10151_s3] ss:$0 sm:$0xff] }
  0xb4   : > { %10294 = vst [vmem:[#allocation52_spill] sm:$0xff] %v8460_v40  ;;  %v8487_v10 = vcombine.low %v839_v39, %v842_v22  ;;  %v857_v1 = vshrl.u32 %v8422_v59, 16 }
  0xb5   : > { %v908_v11 = vsel %vm7711_vm5, %v906_v31, %v907_v25 }
  0xb6   : > { %v8485_v33 = vcombine.low %v905_v16, %v908_v11  ;;  %v859_v16 = vrot.slane %v857_v1, 4 }
  0xb7   : > { %1871 = vmatmul.mubr.bf16.gmra.mrb[48].mxu0 %v8318_v57 }
  0xb8   : > { %1878 = vmatprep.mubr.bf16.mxu0 %v8390_v2 }
  0xb9   : > { %2032 = vmatmul.mubr.bf16.gmra.mrb[48].mxu1 %v8392_v47 }
  0xba   : > { %2039 = vmatprep.mubr.bf16.mxu1 %v8396_v24 }
  0xbf   : > { %1879 = vmatmul.mubr.bf16.gmra.mrb[52].mxu0 %v8360_v5 }
  0xc0   : > { %1886 = vmatprep.mubr.bf16.mxu0 %v8419_v3 }
  0xc1   : > { %2040 = vmatmul.mubr.bf16.gmra.mrb[52].mxu1 %v8424_v29 }
  0xc2   : > { %2047 = vmatprep.mubr.bf16.mxu1 %v8428_v0 }
  0xc7   : > { %1887 = vmatmul.mubr.bf16.gmra.mrb[56].mxu0 %v8396_v24 }
  0xc8   : > { %1894 = vmatprep.mubr.bf16.mxu0 %v8452_v44 }
  0xc9   : > { %2048 = vmatmul.mubr.bf16.gmra.mrb[56].mxu1 %v8454_v45 }
  0xca   : > { %2055 = vmatprep.mubr.bf16.mxu1 %v8464_v58 }
  0xcf   : > { %1895 = vmatmul.mubr.bf16.gmra.mrb[60].mxu0 %v8428_v0 }
  0xd0   : > { %2096 = vmatprep.mubr.bf16.mxu0 %v7793_v52  ;;  %v7266_v52 = vld [vmem:[%s10149_s1 + $0x218] sm:$0xff]  }
  0xd1   : > { %2056 = vmatmul.mubr.bf16.gmra.mrb[60].mxu1 %v8487_v10 }
  0xd2   : > { %2257 = vmatprep.mubr.bf16.mxu1 %v7830_v15 }
  0xd7   : > { %2097 = vmatmul.mubr.bf16.vlgmr.msra.gmra.mrb[64].mxu0 %v7768_v37  ;;  %v7268_v37 = vld [vmem:[%s10149_s1 + $0x228] sm:$0xff]  }
  0xd8   : > { %7031 = vmatpush3.bf16.msra.mxu0 %v8197_v46  ;;  %2104 = vmatprep.mubr.bf16.mxu0 %v7836_v19  ;;  %v10298_v46 = vld [vmem:[#allocation28_spill] sm:$0xff] }
  0xd9   : > { %2258 = vmatmul.mubr.bf16.vlgmr.msra.gmra.mrb[64].mxu1 %v7743_v23  ;;  %7032 = vmatprep.subr.bf16.mxu0 %v7264_v38  ;;  %v7267_v23 = vld [vmem:[%s10149_s1 + $0x220] sm:$0xff]  }
  0xda   : > { %2265 = vmatprep.mubr.bf16.mxu1 %v7878_v48 }
  0xdc   : > { %7033 = vmatpush3.bf16.msra.mxu0 %v7264_v38 }
  0xdd   : > { %7034 = vmatprep.subr.bf16.mxu0 %v7265_v62 }
  0xdf   : > { %2105 = vmatmul.mubr.bf16.gmra.mrb[68].mxu0 %v7830_v15  ;;  %v7270_v15 = vld [vmem:[%s10149_s1 + $0x238] sm:$0xff]  }
  0xe0   : > { %2112 = vmatprep.mubr.bf16.mxu0 %v7889_v60  ;;  %7035 = vmatpush3.bf16.msra.mxu0 %v7265_v62 }
  0xe1   : > { %2266 = vmatmul.mubr.bf16.gmra.mrb[68].mxu1 %v7788_v50  ;;  %7036 = vmatprep.subr.bf16.mxu0 %v7266_v52  ;;  %v7269_v50 = vld [vmem:[%s10149_s1 + $0x230] sm:$0xff]  }
  0xe2   : > { %2273 = vmatprep.mubr.bf16.mxu1 %v7937_v34 }
  0xe4   : > { %7037 = vmatpush3.bf16.msra.mxu0 %v7266_v52 }
  0xe5   : > { %7038 = vmatprep.subr.bf16.mxu0 %v7267_v23 }
  0xe7   : > { %2113 = vmatmul.mubr.bf16.gmra.mrb[72].mxu0 %v7878_v48  ;;  %v10296_v48 = vld [vmem:[#allocation29_spill] sm:$0xff] }
  0xe8   : > { %2120 = vmatprep.mubr.bf16.mxu0 %v7983_v9  ;;  %7039 = vmatpush3.bf16.msra.mxu0 %v7267_v23 }
  0xe9   : > { %2274 = vmatmul.mubr.bf16.gmra.mrb[72].mxu1 %v7848_v26  ;;  %7040 = vmatprep.subr.bf16.mxu0 %v7268_v37  ;;  %v10295_v26 = vld [vmem:[#allocation24_spill] sm:$0xff] }
  0xea   : > { %2281 = vmatprep.mubr.bf16.mxu1 %v7977_v7 }
  0xec   : > { %7041 = vmatpush3.bf16.msra.mxu0 %v7268_v37  ;;  %v8570_v37 = vld [vmem:[%s7671_s25 + $0xcc] sm:$0xf] }
  0xed   : > { %7042 = vmatprep.subr.bf16.mxu0 %v7269_v50 }
  0xef   : > { %2121 = vmatmul.mubr.bf16.gmra.mrb[76].mxu0 %v7937_v34  ;;  %v10297_v34 = vld [vmem:[#allocation21_spill] sm:$0xff] }
  0xf0   : > { %2128 = vmatprep.mubr.bf16.mxu0 %v8028_v42  ;;  %7043 = vmatpush3.bf16.msra.mxu0 %v7269_v50  ;;  %v8573_v50 = vld [vmem:[%s7671_s25 + $0xd0] sm:$0xf] }
  0xf1   : > { %2282 = vmatmul.mubr.bf16.gmra.mrb[76].mxu1 %v7912_v13  ;;  %7044 = vmatprep.subr.bf16.mxu0 %v7270_v15  ;;  %v10299_v13 = vld [vmem:[#allocation33_spill] sm:$0xff] }
  0xf2   : > { %2289 = vmatprep.mubr.bf16.mxu1 %v8037_v4 }
  0xf4   : > { %7045 = vmatpush3.bf16.msra.mxu0 %v7270_v15 }
  0xf7   : > { %2129 = vmatmul.mubr.bf16.gmra.mrb[80].mxu0 %v7977_v7  ;;  %v10301_v7 = vld [vmem:[#allocation34_spill] sm:$0xff] }
  0xf8   : > { %2136 = vmatprep.mubr.bf16.mxu0 %v8089_v14 }
  0xf9   : > { %2290 = vmatmul.mubr.bf16.gmra.mrb[80].mxu1 %v7990_v18  ;;  %v10302_v18 = vld [vmem:[#allocation38_spill] sm:$0xff] }
  0xfa   : > { %2297 = vmatprep.mubr.bf16.mxu1 %v10295_v26 }
  0xff   : > { %2137 = vmatmul.mubr.bf16.gmra.mrb[84].mxu0 %v8037_v4  ;;  %v10304_v4 = vld [vmem:[#allocation39_spill] sm:$0xff] }
 0x100   : > { %2144 = vmatprep.mubr.bf16.mxu0 %v10296_v48 }
 0x101   : > { %2298 = vmatmul.mubr.bf16.gmra.mrb[84].mxu1 %v10297_v34 }
 0x102   : > { %2305 = vmatprep.mubr.bf16.mxu1 %v10298_v46 }
 0x107   : > { %2145 = vmatmul.mubr.bf16.gmra.mrb[88].mxu0 %v10295_v26  ;;  %v860_v26 = vor.u32 %v859_v16, %v8448_v55 }
 0x108   : > { %2152 = vmatprep.mubr.bf16.mxu0 %v10299_v13 }
 0x109   : > { %2306 = vmatmul.mubr.bf16.gmra.mrb[88].mxu1 %v10300_v35 }
 0x10a   : > { %2313 = vmatprep.mubr.bf16.mxu1 %v10301_v7 }
 0x10f   : > { %2153 = vmatmul.mubr.bf16.gmra.mrb[92].mxu0 %v10298_v46 }
 0x110   : > { %2160 = vmatprep.mubr.bf16.mxu0 %v10302_v18 }
 0x111   : > { %2314 = vmatmul.mubr.bf16.gmra.mrb[92].mxu1 %v10303_v12  ;;  %v913_v12 = vshll.u32 %v8570_v37, 16 }
 0x112   : > { %2321 = vmatprep.mubr.bf16.mxu1 %v10304_v4 }
 0x117   : > { %2161 = vmatmul.mubr.bf16.gmra.mrb[96].mxu0 %v10301_v7  ;;  %v910_v7 = vshrl.u32 %v8570_v37, 16 }
 0x118   : > { %2168 = vmatprep.mubr.bf16.mxu0 %v10305_v27 }
 0x119   : > { %2322 = vmatmul.mubr.bf16.gmra.mrb[96].mxu1 %v10306_v8  ;;  %v923_v8 = vshrl.u32 %v8573_v50, 16  ;;  %v912_v16 = vrot.slane %v910_v7, 4 }
 0x11a   : > { %2329 = vmatprep.mubr.bf16.mxu1 %v10307_v30 }
 0x11f   : > { %2169 = vmatmul.mubr.bf16.gmra.mrb[100].mxu0 %v10304_v4  ;;  %v919_v4 = vshll.u32 %v8573_v50, 16 }
 0x120   : > { %2176 = vmatprep.mubr.bf16.mxu0 %v8356_v6 }
 0x121   : > { %2330 = vmatmul.mubr.bf16.gmra.mrb[100].mxu1 %v8253_v43 }
 0x122   : > { %2337 = vmatprep.mubr.bf16.mxu1 %v8353_v49 }
 0x127   : > { %2177 = vmatmul.mubr.bf16.gmra.mrb[104].mxu0 %v10307_v30 }
 0x128   : > { %2184 = vmatprep.mubr.bf16.mxu0 %v8392_v47 }
 0x129   : > { %2338 = vmatmul.mubr.bf16.gmra.mrb[104].mxu1 %v8318_v57 }
 0x12a   : > { %v6102_v56 = vpop.f32.mrb[0].mxu0  ;;  %2345 = vmatprep.mubr.bf16.mxu1 %v8390_v2 }
 0x12b   : > { %v6103_v51 = vpop.f32.mrb[1].mxu0 }
 0x12c   : > { %v6104_v43 = vadd.f32 %v6103_v51, %v6102_v56  ;;  %v6105_v31 = vpop.f32.mrb[2].mxu0  ;;  %v6214_v25 = vpop.f32.mrb[0].mxu1  ;;  %v861_v51 = vrot.slane %v860_v26, 4 }
 0x12d   : > { %v6106_v39 = vpop.f32.mrb[3].mxu0  ;;  %v6215_v22 = vpop.f32.mrb[1].mxu1 }
 0x12e   : > { %v1777_v59 = vadd.f32 %v6104_v43, %v8563_v53  ;;  %v6107_v57 = vadd.f32 %v6106_v39, %v6105_v31  ;;  %v6216_v11 = vadd.f32 %v6215_v22, %v6214_v25  ;;  %v6217_v38 = vpop.f32.mrb[2].mxu1 }
 0x12f   : > { %v6218_v62 = vpop.f32.mrb[3].mxu1  ;;  %2185 = vmatmul.mubr.bf16.gmra.mrb[108].mxu0 %v8353_v49  ;;  %v863_v49 = vshll.u32 %v8471_v61, 16 }
 0x130   : > { %v1780_v52 = vadd.f32 %v6107_v57, %v8563_v53  ;;  %v6219_v23 = vadd.f32 %v6218_v62, %v6217_v38  ;;  %2192 = vmatprep.mubr.bf16.mxu0 %v8424_v29  ;;  %v8575_v15 = vadd.f32 %v6216_v11, %v1777_v59  ;;  %v915_v59 = vrot.slane %v913_v12, 5 }
 0x131   : > { %2346 = vmatmul.mubr.bf16.gmra.mrb[108].mxu1 %v8360_v5  ;;  %v865_v39 = vrot.slane %v863_v49, 5  ;;  %v921_v57 = vrot.slane %v919_v4, 5  ;;  %v925_v11 = vrot.slane %v923_v8, 4 }
 0x132   : > { %v6108_v34 = vpop.f32.mrb[4].mxu0  ;;  %2353 = vmatprep.mubr.bf16.mxu1 %v8419_v3  ;;  %v8581_v46 = vadd.f32 %v6219_v23, %v1780_v52  ;;  %v8592_v52 = vld [vmem:[%s7671_s25 + $0xd4] sm:$0x1] }
 0x133   : > { %v6109_v35 = vpop.f32.mrb[5].mxu0  ;;  %v8602_v49 = vsel %vm7702_vm4, %v861_v51, %v865_v39  ;;  %v926_v7 = vor.u32 %v925_v11, %v921_v57  ;;  %v929_v12 = vshll.u32 %v8592_v52, 16 }
 0x134   : > { %v6110_v30 = vadd.f32 %v6109_v35, %v6108_v34  ;;  %v6111_v5 = vpop.f32.mrb[6].mxu0  ;;  %v6220_v1 = vpop.f32.mrb[4].mxu1  ;;  %10308 = vst [vmem:[#allocation24_spill] sm:$0xff] %v8602_v49  ;;  %v916_v35 = vor.u32 %v915_v59, %v912_v16 }
 0x135   : > { %v6112_v55 = vpop.f32.mrb[7].mxu0  ;;  %v6221_v56 = vpop.f32.mrb[5].mxu1  ;;  %v931_v39 = vrot.slane %v929_v12, 5 }
 0x136   : > { %v1785_v61 = vadd.f32 %v6110_v30, %v8563_v53  ;;  %v6113_v43 = vadd.f32 %v6112_v55, %v6111_v5  ;;  %v6222_v31 = vadd.f32 %v6221_v56, %v6220_v1  ;;  %v6223_v25 = vpop.f32.mrb[6].mxu1  ;;  %v917_v51 = vrot.slane %v916_v35, 4 }
 0x137   : > { %v6224_v22 = vpop.f32.mrb[7].mxu1  ;;  %2193 = vmatmul.mubr.bf16.gmra.mrb[112].mxu0 %v8390_v2 }
 0x138   : > { %v1788_v38 = vadd.f32 %v6113_v43, %v8563_v53  ;;  %v6225_v62 = vadd.f32 %v6224_v22, %v6223_v25  ;;  %2200 = vmatprep.mubr.bf16.mxu0 %v8454_v45  ;;  %v8594_v23 = vadd.f32 %v6222_v31, %v1785_v61  ;;  %v5793_v43 = vcombine.low %v8460_v40, %v8602_v49  ;;  %v7297_v49 = vld [vmem:[#allocation3 + $0x38] sm:$0xff]  }
 0x139   : > { %2354 = vmatmul.mubr.bf16.gmra.mrb[112].mxu1 %v8396_v24  ;;  %v927_v25 = vrot.slane %v926_v7, 4  ;;  %v2663_v40 = vld [vmem:[#allocation2 + $0x50] sm:$0x1] }
 0x13a   : > { %v6114_v26 = vpop.f32.mrb[8].mxu0  ;;  %2361 = vmatprep.mubr.bf16.mxu1 %v8452_v44  ;;  %v8598_v34 = vadd.f32 %v6225_v62, %v1788_v38 }
 0x13b   : > { %v6115_v2 = vpop.f32.mrb[9].mxu0 }
 0x13c   : > { %v6116_v4 = vadd.f32 %v6115_v2, %v6114_v26  ;;  %v6117_v8 = vpop.f32.mrb[10].mxu0  ;;  %v6226_v30 = vpop.f32.mrb[8].mxu1  ;;  %v932_v26 = vsel %vm7702_vm4, %v927_v25, %v931_v39 }
 0x13d   : > { %v6118_v5 = vpop.f32.mrb[11].mxu0  ;;  %v6227_v1 = vpop.f32.mrb[9].mxu1 }
 0x13e   : > { %v1793_v24 = vadd.f32 %v6116_v4, %v8563_v53  ;;  %v6119_v55 = vadd.f32 %v6118_v5, %v6117_v8  ;;  %v6228_v56 = vadd.f32 %v6227_v1, %v6226_v30  ;;  %v6229_v61 = vpop.f32.mrb[10].mxu1 }
 0x13f   : > { %v6230_v31 = vpop.f32.mrb[11].mxu1  ;;  %2201 = vmatmul.mubr.bf16.gmra.mrb[116].mxu0 %v8419_v3  ;;  %v922_v3 = vsel %vm7702_vm4, %v917_v51, %v921_v57 }
 0x140   : > { %v1796_v22 = vadd.f32 %v6119_v55, %v8563_v53  ;;  %v6231_v16 = vadd.f32 %v6230_v31, %v6229_v61  ;;  %2208 = vmatprep.mubr.bf16.mxu0 %v8487_v10  ;;  %v8611_v59 = vadd.f32 %v6228_v56, %v1793_v24  ;;  %v5796_v1 = vcombine.low %v922_v3, %v932_v26  ;;  %v7272_v61 = vld [vmem:[#allocation3 + $0x40] sm:$0xff]  }
 0x141   : > { %2362 = vmatmul.mubr.bf16.gmra.mrb[116].mxu1 %v8428_v0  ;;  %v7273_v31 = vld [vmem:[#allocation3] sm:$0xff]   ;;  %6558 = vmatprep.subr.bf16.mxu1 %v7272_v61  ;;  %v5795_v3 = vcombine.low %v8570_v37, %v8573_v50 }
 0x142   : > { %v6120_v11 = vpop.f32.mrb[12].mxu0  ;;  %2369 = vmatprep.mubr.bf16.mxu1 %v5793_v43  ;;  %v8614_v38 = vadd.f32 %v6231_v16, %v1796_v22  ;;  %6559 = vmatpush3.bf16.msra.mxu1 %v7273_v31 }
 0x143   : > { %v6121_v62 = vpop.f32.mrb[13].mxu0 }
 0x144   : > { %v6122_v2 = vadd.f32 %v6121_v62, %v6120_v11  ;;  %v6123_v35 = vpop.f32.mrb[14].mxu0  ;;  %v6232_v7 = vpop.f32.mrb[12].mxu1 }
 0x145   : > { %v6124_v12 = vpop.f32.mrb[15].mxu0  ;;  %v6233_v4 = vpop.f32.mrb[13].mxu1 }
 0x146   : > { %v1801_v8 = vadd.f32 %v6122_v2, %v8563_v53  ;;  %v6125_v30 = vadd.f32 %v6124_v12, %v6123_v35  ;;  %v6234_v0 = vadd.f32 %v6233_v4, %v6232_v7  ;;  %v6235_v5 = vpop.f32.mrb[14].mxu1 }
 0x147   : > { %v6236_v24 = vpop.f32.mrb[15].mxu1  ;;  %2209 = vmatmul.mubr.bf16.gmra.mrb[120].mxu0 %v8452_v44 }
 0x148   : > { %v1804_v55 = vadd.f32 %v6125_v30, %v8563_v53  ;;  %v6237_v57 = vadd.f32 %v6236_v24, %v6235_v5  ;;  %2216 = vmatprep.mubr.bf16.mxu0 %v8485_v33  ;;  %v8624_v56 = vadd.f32 %v6234_v0, %v1801_v8 }
 0x149   : > { %2370 = vmatmul.mubr.bf16.gmra.mrb[120].mxu1 %v8464_v58 }
 0x14a   : > { %v6126_v51 = vpop.f32.mrb[16].mxu0  ;;  %2377 = vmatprep.mubr.bf16.mxu1 %v5796_v1  ;;  %v8627_v25 = vadd.f32 %v6237_v57, %v1804_v55 }
 0x14b   : > { %v6127_v39 = vpop.f32.mrb[17].mxu0 }
 0x14c   : > { %v6128_v22 = vadd.f32 %v6127_v39, %v6126_v51  ;;  %v6129_v44 = vpop.f32.mrb[18].mxu0  ;;  %v6238_v16 = vpop.f32.mrb[16].mxu1 }
 0x14d   : > { %v6130_v11 = vpop.f32.mrb[19].mxu0  ;;  %v6239_v62 = vpop.f32.mrb[17].mxu1 }
 0x14e   : > { %v1809_v26 = vadd.f32 %v6128_v22, %v8563_v53  ;;  %v6131_v2 = vadd.f32 %v6130_v11, %v6129_v44  ;;  %v6240_v35 = vadd.f32 %v6239_v62, %v6238_v16  ;;  %v6241_v58 = vpop.f32.mrb[18].mxu1  ;;  %v7274_v11 = vld [vmem:[#allocation3 + $0x48] sm:$0xff]  }
 0x14f   : > { %v6242_v7 = vpop.f32.mrb[19].mxu1  ;;  %2217 = vmatmul.mubr.bf16.gmra.mrb[124].mxu0 %v5793_v43  ;;  %v7275_v62 = vld [vmem:[#allocation3 + $0x8] sm:$0xff]   ;;  %6560 = vmatprep.subr.bf16.mxu1 %v7274_v11 }
 0x150   : > { %v1812_v12 = vadd.f32 %v6131_v2, %v8563_v53  ;;  %v6243_v4 = vadd.f32 %v6242_v7, %v6241_v58  ;;  %7046 = vmatprep.mubr.bf16.mxu0 %v7836_v19  ;;  %v8634_v8 = vadd.f32 %v6240_v35, %v1809_v26  ;;  %6561 = vmatpush3.bf16.msra.mxu1 %v7275_v62 }
 0x151   : > { %2378 = vmatmul.mubr.bf16.gmra.mrb[124].mxu1 %v5795_v3 }
 0x152   : > { %v6132_v30 = vpop.f32.mrb[20].mxu0  ;;  %v8636_v0 = vadd.f32 %v6243_v4, %v1812_v12 }
 0x153   : > { %v6133_v5 = vpop.f32.mrb[21].mxu0 }
 0x154   : > { %v6134_v1 = vadd.f32 %v6133_v5, %v6132_v30  ;;  %v6135_v24 = vpop.f32.mrb[22].mxu0  ;;  %v6244_v55 = vpop.f32.mrb[20].mxu1 }
 0x155   : > { %v6136_v57 = vpop.f32.mrb[23].mxu0  ;;  %v6245_v61 = vpop.f32.mrb[21].mxu1 }
 0x156   : > { %v1817_v31 = vadd.f32 %v6134_v1, %v8563_v53  ;;  %v6137_v43 = vadd.f32 %v6136_v57, %v6135_v24  ;;  %v6246_v51 = vadd.f32 %v6245_v61, %v6244_v55  ;;  %v6247_v39 = vpop.f32.mrb[22].mxu1 }
 0x157   : > { %v6248_v22 = vpop.f32.mrb[23].mxu1  ;;  %7047 = vmatmul.mubr.bf16.vlgmr.msra.gmra.mrb[128].mxu0 %v7889_v60 }
 0x158   : > { %v1820_v19 = vadd.f32 %v6137_v43, %v8563_v53  ;;  %v6249_v44 = vadd.f32 %v6248_v22, %v6247_v39  ;;  %7050 = vmatprep.mubr.bf16.mxu0 %v7983_v9  ;;  %v8642_v16 = vadd.f32 %v6246_v51, %v1817_v31 }
 0x15a   : > { %v6138_v3 = vpop.f32.mrb[24].mxu0  ;;  %v8644_v26 = vadd.f32 %v6249_v44, %v1820_v19 }
 0x15b   : > { %v6139_v2 = vpop.f32.mrb[25].mxu0 }
 0x15c   : > { %v6140_v35 = vadd.f32 %v6139_v2, %v6138_v3  ;;  %v6141_v58 = vpop.f32.mrb[26].mxu0  ;;  %v6250_v7 = vpop.f32.mrb[24].mxu1 }
 0x15d   : > { %v6142_v12 = vpop.f32.mrb[27].mxu0  ;;  %v6251_v60 = vpop.f32.mrb[25].mxu1 }
 0x15e   : > { %v1825_v4 = vadd.f32 %v6140_v35, %v8563_v53  ;;  %v6143_v30 = vadd.f32 %v6142_v12, %v6141_v58  ;;  %v6252_v5 = vadd.f32 %v6251_v60, %v6250_v7  ;;  %v6253_v9 = vpop.f32.mrb[26].mxu1  ;;  %v7276_v7 = vld [vmem:[#allocation3 + $0x50] sm:$0xff]  }
 0x15f   : > { %v6254_v1 = vpop.f32.mrb[27].mxu1  ;;  %7051 = vmatmul.mubr.bf16.gmra.mrb[132].mxu0 %v8028_v42  ;;  %v7277_v12 = vld [vmem:[#allocation3 + $0x10] sm:$0xff]   ;;  %6562 = vmatprep.subr.bf16.mxu1 %v7276_v7 }
 0x160   : > { %v1828_v24 = vadd.f32 %v6143_v30, %v8563_v53  ;;  %v6255_v55 = vadd.f32 %v6254_v1, %v6253_v9  ;;  %7054 = vmatprep.mubr.bf16.mxu0 %v8089_v14  ;;  %v8650_v57 = vadd.f32 %v6252_v5, %v1825_v4  ;;  %6563 = vmatpush3.bf16.msra.mxu1 %v7277_v12 }
 0x162   : > { %v6144_v61 = vpop.f32.mrb[28].mxu0  ;;  %v8652_v31 = vadd.f32 %v6255_v55, %v1828_v24 }
 0x163   : > { %v6145_v43 = vpop.f32.mrb[29].mxu0 }
 0x164   : > { %v6146_v51 = vadd.f32 %v6145_v43, %v6144_v61  ;;  %v6147_v39 = vpop.f32.mrb[30].mxu0  ;;  %v6256_v22 = vpop.f32.mrb[28].mxu1 }
 0x165   : > { %v6148_v19 = vpop.f32.mrb[31].mxu0  ;;  %v6257_v44 = vpop.f32.mrb[29].mxu1 }
 0x166   : > { %v1833_v11 = vadd.f32 %v6146_v51, %v8563_v53  ;;  %v6149_v62 = vadd.f32 %v6148_v19, %v6147_v39  ;;  %v6258_v42 = vadd.f32 %v6257_v44, %v6256_v22  ;;  %v6259_v3 = vpop.f32.mrb[30].mxu1 }
 0x167   : > { %v6260_v2 = vpop.f32.mrb[31].mxu1  ;;  %7055 = vmatmul.mubr.bf16.gmra.mrb[136].mxu0 %v10296_v48 }
 0x168   : > { %v1836_v14 = vadd.f32 %v6149_v62, %v8563_v53  ;;  %v6261_v35 = vadd.f32 %v6260_v2, %v6259_v3  ;;  %7058 = vmatprep.mubr.bf16.mxu0 %v10299_v13  ;;  %v8658_v58 = vadd.f32 %v6258_v42, %v1833_v11 }
 0x16a   : > { %v6150_v60 = vpop.f32.mrb[32].mxu0  ;;  %v8660_v4 = vadd.f32 %v6261_v35, %v1836_v14 }
 0x16b   : > { %v6151_v30 = vpop.f32.mrb[33].mxu0 }
 0x16c   : > { %v6152_v5 = vadd.f32 %v6151_v30, %v6150_v60  ;;  %v6153_v9 = vpop.f32.mrb[34].mxu0  ;;  %v6262_v1 = vpop.f32.mrb[32].mxu1 }
 0x16d   : > { %v6154_v24 = vpop.f32.mrb[35].mxu0  ;;  %v6263_v48 = vpop.f32.mrb[33].mxu1 }
 0x16e   : > { %v1841_v55 = vadd.f32 %v6152_v5, %v8563_v53  ;;  %v6155_v61 = vadd.f32 %v6154_v24, %v6153_v9  ;;  %v6264_v43 = vadd.f32 %v6263_v48, %v6262_v1  ;;  %v6265_v13 = vpop.f32.mrb[34].mxu1  ;;  %v7278_v1 = vld [vmem:[#allocation3 + $0x58] sm:$0xff]  }
 0x16f   : > { %v6266_v51 = vpop.f32.mrb[35].mxu1  ;;  %7059 = vmatmul.mubr.bf16.gmra.mrb[140].mxu0 %v10302_v18  ;;  %v7279_v24 = vld [vmem:[#allocation3 + $0x18] sm:$0xff]   ;;  %6564 = vmatprep.subr.bf16.mxu1 %v7278_v1 }
 0x170   : > { %v1844_v39 = vadd.f32 %v6155_v61, %v8563_v53  ;;  %v8665_v22 = vadd.f32 %v6264_v43, %v1841_v55  ;;  %v6267_v19 = vadd.f32 %v6266_v51, %v6265_v13  ;;  %7062 = vmatprep.mubr.bf16.mxu0 %v10305_v27  ;;  %6565 = vmatpush3.bf16.msra.mxu1 %v7279_v24 }
 0x172   : > { %v8668_v44 = vadd.f32 %v6267_v19, %v1844_v39  ;;  %v6156_v11 = vpop.f32.mrb[36].mxu0 }
 0x173   : > { %v6157_v62 = vpop.f32.mrb[37].mxu0 }
 0x174   : > { %v6158_v42 = vadd.f32 %v6157_v62, %v6156_v11  ;;  %v6159_v3 = vpop.f32.mrb[38].mxu0  ;;  %v6268_v2 = vpop.f32.mrb[36].mxu1 }
 0x175   : > { %v6160_v14 = vpop.f32.mrb[39].mxu0  ;;  %v6269_v35 = vpop.f32.mrb[37].mxu1 }
 0x176   : > { %v1849_v7 = vadd.f32 %v6158_v42, %v8563_v53  ;;  %v6161_v12 = vadd.f32 %v6160_v14, %v6159_v3  ;;  %v6270_v18 = vadd.f32 %v6269_v35, %v6268_v2  ;;  %v6271_v60 = vpop.f32.mrb[38].mxu1  ;;  %v938_v35 = vrot.slane %v8573_v50, 5 }
 0x177   : > { %v6272_v30 = vpop.f32.mrb[39].mxu1  ;;  %7063 = vmatmul.mubr.bf16.gmra.mrb[144].mxu0 %v8356_v6 }
 0x178   : > { %v1852_v5 = vadd.f32 %v6161_v12, %v8563_v53  ;;  %v8673_v27 = vadd.f32 %v6270_v18, %v1849_v7  ;;  %v6273_v9 = vadd.f32 %v6272_v30, %v6271_v60  ;;  %7066 = vmatprep.mubr.bf16.mxu0 %v8392_v47  ;;  %v5743_v60 = vrot.slane %v8570_v37, 9 }
 0x179   : > { %v940_v1 = vrot.slane %v938_v35, 4 }
 0x17a   : > { %v8676_v48 = vadd.f32 %v6273_v9, %v1852_v5  ;;  %v6162_v55 = vpop.f32.mrb[40].mxu0 }
 0x17b   : > { %v6163_v61 = vpop.f32.mrb[41].mxu0 }
 0x17c   : > { %v6164_v43 = vadd.f32 %v6163_v61, %v6162_v55  ;;  %v6165_v13 = vpop.f32.mrb[42].mxu0  ;;  %v6274_v51 = vpop.f32.mrb[40].mxu1 }
 0x17d   : > { %v6166_v39 = vpop.f32.mrb[43].mxu0  ;;  %v6275_v6 = vpop.f32.mrb[41].mxu1 }
 0x17e   : > { %v1857_v19 = vadd.f32 %v6164_v43, %v8563_v53  ;;  %v6167_v11 = vadd.f32 %v6166_v39, %v6165_v13  ;;  %v6276_v62 = vadd.f32 %v6275_v6, %v6274_v51  ;;  %v6277_v42 = vpop.f32.mrb[42].mxu1  ;;  %v939_v51 = vsel %vm7711_vm5, %v5743_v60, %v938_v35 }
 0x17f   : > { %v6278_v3 = vpop.f32.mrb[43].mxu1  ;;  %7067 = vmatmul.mubr.bf16.gmra.mrb[148].mxu0 %v8424_v29  ;;  %v941_v29 = vrot.slane %v8592_v52, 5 }
 0x180   : > { %v1860_v47 = vadd.f32 %v6167_v11, %v8563_v53  ;;  %v8681_v2 = vadd.f32 %v6276_v62, %v1857_v19  ;;  %v6279_v14 = vadd.f32 %v6278_v3, %v6277_v42  ;;  %7070 = vmatprep.mubr.bf16.mxu0 %v8454_v45  ;;  %v7280_v19 = vld [vmem:[#allocation3 + $0x60] sm:$0xff]  }
 0x181   : > { %v942_v52 = vsel %vm7711_vm5, %v940_v1, %v941_v29  ;;  %v7281_v11 = vld [vmem:[#allocation3 + $0x20] sm:$0xff]   ;;  %6566 = vmatprep.subr.bf16.mxu1 %v7280_v19 }
 0x182   : > { %v8685_v7 = vadd.f32 %v6279_v14, %v1860_v47  ;;  %v6168_v12 = vpop.f32.mrb[44].mxu0  ;;  %v5797_v3 = vcombine.low %v939_v51, %v942_v52  ;;  %6567 = vmatpush3.bf16.msra.mxu1 %v7281_v11 }
 0x183   : > { %v6169_v18 = vpop.f32.mrb[45].mxu0 }
 0x184   : > { %v6170_v30 = vadd.f32 %v6169_v18, %v6168_v12  ;;  %v6171_v5 = vpop.f32.mrb[46].mxu0  ;;  %v6280_v9 = vpop.f32.mrb[44].mxu1 }
 0x185   : > { %v6172_v24 = vpop.f32.mrb[47].mxu0  ;;  %v6281_v55 = vpop.f32.mrb[45].mxu1 }
 0x186   : > { %v1865_v61 = vadd.f32 %v6170_v30, %v8563_v53  ;;  %v6173_v43 = vadd.f32 %v6172_v24, %v6171_v5  ;;  %v6282_v45 = vadd.f32 %v6281_v55, %v6280_v9  ;;  %v6283_v13 = vpop.f32.mrb[46].mxu1 }
 0x187   : > { %v6284_v50 = vpop.f32.mrb[47].mxu1  ;;  %7071 = vmatmul.mubr.bf16.gmra.mrb[152].mxu0 %v8487_v10 }
 0x188   : > { %v1868_v37 = vadd.f32 %v6173_v43, %v8563_v53  ;;  %v8694_v39 = vadd.f32 %v6282_v45, %v1865_v61  ;;  %v6285_v6 = vadd.f32 %v6284_v50, %v6283_v13  ;;  %7074 = vmatprep.mubr.bf16.mxu0 %v8485_v33 }
 0x18a   : > { %v8699_v62 = vadd.f32 %v6285_v6, %v1868_v37  ;;  %v6174_v42 = vpop.f32.mrb[48].mxu0 }
 0x18b   : > { %v6175_v10 = vpop.f32.mrb[49].mxu0 }
 0x18c   : > { %v6176_v47 = vadd.f32 %v6175_v10, %v6174_v42  ;;  %v6177_v14 = vpop.f32.mrb[50].mxu0  ;;  %v6286_v35 = vpop.f32.mrb[48].mxu1 }
 0x18d   : > { %v6178_v12 = vpop.f32.mrb[51].mxu0  ;;  %v6287_v18 = vpop.f32.mrb[49].mxu1 }
 0x18e   : > { %v1873_v60 = vadd.f32 %v6176_v47, %v8563_v53  ;;  %v6179_v33 = vadd.f32 %v6178_v12, %v6177_v14  ;;  %v6288_v30 = vadd.f32 %v6287_v18, %v6286_v35  ;;  %v6289_v5 = vpop.f32.mrb[50].mxu1  ;;  %v7282_v14 = vld [vmem:[#allocation3 + $0x68] sm:$0xff]  }
 0x18f   : > { %v6290_v9 = vpop.f32.mrb[51].mxu1  ;;  %7075 = vmatmul.mubr.bf16.gmra.mrb[156].mxu0 %v5797_v3  ;;  %v7283_v35 = vld [vmem:[#allocation3 + $0x28] sm:$0xff]   ;;  %6568 = vmatprep.subr.bf16.mxu1 %v7282_v14 }
 0x190   : > { %v1876_v1 = vadd.f32 %v6179_v33, %v8563_v53  ;;  %v8703_v29 = vadd.f32 %v6288_v30, %v1873_v60  ;;  %v6291_v24 = vadd.f32 %v6290_v9, %v6289_v5  ;;  %6569 = vmatpush3.bf16.msra.mxu1 %v7283_v35 }
 0x192   : > { %v8705_v55 = vadd.f32 %v6291_v24, %v1876_v1  ;;  %v6180_v61 = vpop.f32.mrb[52].mxu0 }
 0x193   : > { %v6181_v43 = vpop.f32.mrb[53].mxu0 }
 0x194   : > { %v6182_v45 = vadd.f32 %v6181_v43, %v6180_v61  ;;  %v6183_v13 = vpop.f32.mrb[54].mxu0  ;;  %v6292_v50 = vpop.f32.mrb[52].mxu1 }
 0x195   : > { %v6184_v51 = vpop.f32.mrb[55].mxu0  ;;  %v6293_v37 = vpop.f32.mrb[53].mxu1 }
 0x196   : > { %v1881_v6 = vadd.f32 %v6182_v45, %v8563_v53  ;;  %v6185_v52 = vadd.f32 %v6184_v51, %v6183_v13  ;;  %v6294_v19 = vadd.f32 %v6293_v37, %v6292_v50  ;;  %v6295_v11 = vpop.f32.mrb[54].mxu1 }
 0x197   : > { %v6296_v42 = vpop.f32.mrb[55].mxu1 }
 0x198   : > { %v1884_v10 = vadd.f32 %v6185_v52, %v8563_v53  ;;  %v8709_v3 = vadd.f32 %v6294_v19, %v1881_v6  ;;  %v6297_v47 = vadd.f32 %v6296_v42, %v6295_v11 }
 0x19a   : > { %v8711_v12 = vadd.f32 %v6297_v47, %v1884_v10  ;;  %v6186_v18 = vpop.f32.mrb[56].mxu0  ;;  %v7284_v47 = vld [vmem:[#allocation3 + $0xc0] sm:$0xff]  }
 0x19b   : > { %v6187_v60 = vpop.f32.mrb[57].mxu0  ;;  %6670 = vmatprep.subr.bf16.mxu0 %v7284_v47 }
 0x19c   : > { %v6188_v33 = vadd.f32 %v6187_v60, %v6186_v18  ;;  %v6189_v30 = vpop.f32.mrb[58].mxu0  ;;  %v6298_v5 = vpop.f32.mrb[56].mxu1  ;;  %v7286_v18 = vld [vmem:[#allocation3 + $0x80] sm:$0xff]  }
 0x19d   : > { %v6190_v9 = vpop.f32.mrb[59].mxu0  ;;  %v6299_v1 = vpop.f32.mrb[57].mxu1  ;;  %6671 = vmatpush3.bf16.msra.mxu0 %v7286_v18  ;;  %v2595_v18 = vld [vmem:[#allocation2 + $0x18] sm:$0x1] }
 0x19e   : > { %v1889_v24 = vadd.f32 %v6188_v33, %v8563_v53  ;;  %v6191_v61 = vadd.f32 %v6190_v9, %v6189_v30  ;;  %v6300_v43 = vadd.f32 %v6299_v1, %v6298_v5  ;;  %v6301_v45 = vpop.f32.mrb[58].mxu1 }
 0x19f   : > { %v6302_v13 = vpop.f32.mrb[59].mxu1 }
 0x1a0   : > { %v1892_v50 = vadd.f32 %v6191_v61, %v8563_v53  ;;  %v8715_v51 = vadd.f32 %v6300_v43, %v1889_v24  ;;  %v6303_v37 = vadd.f32 %v6302_v13, %v6301_v45  ;;  %v7285_v43 = vld [vmem:[#allocation3 + $0x70] sm:$0xff]   ;;  %v7288_v13 = vld [vmem:[#allocation3 + $0xc8] sm:$0xff]  }
 0x1a1   : > { %v7287_v45 = vld [vmem:[#allocation3 + $0x30] sm:$0xff]   ;;  %6570 = vmatprep.subr.bf16.mxu1 %v7285_v43  ;;  %6672 = vmatprep.subr.bf16.mxu0 %v7288_v13 }
 0x1a2   : > { %v8717_v6 = vadd.f32 %v6303_v37, %v1892_v50  ;;  %v6192_v52 = vpop.f32.mrb[60].mxu0  ;;  %v7289_v50 = vld [vmem:[#allocation3 + $0x88] sm:$0xff]   ;;  %6571 = vmatpush3.bf16.msra.mxu1 %v7287_v45  ;;  %v7291_v43 = vld [vmem:[#allocation3 + $0x90] sm:$0xff]  }
 0x1a3   : > { %v6193_v19 = vpop.f32.mrb[61].mxu0  ;;  %6673 = vmatpush3.bf16.msra.mxu0 %v7289_v50 }
 0x1a4   : > { %v6194_v11 = vadd.f32 %v6193_v19, %v6192_v52  ;;  %v6195_v42 = vpop.f32.mrb[62].mxu0  ;;  %v6304_v10 = vpop.f32.mrb[60].mxu1 }
 0x1a5   : > { %v6196_v14 = vpop.f32.mrb[63].mxu0  ;;  %v6305_v35 = vpop.f32.mrb[61].mxu1 }
 0x1a6   : > { %v1897_v60 = vadd.f32 %v6194_v11, %v8563_v53  ;;  %v6197_v33 = vadd.f32 %v6196_v14, %v6195_v42  ;;  %v6306_v30 = vadd.f32 %v6305_v35, %v6304_v10  ;;  %v6307_v5 = vpop.f32.mrb[62].mxu1  ;;  %v7362_v35 = vld [vmem:[#allocation3 + $0x200] sm:$0xff]  }
 0x1a7   : > { %v6308_v9 = vpop.f32.mrb[63].mxu1 }
 0x1a8   : > { %v1900_v1 = vadd.f32 %v6197_v33, %v8563_v53  ;;  %v8721_v24 = vadd.f32 %v6306_v30, %v1897_v60  ;;  %v6309_v61 = vadd.f32 %v6308_v9, %v6307_v5  ;;  %v7290_v53 = vld [vmem:[#allocation3 + $0xd0] sm:$0xff]   ;;  %v2596_v9 = vsel %vm8726_vm8, 0, %v2595_v18 }
 0x1a9   : > { %6674 = vmatprep.subr.bf16.mxu0 %v7290_v53  ;;  %2597 = vst [vmem:[#allocation2 + $0x18] sm:$0x1] %v2596_v9  ;;  %v7462_v53 = vmov 0  }
 0x1aa   : > { %v8723_v37 = vadd.f32 %v6309_v61, %v1900_v1  ;;  %v6326_v52 = vpop.f32.mrb[64].mxu0  ;;  %v2592_v61 = vld [vmem:[#allocation2 + $0xc] sm:$0x1]  ;;  %6675 = vmatpush3.bf16.msra.mxu0 %v7291_v43  ;;  %2579 = vst [vmem:[#allocation2] sm:$0xf] %v7462_v53 }
 0x1ab   : > { %v6327_v19 = vpop.f32.mrb[65].mxu0  ;;  %v2593_v13 = vsel %vm8726_vm8, 0, %v2592_v61  ;;  %2580 = vst [vmem:[#allocation2 + $0x4] sm:$0xf] %v7462_v53  ;;  %2581 = vst [vmem:[#allocation2 + $0x8] sm:$0x1] %v7462_v53 }
 0x1ac   : > { %v6328_v11 = vadd.f32 %v6327_v19, %v6326_v52  ;;  %v6329_v42 = vpop.f32.mrb[66].mxu0  ;;  %v6438_v10 = vpop.f32.mrb[64].mxu1  ;;  %2594 = vst [vmem:[#allocation2 + $0xc] sm:$0x1] %v2593_v13  ;;  %2583 = vst [vmem:[#allocation2 + $0xcc] sm:$0xf] %v7462_v53 }
 0x1ad   : > { %v6330_v47 = vpop.f32.mrb[67].mxu0  ;;  %v6439_v14 = vpop.f32.mrb[65].mxu1  ;;  %2584 = vst [vmem:[#allocation2 + $0xd0] sm:$0xf] %v7462_v53  ;;  %2585 = vst [vmem:[#allocation2 + $0xd4] sm:$0x1] %v7462_v53 }
 0x1ae   : > { %v2099_v60 = vadd.f32 %v6328_v11, %v8575_v15  ;;  %v6331_v33 = vadd.f32 %v6330_v47, %v6329_v42  ;;  %v6440_v30 = vadd.f32 %v6439_v14, %v6438_v10  ;;  %v6441_v5 = vpop.f32.mrb[66].mxu1  ;;  %v2651_v15 = vld [vmem:[#allocation2 + $0x20] sm:$0x1]  ;;  %v2648_v42 = vld [vmem:[#allocation2 + $0x14] sm:$0x1] }
 0x1af   : > { %v6442_v45 = vpop.f32.mrb[67].mxu1  ;;  %v2652_v11 = vsel %vm8734_vm10, 0, %v2651_v15  ;;  %v7292_v10 = vld [vmem:[#allocation3 + $0xd8] sm:$0xff]  }
 0x1b0   : > { %v2102_v50 = vadd.f32 %v6331_v33, %v8581_v46  ;;  %v6443_v52 = vadd.f32 %v6442_v45, %v6441_v5  ;;  %v8741_v19 = vadd.f32 %v6440_v30, %v2099_v60  ;;  %2653 = vst [vmem:[#allocation2 + $0x20] sm:$0x1] %v2652_v11  ;;  %v2649_v46 = vsel %vm8734_vm10, 0, %v2648_v42  ;;  %v7293_v47 = vld [vmem:[#allocation3 + $0x98] sm:$0xff]   ;;  %6676 = vmatprep.subr.bf16.mxu0 %v7292_v10 }
 0x1b1   : > { %2650 = vst [vmem:[#allocation2 + $0x14] sm:$0x1] %v2649_v46  ;;  %6677 = vmatpush3.bf16.msra.mxu0 %v7293_v47  ;;  %v2601_v43 = vld [vmem:[#allocation2 + $0x30] sm:$0x1] }
 0x1b2   : > { %v6332_v14 = vpop.f32.mrb[68].mxu0  ;;  %v8747_v18 = vadd.f32 %v6443_v52, %v2102_v50  ;;  %v2602_v42 = vsel %vm8726_vm8, 0, %v2601_v43  ;;  %v2598_v50 = vld [vmem:[#allocation2 + $0x24] sm:$0x1]  ;;  %v7296_v43 = vld [vmem:[#allocation3 + $0xa0] sm:$0xff]  }
 0x1b3   : > { %v6333_v60 = vpop.f32.mrb[69].mxu0  ;;  %2603 = vst [vmem:[#allocation2 + $0x30] sm:$0x1] %v2602_v42  ;;  %v2599_v10 = vsel %vm8726_vm8, 0, %v2598_v50  ;;  %v2657_v42 = vld [vmem:[#allocation2 + $0x38] sm:$0x1] }
 0x1b4   : > { %v6334_v33 = vadd.f32 %v6333_v60, %v6332_v14  ;;  %v6335_v30 = vpop.f32.mrb[70].mxu0  ;;  %v6444_v5 = vpop.f32.mrb[68].mxu1  ;;  %2600 = vst [vmem:[#allocation2 + $0x24] sm:$0x1] %v2599_v10  ;;  %v2589_v14 = vld [vmem:[#allocation2] sm:$0x1] }
 0x1b5   : > { %v6336_v9 = vpop.f32.mrb[71].mxu0  ;;  %v6445_v61 = vpop.f32.mrb[69].mxu1  ;;  %v2645_v60 = vld [vmem:[#allocation2 + $0x8] sm:$0x1] }
 0x1b6   : > { %v2107_v45 = vadd.f32 %v6334_v33, %v8594_v23  ;;  %v6337_v13 = vadd.f32 %v6336_v9, %v6335_v30  ;;  %v6446_v15 = vadd.f32 %v6445_v61, %v6444_v5  ;;  %v6447_v11 = vpop.f32.mrb[70].mxu1  ;;  %v2590_v23 = vsel %vm8726_vm8, 0, %v2589_v14  ;;  %v7294_v5 = vld [vmem:[#allocation3 + $0xe0] sm:$0xff]   ;;  %v2654_v14 = vld [vmem:[#allocation2 + $0x2c] sm:$0x1] }
 0x1b7   : > { %v6448_v52 = vpop.f32.mrb[71].mxu1  ;;  %2591 = vst [vmem:[#allocation2] sm:$0x1] %v2590_v23  ;;  %v2646_v9 = vsel %vm8734_vm10, 0, %v2645_v60  ;;  %6678 = vmatprep.subr.bf16.mxu0 %v7294_v5  ;;  %v2655_v60 = vsel %vm8734_vm10, 0, %v2654_v14  ;;  %v7299_v5 = vld [vmem:[#allocation3 + $0xa8] sm:$0xff]  }
 0x1b8   : > { %v2110_v53 = vadd.f32 %v6337_v13, %v8598_v34  ;;  %v6449_v46 = vadd.f32 %v6448_v52, %v6447_v11  ;;  %v8755_v47 = vadd.f32 %v6446_v15, %v2107_v45  ;;  %2647 = vst [vmem:[#allocation2 + $0x8] sm:$0x1] %v2646_v9  ;;  %6679 = vmatpush3.bf16.msra.mxu0 %v7296_v43  ;;  %2656 = vst [vmem:[#allocation2 + $0x2c] sm:$0x1] %v2655_v60 }
 0x1ba   : > { %v6338_v33 = vpop.f32.mrb[72].mxu0  ;;  %v8759_v30 = vadd.f32 %v6449_v46, %v2110_v53  ;;  %v2658_v46 = vsel %vm8734_vm10, 0, %v2657_v42 }
 0x1bb   : > { %v6339_v61 = vpop.f32.mrb[73].mxu0  ;;  %2659 = vst [vmem:[#allocation2 + $0x38] sm:$0x1] %v2658_v46 }
 0x1bc   : > { %v6340_v34 = vadd.f32 %v6339_v61, %v6338_v33  ;;  %v6341_v45 = vpop.f32.mrb[74].mxu0  ;;  %v6450_v13 = vpop.f32.mrb[72].mxu1  ;;  %v7298_v33 = vld [vmem:[#allocation3 + $0xe8] sm:$0xff]  }
 0x1bd   : > { %v6342_v15 = vpop.f32.mrb[75].mxu0  ;;  %v6451_v11 = vpop.f32.mrb[73].mxu1  ;;  %6680 = vmatprep.subr.bf16.mxu0 %v7298_v33  ;;  %v7295_v33 = vld [vmem:[#allocation3 + $0x78] sm:$0xff]  }
 0x1be   : > { %v2115_v50 = vadd.f32 %v6340_v34, %v8611_v59  ;;  %v6343_v52 = vadd.f32 %v6342_v15, %v6341_v45  ;;  %v6452_v10 = vadd.f32 %v6451_v11, %v6450_v13  ;;  %v6453_v53 = vpop.f32.mrb[74].mxu1  ;;  %v8771_v59 = vld [vmem:[#allocation2 + $0x4] sm:$0xf]  ;;  %v8773_v34 = vld [vmem:[#allocation2] sm:$0xf]  ;;  %6681 = vmatpush3.bf16.msra.mxu0 %v7299_v5  ;;  %6572 = vmatprep.subr.bf16.mxu1 %v7295_v33 }
 0x1bf   : > { %v6454_v23 = vpop.f32.mrb[75].mxu1  ;;  %v3296_v45 = vshll.u32 %v8771_v59, 16  ;;  %v3300_v13 = vshrl.u32 %v8771_v59, 16  ;;  %v3287_v42 = vshrl.u32 %v8773_v34, 16  ;;  %v8791_v41 = vld [vmem:[#allocation2 + $0x8] sm:$0x1]  ;;  %6573 = vmatpush3.bf16.msra.mxu1 %v7297_v49 }
 0x1c0   : > { %v2118_v9 = vadd.f32 %v6343_v52, %v8614_v38  ;;  %v6455_v61 = vadd.f32 %v6454_v23, %v6453_v53  ;;  %v8769_v43 = vadd.f32 %v6452_v10, %v2115_v50  ;;  %v3290_v38 = vshll.u32 %v8773_v34, 16  ;;  %v2607_v52 = vld [vmem:[#allocation2 + $0x48] sm:$0x1] }
 0x1c1   : > { %v7300_v10 = vld [vmem:[#allocation3 + $0xf0] sm:$0xff]   ;;  %v8781_v53 = vrot.slane %v3296_v45, 5  ;;  %v3302_v46 = vrot.slane %v3300_v13, 4  ;;  %v2608_v17 = vsel %vm8726_vm8, 0, %v2607_v52  ;;  %v2664_v52 = vsel %vm8734_vm10, 0, %v2663_v40 }
 0x1c2   : > { %v6344_v15 = vpop.f32.mrb[76].mxu0  ;;  %v8777_v11 = vadd.f32 %v6455_v61, %v2118_v9  ;;  %v2604_v9 = vld [vmem:[#allocation2 + $0x3c] sm:$0x1]  ;;  %2609 = vst [vmem:[#allocation2 + $0x48] sm:$0x1] %v2608_v17  ;;  %6682 = vmatprep.subr.bf16.mxu0 %v7300_v10  ;;  %v7302_v10 = vld [vmem:[#allocation3 + $0xf8] sm:$0xff]  }
 0x1c3   : > { %v6345_v50 = vpop.f32.mrb[77].mxu0  ;;  %v2605_v32 = vsel %vm8726_vm8, 0, %v2604_v9  ;;  %v3303_v45 = vor.u32 %v3302_v46, %v8781_v53  ;;  %2665 = vst [vmem:[#allocation2 + $0x50] sm:$0x1] %v2664_v52  ;;  %v2660_v9 = vld [vmem:[#allocation2 + $0x44] sm:$0x1]  ;;  %6683 = vmatpush3.bf16.msra.mxu0 %v7301_v20 }
 0x1c4   : > { %v6346_v14 = vadd.f32 %v6345_v50, %v6344_v15  ;;  %v6347_v23 = vpop.f32.mrb[78].mxu0  ;;  %v6456_v60 = vpop.f32.mrb[76].mxu1  ;;  %2606 = vst [vmem:[#allocation2 + $0x3c] sm:$0x1] %v2605_v32  ;;  %v7303_v32 = vld [vmem:[#allocation3 + $0xb8] sm:$0xff]   ;;  %6684 = vmatprep.subr.bf16.mxu0 %v7302_v10  ;;  %v3289_v40 = vrot.slane %v3287_v42, 4 }
 0x1c5   : > { %v6348_v61 = vpop.f32.mrb[79].mxu0  ;;  %v6457_v5 = vpop.f32.mrb[77].mxu1  ;;  %v3306_v49 = vshll.u32 %v8791_v41, 16  ;;  %v2613_v52 = vld [vmem:[#allocation2 + $0x60] sm:$0x1] }
 0x1c6   : > { %v2123_v13 = vadd.f32 %v6346_v14, %v8624_v56  ;;  %v6349_v15 = vadd.f32 %v6348_v61, %v6347_v23  ;;  %v6458_v50 = vadd.f32 %v6457_v5, %v6456_v60  ;;  %v6459_v21 = vpop.f32.mrb[78].mxu1  ;;  %v2661_v14 = vsel %vm8734_vm10, 0, %v2660_v9 }
 0x1c7   : > { %v6460_v17 = vpop.f32.mrb[79].mxu1  ;;  %2662 = vst [vmem:[#allocation2 + $0x44] sm:$0x1] %v2661_v14  ;;  %v3292_v23 = vrot.slane %v3290_v38, 5  ;;  %v3304_v60 = vrot.slane %v3303_v45, 4  ;;  %6685 = vmatpush3.bf16.msra.mxu0 %v7303_v32  ;;  %v2614_v42 = vsel %vm8726_vm8, 0, %v2613_v52  ;;  %v5921_v32 = vcombine.low %v8773_v34, %v8771_v59 }
 0x1c8   : > { %v2126_v46 = vadd.f32 %v6349_v15, %v8627_v25  ;;  %v6461_v36 = vadd.f32 %v6460_v17, %v6459_v21  ;;  %v8794_v56 = vadd.f32 %v6458_v50, %v2123_v13  ;;  %v3308_v21 = vrot.slane %v3306_v49, 5  ;;  %2615 = vst [vmem:[#allocation2 + $0x60] sm:$0x1] %v2614_v42 }
 0x1c9   : > { %v3293_v25 = vor.u32 %v3292_v23, %v3289_v40  ;;  %v2610_v40 = vld [vmem:[#allocation2 + $0x54] sm:$0x1]  ;;  %v2669_v23 = vld [vmem:[#allocation2 + $0x68] sm:$0x1]  ;;  %v5903_v52 = vrot.slane %v8773_v34, 9 }
 0x1ca   : > { %v6350_v33 = vpop.f32.mrb[80].mxu0  ;;  %v8799_v61 = vadd.f32 %v6461_v36, %v2126_v46  ;;  %v3309_v45 = vsel %vm7702_vm4, %v3304_v60, %v3308_v21  ;;  %v3723_v36 = vrot.slane %v8791_v41, 5  ;;  %v2670_v60 = vsel %vm8734_vm10, 0, %v2669_v23 }
 0x1cb   : > { %v6351_v5 = vpop.f32.mrb[81].mxu0  ;;  %v3294_v38 = vrot.slane %v3293_v25, 4  ;;  %2671 = vst [vmem:[#allocation2 + $0x68] sm:$0x1] %v2670_v60 }
 0x1cc   : > { %v6352_v13 = vadd.f32 %v6351_v5, %v6350_v33  ;;  %v6353_v15 = vpop.f32.mrb[82].mxu0  ;;  %v6462_v50 = vpop.f32.mrb[80].mxu1  ;;  %v2611_v33 = vsel %vm8726_vm8, 0, %v2610_v40 }
 0x1cd   : > { %v6354_v20 = vpop.f32.mrb[83].mxu0  ;;  %v6463_v17 = vpop.f32.mrb[81].mxu1  ;;  %v3299_v41 = vsel %vm7702_vm4, %v3294_v38, %v8781_v53  ;;  %2612 = vst [vmem:[#allocation2 + $0x54] sm:$0x1] %v2611_v33 }
 0x1ce   : > { %v2131_v9 = vadd.f32 %v6352_v13, %v8634_v8  ;;  %v6355_v10 = vadd.f32 %v6354_v20, %v6353_v15  ;;  %v6464_v46 = vadd.f32 %v6463_v17, %v6462_v50  ;;  %v6465_v14 = vpop.f32.mrb[82].mxu1  ;;  %v3720_v8 = vrot.slane %v8771_v59, 5  ;;  %v2666_v15 = vld [vmem:[#allocation2 + $0x5c] sm:$0x1] }
 0x1cf   : > { %v6466_v49 = vpop.f32.mrb[83].mxu1  ;;  %v5937_v13 = vcombine.low %v3299_v41, %v3309_v45  ;;  %v2667_v50 = vsel %vm8734_vm10, 0, %v2666_v15 }
 0x1d0   : > { %v2134_v5 = vadd.f32 %v6355_v10, %v8636_v0  ;;  %v6467_v25 = vadd.f32 %v6466_v49, %v6465_v14  ;;  %v8818_v21 = vadd.f32 %v6464_v46, %v2131_v9  ;;  %v3722_v20 = vrot.slane %v3720_v8, 4  ;;  %2668 = vst [vmem:[#allocation2 + $0x5c] sm:$0x1] %v2667_v50 }
 0x1d1   : > { %4761 = vmatprep.mubr.bf16.mxu1 %v5937_v13  ;;  %v8827_v0 = vsel %vm7711_vm5, %v5903_v52, %v3720_v8  ;;  %v7308_v8 = vld [vmem:[#allocation3 + $0x100] sm:$0xff]  }
 0x1d2   : > { %v6356_v17 = vpop.f32.mrb[84].mxu0  ;;  %v8823_v42 = vadd.f32 %v6467_v25, %v2134_v5  ;;  %4762 = vmatmul.mubr.bf16.vlgmr.msra.gmra.mrb[128].mxu1 %v5921_v32  ;;  %v8831_v53 = vsel %vm7711_vm5, %v3722_v20, %v3723_v36  ;;  %v7307_v36 = vld [vmem:[#allocation3 + $0x140] sm:$0xff]  }
 0x1d3   : > { %v6357_v59 = vpop.f32.mrb[85].mxu0  ;;  %v5953_v34 = vcombine.low %v8827_v0, %v8831_v53  ;;  %v2619_v13 = vld [vmem:[#allocation2 + $0x78] sm:$0x1]  ;;  %6782 = vmatprep.subr.bf16.mxu1 %v7307_v36 }
 0x1d4   : > { %v6358_v38 = vadd.f32 %v6357_v59, %v6356_v17  ;;  %v6359_v45 = vpop.f32.mrb[86].mxu0  ;;  %v6468_v9 = vpop.f32.mrb[84].mxu1  ;;  %6783 = vmatpush3.bf16.msra.mxu1 %v7308_v8 }
 0x1d5   : > { %v6360_v10 = vpop.f32.mrb[87].mxu0  ;;  %v6469_v46 = vpop.f32.mrb[85].mxu1 }
 0x1d6   : > { %v2139_v14 = vadd.f32 %v6358_v38, %v8642_v16  ;;  %v6361_v40 = vadd.f32 %v6360_v10, %v6359_v45  ;;  %v6470_v23 = vadd.f32 %v6469_v46, %v6468_v9  ;;  %v6471_v32 = vpop.f32.mrb[86].mxu1  ;;  %v2620_v16 = vsel %vm8726_vm8, 0, %v2619_v13 }
 0x1d7   : > { %v6472_v49 = vpop.f32.mrb[87].mxu1  ;;  %2621 = vst [vmem:[#allocation2 + $0x78] sm:$0x1] %v2620_v16 }
 0x1d8   : > { %v2142_v33 = vadd.f32 %v6361_v40, %v8644_v26  ;;  %v6473_v60 = vadd.f32 %v6472_v49, %v6471_v32  ;;  %v8837_v41 = vadd.f32 %v6470_v23, %v2139_v14  ;;  %v2616_v49 = vld [vmem:[#allocation2 + $0x6c] sm:$0x1] }
 0x1d9   : > { %v2617_v36 = vsel %vm8726_vm8, 0, %v2616_v49 }
 0x1da   : > { %v6362_v5 = vpop.f32.mrb[88].mxu0  ;;  %v8839_v25 = vadd.f32 %v6473_v60, %v2142_v33  ;;  %v2675_v33 = vld [vmem:[#allocation2 + $0x80] sm:$0x1]  ;;  %2618 = vst [vmem:[#allocation2 + $0x6c] sm:$0x1] %v2617_v36 }
 0x1db   : > { %v6363_v15 = vpop.f32.mrb[89].mxu0 }
 0x1dc   : > { %v6364_v50 = vadd.f32 %v6363_v15, %v6362_v5  ;;  %v6365_v52 = vpop.f32.mrb[90].mxu0  ;;  %v6474_v20 = vpop.f32.mrb[88].mxu1 }
 0x1dd   : > { %v6366_v26 = vpop.f32.mrb[91].mxu0  ;;  %v6475_v17 = vpop.f32.mrb[89].mxu1 }
 0x1de   : > { %v2147_v59 = vadd.f32 %v6364_v50, %v8650_v57  ;;  %v6367_v38 = vadd.f32 %v6366_v26, %v6365_v52  ;;  %v6476_v45 = vadd.f32 %v6475_v17, %v6474_v20  ;;  %v6477_v9 = vpop.f32.mrb[90].mxu1  ;;  %v2676_v57 = vsel %vm8734_vm10, 0, %v2675_v33 }
 0x1df   : > { %v6478_v10 = vpop.f32.mrb[91].mxu1  ;;  %2677 = vst [vmem:[#allocation2 + $0x80] sm:$0x1] %v2676_v57 }
 0x1e0   : > { %v2150_v46 = vadd.f32 %v6367_v38, %v8652_v31  ;;  %v6479_v14 = vadd.f32 %v6478_v10, %v6477_v9  ;;  %v8845_v40 = vadd.f32 %v6476_v45, %v2147_v59  ;;  %v2672_v31 = vld [vmem:[#allocation2 + $0x74] sm:$0x1] }
 0x1e1   : > { %v2673_v50 = vsel %vm8734_vm10, 0, %v2672_v31 }
 0x1e2   : > { %v6368_v23 = vpop.f32.mrb[92].mxu0  ;;  %v8847_v32 = vadd.f32 %v6479_v14, %v2150_v46  ;;  %2674 = vst [vmem:[#allocation2 + $0x74] sm:$0x1] %v2673_v50 }
 0x1e3   : > { %v6369_v60 = vpop.f32.mrb[93].mxu0 }
 0x1e4   : > { %v6370_v8 = vadd.f32 %v6369_v60, %v6368_v23  ;;  %v6371_v5 = vpop.f32.mrb[94].mxu0  ;;  %v6480_v13 = vpop.f32.mrb[92].mxu1 }
 0x1e5   : > { %v6372_v15 = vpop.f32.mrb[95].mxu0  ;;  %v6481_v16 = vpop.f32.mrb[93].mxu1 }
 0x1e6   : > { %v2155_v52 = vadd.f32 %v6370_v8, %v8658_v58  ;;  %v6373_v20 = vadd.f32 %v6372_v15, %v6371_v5  ;;  %v6482_v26 = vadd.f32 %v6481_v16, %v6480_v13  ;;  %v6483_v17 = vpop.f32.mrb[94].mxu1 }
 0x1e7   : > { %v6484_v59 = vpop.f32.mrb[95].mxu1 }
 0x1e8   : > { %v2158_v38 = vadd.f32 %v6373_v20, %v8660_v4  ;;  %v6485_v45 = vadd.f32 %v6484_v59, %v6483_v17  ;;  %v8857_v9 = vadd.f32 %v6482_v26, %v2155_v52  ;;  %v2625_v52 = vld [vmem:[#allocation2 + $0x90] sm:$0x1] }
 0x1e9   : > { %v2626_v26 = vsel %vm8726_vm8, 0, %v2625_v52 }
 0x1ea   : > { %v6374_v10 = vpop.f32.mrb[96].mxu0  ;;  %v8859_v46 = vadd.f32 %v6485_v45, %v2158_v38  ;;  %2627 = vst [vmem:[#allocation2 + $0x90] sm:$0x1] %v2626_v26 }
 0x1eb   : > { %v6375_v14 = vpop.f32.mrb[97].mxu0 }
 0x1ec   : > { %v6376_v23 = vadd.f32 %v6375_v14, %v6374_v10  ;;  %v6377_v49 = vpop.f32.mrb[98].mxu0  ;;  %v6486_v33 = vpop.f32.mrb[96].mxu1  ;;  %v2622_v10 = vld [vmem:[#allocation2 + $0x84] sm:$0x1]  ;;  %v2681_v14 = vld [vmem:[#allocation2 + $0x98] sm:$0x1] }
 0x1ed   : > { %v6378_v60 = vpop.f32.mrb[99].mxu0  ;;  %v6487_v36 = vpop.f32.mrb[97].mxu1 }
 0x1ee   : > { %v2163_v58 = vadd.f32 %v6376_v23, %v8665_v22  ;;  %v6379_v57 = vadd.f32 %v6378_v60, %v6377_v49  ;;  %v6488_v8 = vadd.f32 %v6487_v36, %v6486_v33  ;;  %v6489_v5 = vpop.f32.mrb[98].mxu1  ;;  %v2623_v60 = vsel %vm8726_vm8, 0, %v2622_v10  ;;  %v2678_v36 = vld [vmem:[#allocation2 + $0x8c] sm:$0x1] }
 0x1ef   : > { %v6490_v13 = vpop.f32.mrb[99].mxu1  ;;  %2624 = vst [vmem:[#allocation2 + $0x84] sm:$0x1] %v2623_v60 }
 0x1f0   : > { %v2166_v4 = vadd.f32 %v6379_v57, %v8668_v44  ;;  %v6491_v31 = vadd.f32 %v6490_v13, %v6489_v5  ;;  %v8863_v15 = vadd.f32 %v6488_v8, %v2163_v58  ;;  %v2682_v57 = vsel %vm8734_vm10, 0, %v2681_v14 }
 0x1f1   : > { %v2679_v8 = vsel %vm8734_vm10, 0, %v2678_v36  ;;  %2683 = vst [vmem:[#allocation2 + $0x98] sm:$0x1] %v2682_v57  ;;  %v7312_v36 = vld [vmem:[#allocation3 + $0x108] sm:$0xff]  }
 0x1f2   : > { %v6380_v16 = vpop.f32.mrb[100].mxu0  ;;  %v8865_v50 = vadd.f32 %v6491_v31, %v2166_v4  ;;  %2680 = vst [vmem:[#allocation2 + $0x8c] sm:$0x1] %v2679_v8 }
 0x1f3   : > { %v6381_v20 = vpop.f32.mrb[101].mxu0 }
 0x1f4   : > { %v6382_v17 = vadd.f32 %v6381_v20, %v6380_v16  ;;  %v6383_v59 = vpop.f32.mrb[102].mxu0  ;;  %v6492_v22 = vpop.f32.mrb[100].mxu1 }
 0x1f5   : > { %v6384_v38 = vpop.f32.mrb[103].mxu0  ;;  %v6493_v45 = vpop.f32.mrb[101].mxu1 }
 0x1f6   : > { %v2171_v44 = vadd.f32 %v6382_v17, %v8673_v27  ;;  %v6385_v23 = vadd.f32 %v6384_v38, %v6383_v59  ;;  %v6494_v49 = vadd.f32 %v6493_v45, %v6492_v22  ;;  %v6495_v33 = vpop.f32.mrb[102].mxu1  ;;  %v7311_v27 = vld [vmem:[#allocation3 + $0x148] sm:$0xff]  }
 0x1f7   : > { %v6496_v58 = vpop.f32.mrb[103].mxu1  ;;  %6784 = vmatprep.subr.bf16.mxu1 %v7311_v27 }
 0x1f8   : > { %v2174_v5 = vadd.f32 %v6385_v23, %v8676_v48  ;;  %v6497_v13 = vadd.f32 %v6496_v58, %v6495_v33  ;;  %v8877_v4 = vadd.f32 %v6494_v49, %v2171_v44  ;;  %v2631_v58 = vld [vmem:[#allocation2 + $0xa8] sm:$0x1]  ;;  %6785 = vmatpush3.bf16.msra.mxu1 %v7312_v36 }
 0x1f9   : > { %v2632_v8 = vsel %vm8726_vm8, 0, %v2631_v58 }
 0x1fa   : > { %v6386_v31 = vpop.f32.mrb[104].mxu0  ;;  %v8879_v16 = vadd.f32 %v6497_v13, %v2174_v5  ;;  %2633 = vst [vmem:[#allocation2 + $0xa8] sm:$0x1] %v2632_v8 }
 0x1fb   : > { %v6387_v52 = vpop.f32.mrb[105].mxu0 }
 0x1fc   : > { %v6388_v20 = vadd.f32 %v6387_v52, %v6386_v31  ;;  %v6389_v26 = vpop.f32.mrb[106].mxu0  ;;  %v6498_v17 = vpop.f32.mrb[104].mxu1  ;;  %v2687_v52 = vld [vmem:[#allocation2 + $0xb0] sm:$0x1] }
 0x1fd   : > { %v6390_v59 = vpop.f32.mrb[107].mxu0  ;;  %v6499_v22 = vpop.f32.mrb[105].mxu1 }
 0x1fe   : > { %v2179_v38 = vadd.f32 %v6388_v20, %v8681_v2  ;;  %v6391_v45 = vadd.f32 %v6390_v59, %v6389_v26  ;;  %v6500_v48 = vadd.f32 %v6499_v22, %v6498_v17  ;;  %v6501_v10 = vpop.f32.mrb[106].mxu1 }
 0x1ff   : > { %v6502_v14 = vpop.f32.mrb[107].mxu1 }
 0x200   : > { %v2182_v44 = vadd.f32 %v6391_v45, %v8685_v7  ;;  %v6503_v23 = vadd.f32 %v6502_v14, %v6501_v10  ;;  %v8883_v49 = vadd.f32 %v6500_v48, %v2179_v38  ;;  %v2628_v7 = vld [vmem:[#allocation2 + $0x9c] sm:$0x1]  ;;  %v2684_v38 = vld [vmem:[#allocation2 + $0xa4] sm:$0x1]  ;;  %v2688_v48 = vsel %vm8734_vm10, 0, %v2687_v52 }
 0x201   : > { %v2629_v22 = vsel %vm8726_vm8, 0, %v2628_v7  ;;  %v2685_v10 = vsel %vm8734_vm10, 0, %v2684_v38  ;;  %2689 = vst [vmem:[#allocation2 + $0xb0] sm:$0x1] %v2688_v48 }
 0x202   : > { %v6392_v33 = vpop.f32.mrb[108].mxu0  ;;  %v8885_v60 = vadd.f32 %v6503_v23, %v2182_v44  ;;  %2630 = vst [vmem:[#allocation2 + $0x9c] sm:$0x1] %v2629_v22  ;;  %2686 = vst [vmem:[#allocation2 + $0xa4] sm:$0x1] %v2685_v10 }
 0x203   : > { %v6393_v57 = vpop.f32.mrb[109].mxu0  ;;  %v2637_v22 = vld [vmem:[#allocation2 + $0xc0] sm:$0x1] }
 0x204   : > { %v6394_v5 = vadd.f32 %v6393_v57, %v6392_v33  ;;  %v6395_v2 = vpop.f32.mrb[110].mxu0  ;;  %v6504_v13 = vpop.f32.mrb[108].mxu1 }
 0x205   : > { %v6396_v27 = vpop.f32.mrb[111].mxu0  ;;  %v6505_v31 = vpop.f32.mrb[109].mxu1 }
 0x206   : > { %v2187_v20 = vadd.f32 %v6394_v5, %v8694_v39  ;;  %v6397_v26 = vadd.f32 %v6396_v27, %v6395_v2  ;;  %v6506_v17 = vadd.f32 %v6505_v31, %v6504_v13  ;;  %v6507_v59 = vpop.f32.mrb[110].mxu1 }
 0x207   : > { %v6508_v45 = vpop.f32.mrb[111].mxu1 }
 0x208   : > { %v2190_v14 = vadd.f32 %v6397_v26, %v8699_v62  ;;  %v6509_v44 = vadd.f32 %v6508_v45, %v6507_v59  ;;  %v8897_v23 = vadd.f32 %v6506_v17, %v2187_v20  ;;  %v2638_v45 = vsel %vm8726_vm8, 0, %v2637_v22 }
 0x209   : > { %2639 = vst [vmem:[#allocation2 + $0xc0] sm:$0x1] %v2638_v45 }
 0x20a   : > { %v6398_v39 = vpop.f32.mrb[112].mxu0  ;;  %v8899_v33 = vadd.f32 %v6509_v44, %v2190_v14 }
 0x20b   : > { %v6399_v36 = vpop.f32.mrb[113].mxu0 }
 0x20c   : > { %v6400_v58 = vadd.f32 %v6399_v36, %v6398_v39  ;;  %v6401_v57 = vpop.f32.mrb[114].mxu0  ;;  %v6510_v8 = vpop.f32.mrb[112].mxu1  ;;  %v2634_v39 = vld [vmem:[#allocation2 + $0xb4] sm:$0x1]  ;;  %v2693_v36 = vld [vmem:[#allocation2 + $0xc8] sm:$0x1] }
 0x20d   : > { %v6402_v5 = vpop.f32.mrb[115].mxu0  ;;  %v6511_v2 = vpop.f32.mrb[113].mxu1 }
 0x20e   : > { %v2195_v13 = vadd.f32 %v6400_v58, %v8703_v29  ;;  %v6403_v27 = vadd.f32 %v6402_v5, %v6401_v57  ;;  %v6512_v31 = vadd.f32 %v6511_v2, %v6510_v8  ;;  %v6513_v7 = vpop.f32.mrb[114].mxu1  ;;  %v2635_v5 = vsel %vm8726_vm8, 0, %v2634_v39  ;;  %v2690_v2 = vld [vmem:[#allocation2 + $0xbc] sm:$0x1] }
 0x20f   : > { %v6514_v62 = vpop.f32.mrb[115].mxu1  ;;  %2636 = vst [vmem:[#allocation2 + $0xb4] sm:$0x1] %v2635_v5 }
 0x210   : > { %v2198_v52 = vadd.f32 %v6403_v27, %v8705_v55  ;;  %v6515_v20 = vadd.f32 %v6514_v62, %v6513_v7  ;;  %v8903_v26 = vadd.f32 %v6512_v31, %v2195_v13  ;;  %v2694_v27 = vsel %vm8734_vm10, 0, %v2693_v36 }
 0x211   : > { %v2691_v31 = vsel %vm8734_vm10, 0, %v2690_v2  ;;  %2695 = vst [vmem:[#allocation2 + $0xc8] sm:$0x1] %v2694_v27  ;;  %v7316_v2 = vld [vmem:[#allocation3 + $0x110] sm:$0xff]  }
 0x212   : > { %v6404_v17 = vpop.f32.mrb[116].mxu0  ;;  %v8905_v59 = vadd.f32 %v6515_v20, %v2198_v52  ;;  %2692 = vst [vmem:[#allocation2 + $0xbc] sm:$0x1] %v2691_v31 }
 0x213   : > { %v6405_v38 = vpop.f32.mrb[117].mxu0 }
 0x214   : > { %v6406_v48 = vadd.f32 %v6405_v38, %v6404_v17  ;;  %v6407_v10 = vpop.f32.mrb[118].mxu0  ;;  %v6516_v29 = vpop.f32.mrb[116].mxu1 }
 0x215   : > { %v6408_v14 = vpop.f32.mrb[119].mxu0  ;;  %v6517_v44 = vpop.f32.mrb[117].mxu1 }
 0x216   : > { %v2203_v55 = vadd.f32 %v6406_v48, %v8709_v3  ;;  %v6409_v58 = vadd.f32 %v6408_v14, %v6407_v10  ;;  %v6518_v57 = vadd.f32 %v6517_v44, %v6516_v29  ;;  %v6519_v8 = vpop.f32.mrb[118].mxu1  ;;  %v7315_v3 = vld [vmem:[#allocation3 + $0x150] sm:$0xff]  }
 0x217   : > { %v6520_v13 = vpop.f32.mrb[119].mxu1  ;;  %6786 = vmatprep.subr.bf16.mxu1 %v7315_v3 }
 0x218   : > { %v2206_v7 = vadd.f32 %v6409_v58, %v8711_v12  ;;  %v6521_v62 = vadd.f32 %v6520_v13, %v6519_v8  ;;  %v8917_v52 = vadd.f32 %v6518_v57, %v2203_v55  ;;  %6787 = vmatpush3.bf16.msra.mxu1 %v7316_v2  ;;  %v7320_v2 = vld [vmem:[#allocation3 + $0x118] sm:$0xff]  }
 0x21a   : > { %v6410_v20 = vpop.f32.mrb[120].mxu0  ;;  %v8919_v17 = vadd.f32 %v6521_v62, %v2206_v7 }
 0x21b   : > { %v6411_v22 = vpop.f32.mrb[121].mxu0 }
 0x21c   : > { %v6412_v38 = vadd.f32 %v6411_v22, %v6410_v20  ;;  %v6413_v45 = vpop.f32.mrb[122].mxu0  ;;  %v6522_v48 = vpop.f32.mrb[120].mxu1 }
 0x21d   : > { %v6414_v10 = vpop.f32.mrb[123].mxu0  ;;  %v6523_v29 = vpop.f32.mrb[121].mxu1 }
 0x21e   : > { %v2211_v14 = vadd.f32 %v6412_v38, %v8715_v51  ;;  %v6415_v44 = vadd.f32 %v6414_v10, %v6413_v45  ;;  %v6524_v12 = vadd.f32 %v6523_v29, %v6522_v48  ;;  %v6525_v39 = vpop.f32.mrb[122].mxu1 }
 0x21f   : > { %v6526_v36 = vpop.f32.mrb[123].mxu1 }
 0x220   : > { %v2214_v55 = vadd.f32 %v6415_v44, %v8717_v6  ;;  %v6527_v58 = vadd.f32 %v6526_v36, %v6525_v39  ;;  %v8923_v57 = vadd.f32 %v6524_v12, %v2211_v14  ;;  %v7319_v39 = vld [vmem:[#allocation3 + $0x158] sm:$0xff]  }
 0x221   : > { %6788 = vmatprep.subr.bf16.mxu1 %v7319_v39 }
 0x222   : > { %v6416_v8 = vpop.f32.mrb[124].mxu0  ;;  %v8925_v5 = vadd.f32 %v6527_v58, %v2214_v55  ;;  %6789 = vmatpush3.bf16.msra.mxu1 %v7320_v2 }
 0x223   : > { %v6417_v13 = vpop.f32.mrb[125].mxu0 }
 0x224   : > { %v6418_v27 = vadd.f32 %v6417_v13, %v6416_v8  ;;  %v6419_v31 = vpop.f32.mrb[126].mxu0  ;;  %v6528_v7 = vpop.f32.mrb[124].mxu1 }
 0x225   : > { %v6420_v62 = vpop.f32.mrb[127].mxu0  ;;  %v6529_v51 = vpop.f32.mrb[125].mxu1 }
 0x226   : > { %v2219_v3 = vadd.f32 %v6418_v27, %v8721_v24  ;;  %v6421_v20 = vadd.f32 %v6420_v62, %v6419_v31  ;;  %v6530_v22 = vadd.f32 %v6529_v51, %v6528_v7  ;;  %v6531_v38 = vpop.f32.mrb[126].mxu1 }
 0x227   : > { %v6532_v6 = vpop.f32.mrb[127].mxu1 }
 0x228   : > { %v2222_v45 = vadd.f32 %v6421_v20, %v8723_v37  ;;  %v6533_v48 = vadd.f32 %v6532_v6, %v6531_v38  ;;  %v8929_v10 = vadd.f32 %v6530_v22, %v2219_v3  ;;  %v3127_v6 = vld [vmem:[#allocation2 + $0x18] sm:$0xf] }
 0x22a   : > { %v7048_v29 = vpop.f32.mrb[128].mxu0  ;;  %v8931_v14 = vadd.f32 %v6533_v48, %v2222_v45 }
 0x22b   : > { %v2429_v44 = vadd.f32 %v7048_v29, %v8755_v47  ;;  %v2420_v12 = vpop.f32.mrb[129].mxu0 }
 0x22c   : > { %v2421_v36 = vadd.f32 %v2420_v12, %v8741_v19  ;;  %v7049_v55 = vpop.f32.mrb[130].mxu0 }
 0x22d   : > { %v2549_v24 = vmax.f32 %v2429_v44, 0.0  ;;  %v2432_v58 = vadd.f32 %v7049_v55, %v8759_v30  ;;  %v2423_v8 = vpop.f32.mrb[131].mxu0 }
 0x22e   : > { %v2547_v37 = vmax.f32 %v2421_v36, 0.0  ;;  %v2424_v13 = vadd.f32 %v2423_v8, %v8747_v18 }
 0x22f   : > { %v6055_v27 = vpack.c.bf16 %v2549_v24, %v2549_v24  ;;  %v2550_v31 = vmax.f32 %v2432_v58, 0.0  ;;  %v7322_v58 = vld [vmem:[#allocation3 + $0x1c0] sm:$0xff]  }
 0x230   : > { %v6053_v7 = vpack.c.bf16 %v2547_v37, %v2547_v37  ;;  %v2548_v62 = vmax.f32 %v2424_v13, 0.0  ;;  %v3120_v37 = vld [vmem:[#allocation2 + $0xc] sm:$0xf]  ;;  %6894 = vmatprep.subr.bf16.mxu0 %v7322_v58 }
 0x231   : > { %v2815_v47 = vshrl.u32 %v6055_v27, 16  ;;  %v6056_v51 = vpack.c.bf16 %v2550_v31, %v2550_v31  ;;  %v2818_v19 = vshll.u32 %v6055_v27, 16 }
 0x232   : > { %v2798_v3 = vshrl.u32 %v6053_v7, 16  ;;  %v2801_v20 = vshll.u32 %v6053_v7, 16  ;;  %v6054_v22 = vpack.c.bf16 %v2548_v62, %v2548_v62  ;;  %v7052_v30 = vpop.f32.mrb[132].mxu0 }
 0x233   : > { %v2817_v38 = vrot.slane %v2815_v47, 7  ;;  %v2823_v45 = vshrl.u32 %v6056_v51, 16  ;;  %v2826_v48 = vshll.u32 %v6056_v51, 16  ;;  %v2445_v18 = vadd.f32 %v7052_v30, %v8794_v56  ;;  %v2436_v29 = vpop.f32.mrb[133].mxu0  ;;  %v3131_v47 = vld [vmem:[#allocation2 + $0x20] sm:$0x1] }
 0x234   : > { %v2800_v12 = vrot.slane %v2798_v3, 7  ;;  %v2806_v39 = vshrl.u32 %v6054_v22, 16  ;;  %v2809_v36 = vshll.u32 %v6054_v22, 16  ;;  %v2437_v55 = vadd.f32 %v2436_v29, %v8769_v43  ;;  %v7053_v24 = vpop.f32.mrb[134].mxu0  ;;  %v3124_v30 = vld [vmem:[#allocation2 + $0x14] sm:$0x1] }
 0x235   : > { %v2820_v8 = vor.u32 %v2818_v19, %v2817_v38  ;;  %v2821_v2 = vrot.slane %v2817_v38, 4  ;;  %v2825_v13 = vrot.slane %v2823_v45, 7  ;;  %v2553_v27 = vmax.f32 %v2445_v18, 0.0  ;;  %v2439_v31 = vpop.f32.mrb[135].mxu0 }
 0x236   : > { %v2803_v56 = vor.u32 %v2801_v20, %v2800_v12  ;;  %v2804_v7 = vrot.slane %v2800_v12, 4  ;;  %v2808_v51 = vrot.slane %v2806_v39, 7  ;;  %v2551_v3 = vmax.f32 %v2437_v55, 0.0 }
 0x237   : > { %v3128_v43 = vsel %vm8939_vm13, %v2820_v8, %v3127_v6  ;;  %v2828_v19 = vor.u32 %v2826_v48, %v2825_v13  ;;  %v2830_v22 = vrot.slane %v2825_v13, 4  ;;  %v6059_v38 = vpack.c.bf16 %v2553_v27, %v2553_v27 }
 0x238   : > { %3129 = vst [vmem:[#allocation2 + $0x18] sm:$0xf] %v3128_v43  ;;  %v3121_v20 = vsel %vm8939_vm13, %v2803_v56, %v3120_v37  ;;  %v2811_v45 = vor.u32 %v2809_v36, %v2808_v51  ;;  %v2813_v18 = vrot.slane %v2808_v51, 4  ;;  %v6057_v29 = vpack.c.bf16 %v2551_v3, %v2551_v3  ;;  %v3141_v51 = vld [vmem:[#allocation2 + $0x30] sm:$0xf] }
 0x239   : > { %3122 = vst [vmem:[#allocation2 + $0xc] sm:$0xf] %v3121_v20  ;;  %v2829_v12 = vsel %vm8946_vm14, %v2821_v2, %v2828_v19  ;;  %v3132_v39 = vsel %vm8726_vm8, %v2830_v22, %v3131_v47  ;;  %v2849_v55 = vshrl.u32 %v6059_v38, 16  ;;  %v2852_v58 = vshll.u32 %v6059_v38, 16  ;;  %v7325_v47 = vld [vmem:[#allocation3 + $0x160] sm:$0xff]  }
 0x23a   : > { %3130 = vst [vmem:[#allocation2 + $0x1c] sm:$0xf] %v2829_v12  ;;  %3133 = vst [vmem:[#allocation2 + $0x20] sm:$0x1] %v3132_v39  ;;  %v2812_v6 = vsel %vm8946_vm14, %v2804_v7, %v2811_v45  ;;  %v3125_v48 = vsel %vm8726_vm8, %v2813_v18, %v3124_v30  ;;  %v2832_v36 = vshrl.u32 %v6057_v29, 16  ;;  %v7056_v8 = vpop.f32.mrb[136].mxu0  ;;  %v2448_v2 = vadd.f32 %v7053_v24, %v8799_v61 }
 0x23b   : > { %3123 = vst [vmem:[#allocation2 + $0x10] sm:$0xf] %v2812_v6  ;;  %3126 = vst [vmem:[#allocation2 + $0x14] sm:$0x1] %v3125_v48  ;;  %v8962_v37 = vrot.slane %v2849_v55, 7  ;;  %v2440_v13 = vadd.f32 %v2439_v31, %v8777_v11  ;;  %v2461_v27 = vadd.f32 %v7056_v8, %v8837_v41  ;;  %v2452_v56 = vpop.f32.mrb[137].mxu0  ;;  %6790 = vmatprep.subr.bf16.mxu1 %v7325_v47 }
 0x23c   : > { %v2834_v7 = vrot.slane %v2832_v36, 7  ;;  %v2835_v3 = vshll.u32 %v6057_v29, 16  ;;  %v2453_v43 = vadd.f32 %v2452_v56, %v8818_v21  ;;  %v7057_v19 = vpop.f32.mrb[138].mxu0  ;;  %v7326_v22 = vld [vmem:[#allocation3 + $0x120] sm:$0xff]   ;;  %v3134_v20 = vld [vmem:[#allocation2 + $0x24] sm:$0xf] }
 0x23d   : > { %v2854_v30 = vor.u32 %v2852_v58, %v8962_v37  ;;  %v2855_v38 = vrot.slane %v8962_v37, 4  ;;  %v2554_v45 = vmax.f32 %v2448_v2, 0.0  ;;  %v2552_v61 = vmax.f32 %v2440_v13, 0.0  ;;  %v2455_v24 = vpop.f32.mrb[139].mxu0  ;;  %6791 = vmatpush3.bf16.msra.mxu1 %v7326_v22  ;;  %v3145_v13 = vld [vmem:[#allocation2 + $0x38] sm:$0x1] }
 0x23e   : > { %v2837_v11 = vor.u32 %v2835_v3, %v2834_v7  ;;  %v2838_v41 = vrot.slane %v2834_v7, 4  ;;  %v2557_v31 = vmax.f32 %v2461_v27, 0.0  ;;  %v2555_v18 = vmax.f32 %v2453_v43, 0.0  ;;  %v3138_v27 = vld [vmem:[#allocation2 + $0x2c] sm:$0x1] }
 0x23f   : > { %v3142_v29 = vsel %vm8939_vm13, %v2854_v30, %v3141_v51  ;;  %v6060_v21 = vpack.c.bf16 %v2554_v45, %v2554_v45  ;;  %v6058_v12 = vpack.c.bf16 %v2552_v61, %v2552_v61  ;;  %v2464_v39 = vadd.f32 %v7057_v19, %v8839_v25 }
 0x240   : > { %3143 = vst [vmem:[#allocation2 + $0x30] sm:$0xf] %v3142_v29  ;;  %v3135_v55 = vsel %vm8939_vm13, %v2837_v11, %v3134_v20  ;;  %v6063_v6 = vpack.c.bf16 %v2557_v31, %v2557_v31  ;;  %v6061_v48 = vpack.c.bf16 %v2555_v18, %v2555_v18  ;;  %v2456_v58 = vadd.f32 %v2455_v24, %v8823_v42  ;;  %v3155_v42 = vld [vmem:[#allocation2 + $0x48] sm:$0xf] }
 0x241   : > { %3136 = vst [vmem:[#allocation2 + $0x24] sm:$0xf] %v3135_v55  ;;  %v2857_v36 = vshrl.u32 %v6060_v21, 16  ;;  %v2860_v8 = vshll.u32 %v6060_v21, 16  ;;  %v2840_v37 = vshrl.u32 %v6058_v12, 16  ;;  %v2843_v2 = vshll.u32 %v6058_v12, 16 }
 0x242   : > { %v2883_v56 = vshrl.u32 %v6063_v6, 16  ;;  %v2886_v47 = vshll.u32 %v6063_v6, 16  ;;  %v2866_v51 = vshrl.u32 %v6061_v48, 16  ;;  %v2869_v7 = vshll.u32 %v6061_v48, 16  ;;  %v7060_v25 = vpop.f32.mrb[140].mxu0 }
 0x243   : > { %v2859_v3 = vrot.slane %v2857_v36, 7  ;;  %v2842_v43 = vrot.slane %v2840_v37, 7  ;;  %v2558_v19 = vmax.f32 %v2464_v39, 0.0  ;;  %v2556_v22 = vmax.f32 %v2456_v58, 0.0  ;;  %v2468_v30 = vpop.f32.mrb[141].mxu0 }
 0x244   : > { %v8976_v20 = vrot.slane %v2883_v56, 7  ;;  %v8978_v45 = vrot.slane %v2866_v51, 7  ;;  %v2477_v61 = vadd.f32 %v7060_v25, %v8857_v9  ;;  %v2469_v24 = vadd.f32 %v2468_v30, %v8845_v40  ;;  %v7061_v11 = vpop.f32.mrb[142].mxu0  ;;  %v3148_v12 = vld [vmem:[#allocation2 + $0x3c] sm:$0xf] }
 0x245   : > { %v2862_v31 = vor.u32 %v2860_v8, %v2859_v3  ;;  %v2864_v18 = vrot.slane %v2859_v3, 4  ;;  %v2845_v29 = vor.u32 %v2843_v2, %v2842_v43  ;;  %v2847_v21 = vrot.slane %v2842_v43, 4  ;;  %v2471_v55 = vpop.f32.mrb[143].mxu0  ;;  %v3159_v30 = vld [vmem:[#allocation2 + $0x50] sm:$0x1] }
 0x246   : > { %v2888_v39 = vor.u32 %v2886_v47, %v8976_v20  ;;  %v2889_v6 = vrot.slane %v8976_v20, 4  ;;  %v2871_v48 = vor.u32 %v2869_v7, %v8978_v45  ;;  %v6062_v2 = vpack.c.bf16 %v2556_v22, %v2556_v22  ;;  %v8999_v47 = vld [vmem:[#allocation2 + $0xc] sm:$0xf] }
 0x247   : > { %v2863_v58 = vsel %vm8946_vm14, %v2855_v38, %v2862_v31  ;;  %v3146_v9 = vsel %vm8726_vm8, %v2864_v18, %v3145_v13  ;;  %v2846_v40 = vsel %vm8946_vm14, %v2838_v41, %v2845_v29  ;;  %v3139_v36 = vsel %vm8726_vm8, %v2847_v21, %v3138_v27  ;;  %v7332_v29 = vld [vmem:[#allocation3 + $0x128] sm:$0xff]  }
 0x248   : > { %3144 = vst [vmem:[#allocation2 + $0x34] sm:$0xf] %v2863_v58  ;;  %3147 = vst [vmem:[#allocation2 + $0x38] sm:$0x1] %v3146_v9  ;;  %v3156_v8 = vsel %vm8939_vm13, %v2888_v39, %v3155_v42  ;;  %v3149_v37 = vsel %vm8939_vm13, %v2871_v48, %v3148_v12  ;;  %v6064_v38 = vpack.c.bf16 %v2558_v19, %v2558_v19  ;;  %v2561_v13 = vmax.f32 %v2477_v61, 0.0 }
 0x249   : > { %3137 = vst [vmem:[#allocation2 + $0x28] sm:$0xf] %v2846_v40  ;;  %3140 = vst [vmem:[#allocation2 + $0x2c] sm:$0x1] %v3139_v36  ;;  %v2559_v56 = vmax.f32 %v2469_v24, 0.0  ;;  %v2480_v41 = vadd.f32 %v7061_v11, %v8859_v46  ;;  %v2472_v27 = vadd.f32 %v2471_v55, %v8847_v32  ;;  %v2872_v51 = vrot.slane %v8978_v45, 4 }
 0x24a   : > { %3157 = vst [vmem:[#allocation2 + $0x48] sm:$0xf] %v3156_v8  ;;  %3150 = vst [vmem:[#allocation2 + $0x3c] sm:$0xf] %v3149_v37  ;;  %v2891_v7 = vshrl.u32 %v6064_v38, 16  ;;  %v2894_v25 = vshll.u32 %v6064_v38, 16  ;;  %v6067_v22 = vpack.c.bf16 %v2561_v13, %v2561_v13 }
 0x24b   : > { %v2874_v3 = vshrl.u32 %v6062_v2, 16  ;;  %v9002_v43 = vpop.f32.mrb[144].mxu0  ;;  %v3152_v19 = vld [vmem:[#allocation2 + $0x44] sm:$0x1]  ;;  %v6065_v20 = vpack.c.bf16 %v2559_v56, %v2559_v56  ;;  %v2562_v42 = vmax.f32 %v2480_v41, 0.0  ;;  %v2560_v61 = vmax.f32 %v2472_v27, 0.0 }
 0x24c   : > { %v9004_v24 = vpop.f32.mrb[145].mxu0  ;;  %v7331_v46 = vld [vmem:[#allocation3 + $0x168] sm:$0xff]   ;;  %v2893_v11 = vrot.slane %v2891_v7, 7  ;;  %v2877_v31 = vshll.u32 %v6062_v2, 16  ;;  %v3311_v18 = vshrl.u32 %v8999_v47, 16  ;;  %v2917_v21 = vshrl.u32 %v6067_v22, 16 }
 0x24d   : > { %v2876_v32 = vrot.slane %v2874_v3, 7  ;;  %v9007_v45 = vpop.f32.mrb[146].mxu0  ;;  %v2920_v12 = vshll.u32 %v6067_v22, 16  ;;  %v2900_v55 = vshrl.u32 %v6065_v20, 16  ;;  %v2903_v39 = vshll.u32 %v6065_v20, 16  ;;  %6792 = vmatprep.subr.bf16.mxu1 %v7331_v46 }
 0x24e   : > { %v9009_v48 = vpop.f32.mrb[147].mxu0  ;;  %v2896_v58 = vor.u32 %v2894_v25, %v2893_v11  ;;  %v2898_v9 = vrot.slane %v2893_v11, 4  ;;  %6793 = vmatpush3.bf16.msra.mxu1 %v7332_v29  ;;  %v2919_v8 = vrot.slane %v2917_v21, 7  ;;  %v6068_v38 = vpack.c.bf16 %v2562_v42, %v2562_v42  ;;  %v3169_v7 = vld [vmem:[#allocation2 + $0x60] sm:$0xf] }
 0x24f   : > { %v2879_v40 = vor.u32 %v2877_v31, %v2876_v32  ;;  %v2881_v36 = vrot.slane %v2876_v32, 4  ;;  %v9011_v37 = vrot.slane %v2900_v55, 7  ;;  %v6066_v2 = vpack.c.bf16 %v2560_v61, %v2560_v61  ;;  %v3162_v25 = vld [vmem:[#allocation2 + $0x54] sm:$0xf]  ;;  %v9021_v3 = vld [vmem:[#allocation2 + $0x10] sm:$0xf] }
 0x250   : > { %v2897_v13 = vsel %vm8946_vm14, %v2889_v6, %v2896_v58  ;;  %v3160_v56 = vsel %vm8726_vm8, %v2898_v9, %v3159_v30  ;;  %v2922_v22 = vor.u32 %v2920_v12, %v2919_v8  ;;  %v2923_v20 = vrot.slane %v2919_v8, 4  ;;  %v9025_v42 = vld [vmem:[#allocation2 + $0x18] sm:$0xf] }
 0x251   : > { %v2880_v41 = vsel %vm8946_vm14, %v2872_v51, %v2879_v40  ;;  %v3153_v27 = vsel %vm8726_vm8, %v2881_v36, %v3152_v19  ;;  %3158 = vst [vmem:[#allocation2 + $0x4c] sm:$0xf] %v2897_v13  ;;  %3161 = vst [vmem:[#allocation2 + $0x50] sm:$0x1] %v3160_v56  ;;  %v2905_v6 = vor.u32 %v2903_v39, %v9011_v37  ;;  %v3314_v30 = vshll.u32 %v8999_v47, 16  ;;  %v7323_v39 = vld [vmem:[#allocation3 + $0x180] sm:$0xff]  }
 0x252   : > { %3151 = vst [vmem:[#allocation2 + $0x40] sm:$0xf] %v2880_v41  ;;  %3154 = vst [vmem:[#allocation2 + $0x44] sm:$0x1] %v3153_v27  ;;  %v9027_v51 = vld [vmem:[#allocation2 + $0x1c] sm:$0xf]  ;;  %v3170_v31 = vsel %vm8939_vm13, %v2922_v22, %v3169_v7  ;;  %v9038_v12 = vcombine.low %v8999_v47, %v9021_v3  ;;  %v2493_v41 = vadd.f32 %v9002_v43, %v8877_v4 }
 0x253   : > { %v2906_v19 = vrot.slane %v9011_v37, 4  ;;  %v2925_v61 = vshrl.u32 %v6068_v38, 16  ;;  %v2928_v46 = vshll.u32 %v6068_v38, 16  ;;  %v2908_v11 = vshrl.u32 %v6066_v2, 16  ;;  %v9030_v32 = vpop.f32.mrb[148].mxu0  ;;  %v7328_v37 = vld [vmem:[#allocation3 + $0x1c8] sm:$0xff]  }
 0x254   : > { %v3163_v29 = vsel %vm8939_vm13, %v2905_v6, %v3162_v25  ;;  %v2911_v21 = vshll.u32 %v6066_v2, 16  ;;  %v9040_v55 = vpop.f32.mrb[149].mxu0  ;;  %3171 = vst [vmem:[#allocation2 + $0x60] sm:$0xf] %v3170_v31  ;;  %v3324_v40 = vshrl.u32 %v9021_v3, 16  ;;  %v3335_v36 = vshrl.u32 %v9025_v42, 16  ;;  %4922 = vmatprep.mubr.bf16.mxu0 %v9038_v12 }
 0x255   : > { %3164 = vst [vmem:[#allocation2 + $0x54] sm:$0xf] %v3163_v29  ;;  %v2927_v58 = vrot.slane %v2925_v61, 7  ;;  %v2910_v9 = vrot.slane %v2908_v11, 7  ;;  %v9044_v8 = vpop.f32.mrb[150].mxu0  ;;  %v9050_v56 = vcombine.low %v9025_v42, %v9027_v51  ;;  %v2485_v27 = vadd.f32 %v9004_v24, %v8863_v15  ;;  %4923 = vmatmul.mubr.bf16.vlgmr.msra.gmra.mrb[160].mxu0 %v5953_v34  ;;  %v7329_v43 = vld [vmem:[#allocation3 + $0x188] sm:$0xff]  }
 0x256   : > { %v3173_v38 = vld [vmem:[#allocation2 + $0x68] sm:$0x1]  ;;  %v3166_v2 = vld [vmem:[#allocation2 + $0x5c] sm:$0x1]  ;;  %v9056_v7 = vpop.f32.mrb[151].mxu0  ;;  %v2565_v11 = vmax.f32 %v2493_v41, 0.0  ;;  %v2496_v4 = vadd.f32 %v9007_v45, %v8879_v16  ;;  %v2488_v15 = vadd.f32 %v9009_v48, %v8865_v50  ;;  %6895 = vmatpush3.bf16.msra.mxu0 %v7323_v39 }
 0x257   : > { %v2930_v25 = vor.u32 %v2928_v46, %v2927_v58  ;;  %v2932_v22 = vrot.slane %v2927_v58, 4  ;;  %v2913_v6 = vor.u32 %v2911_v21, %v2910_v9  ;;  %v2915_v61 = vrot.slane %v2910_v9, 4  ;;  %4930 = vmatprep.mubr.bf16.mxu0 %v9050_v56  ;;  %6896 = vmatprep.subr.bf16.mxu0 %v7328_v37  ;;  %v7334_v34 = vld [vmem:[#allocation3 + $0x1d0] sm:$0xff]   ;;  %v3187_v13 = vld [vmem:[#allocation2 + $0x80] sm:$0x1] }
 0x258   : > { %v2563_v31 = vmax.f32 %v2485_v27, 0.0  ;;  %v6071_v50 = vpack.c.bf16 %v2565_v11, %v2565_v11  ;;  %v2566_v45 = vmax.f32 %v2496_v4, 0.0  ;;  %v2564_v48 = vmax.f32 %v2488_v15, 0.0  ;;  %v7335_v9 = vld [vmem:[#allocation3 + $0x190] sm:$0xff]  }
 0x259   : > { %v2931_v24 = vsel %vm8946_vm14, %v2923_v20, %v2930_v25  ;;  %v3174_v46 = vsel %vm8726_vm8, %v2932_v22, %v3173_v38  ;;  %v2914_v0 = vsel %vm8946_vm14, %v2906_v19, %v2913_v6  ;;  %v3167_v53 = vsel %vm8726_vm8, %v2915_v61, %v3166_v2  ;;  %v9074_v20 = vld [vmem:[#allocation2 + $0x14] sm:$0x1]  ;;  %v7337_v25 = vld [vmem:[#allocation3 + $0x170] sm:$0xff]   ;;  %v3183_v22 = vld [vmem:[#allocation2 + $0x78] sm:$0xf] }
 0x25a   : > { %3172 = vst [vmem:[#allocation2 + $0x64] sm:$0xf] %v2931_v24  ;;  %3175 = vst [vmem:[#allocation2 + $0x68] sm:$0x1] %v3174_v46  ;;  %v6069_v16 = vpack.c.bf16 %v2563_v31, %v2563_v31  ;;  %v3313_v19 = vrot.slane %v3311_v18, 4  ;;  %v3316_v21 = vrot.slane %v3314_v30, 5  ;;  %6897 = vmatpush3.bf16.msra.mxu0 %v7329_v43  ;;  %v6072_v6 = vpack.c.bf16 %v2566_v45, %v2566_v45 }
 0x25b   : > { %3165 = vst [vmem:[#allocation2 + $0x58] sm:$0xf] %v2914_v0  ;;  %3168 = vst [vmem:[#allocation2 + $0x5c] sm:$0x1] %v3167_v53  ;;  %v3320_v39 = vshll.u32 %v9021_v3, 16  ;;  %v9080_v58 = vpop.f32.mrb[152].mxu0  ;;  %v6070_v61 = vpack.c.bf16 %v2564_v48, %v2564_v48  ;;  %6898 = vmatprep.subr.bf16.mxu0 %v7334_v34  ;;  %6794 = vmatprep.subr.bf16.mxu1 %v7337_v25 }
 0x25c   : > { %v2951_v37 = vshrl.u32 %v6071_v50, 16  ;;  %v2954_v38 = vshll.u32 %v6071_v50, 16  ;;  %v2934_v2 = vshrl.u32 %v6069_v16, 16  ;;  %v3326_v41 = vrot.slane %v3324_v40, 4  ;;  %v9082_v27 = vpop.f32.mrb[153].mxu0  ;;  %v7338_v40 = vld [vmem:[#allocation3 + $0x130] sm:$0xff]  }
 0x25d   : > { %v3317_v11 = vor.u32 %v3316_v21, %v3313_v19  ;;  %v9084_v31 = vrot.slane %v3320_v39, 5  ;;  %v9086_v18 = vpop.f32.mrb[154].mxu0  ;;  %v2937_v15 = vshll.u32 %v6069_v16, 16  ;;  %v3330_v24 = vshll.u32 %v9074_v20, 16  ;;  %v3176_v43 = vld [vmem:[#allocation2 + $0x6c] sm:$0xf]  ;;  %6795 = vmatpush3.bf16.msra.mxu1 %v7338_v40 }
 0x25e   : > { %v2953_v30 = vrot.slane %v2951_v37, 7  ;;  %v2936_v4 = vrot.slane %v2934_v2, 7  ;;  %v9089_v46 = vpop.f32.mrb[155].mxu0  ;;  %v2959_v0 = vshrl.u32 %v6072_v6, 16  ;;  %v2962_v53 = vshll.u32 %v6072_v6, 16  ;;  %6899 = vmatpush3.bf16.msra.mxu0 %v7335_v9 }
 0x25f   : > { %v2942_v50 = vshrl.u32 %v6070_v61, 16  ;;  %v5904_v45 = vrot.slane %v8999_v47, 9  ;;  %v2945_v39 = vshll.u32 %v6070_v61, 16  ;;  %v3318_v37 = vrot.slane %v3317_v11, 4  ;;  %v3180_v47 = vld [vmem:[#allocation2 + $0x74] sm:$0x1] }
 0x260   : > { %v2956_v48 = vor.u32 %v2954_v38, %v2953_v30  ;;  %v2957_v19 = vrot.slane %v2953_v30, 4  ;;  %v2939_v21 = vor.u32 %v2937_v15, %v2936_v4  ;;  %v2961_v34 = vrot.slane %v2959_v0, 7  ;;  %v9098_v11 = vld [vmem:[#allocation2 + $0x24] sm:$0xf]  ;;  %v9105_v0 = vld [vmem:[#allocation2 + $0x28] sm:$0xf] }
 0x261   : > { %v2944_v16 = vrot.slane %v2942_v50, 7  ;;  %v3327_v2 = vor.u32 %v3326_v41, %v9084_v31  ;;  %v2940_v29 = vrot.slane %v2936_v4, 4  ;;  %v3727_v38 = vrot.slane %v9021_v3, 5 }
 0x262   : > { %v3184_v25 = vsel %vm8939_vm13, %v2956_v48, %v3183_v22  ;;  %v3177_v6 = vsel %vm8939_vm13, %v2939_v21, %v3176_v43  ;;  %v2964_v9 = vor.u32 %v2962_v53, %v2961_v34  ;;  %v2966_v61 = vrot.slane %v2961_v34, 4  ;;  %v9100_v41 = vpop.f32.mrb[156].mxu0 }
 0x263   : > { %3185 = vst [vmem:[#allocation2 + $0x78] sm:$0xf] %v3184_v25  ;;  %3178 = vst [vmem:[#allocation2 + $0x6c] sm:$0xf] %v3177_v6  ;;  %v2947_v30 = vor.u32 %v2945_v39, %v2944_v16  ;;  %v2949_v15 = vrot.slane %v2944_v16, 4  ;;  %v3323_v22 = vsel %vm7702_vm4, %v3318_v37, %v9084_v31  ;;  %v3328_v4 = vrot.slane %v3327_v2, 4 }
 0x264   : > { %v3332_v40 = vrot.slane %v3330_v24, 5  ;;  %v3729_v43 = vrot.slane %v3727_v38, 4  ;;  %v9107_v3 = vpop.f32.mrb[157].mxu0  ;;  %v2965_v53 = vsel %vm8946_vm14, %v2957_v19, %v2964_v9  ;;  %v3188_v50 = vsel %vm8726_vm8, %v2966_v61, %v3187_v13  ;;  %v7340_v24 = vld [vmem:[#allocation3 + $0x1d8] sm:$0xff]   ;;  %v9125_v16 = vld [vmem:[#allocation2 + $0x20] sm:$0x1] }
 0x265   : > { %v2948_v48 = vsel %vm8946_vm14, %v2940_v29, %v2947_v30  ;;  %v3181_v21 = vsel %vm8726_vm8, %v2949_v15, %v3180_v47  ;;  %v9117_v31 = vpop.f32.mrb[158].mxu0  ;;  %v7341_v39 = vld [vmem:[#allocation3 + $0x198] sm:$0xff]   ;;  %3186 = vst [vmem:[#allocation2 + $0x7c] sm:$0xf] %v2965_v53  ;;  %3189 = vst [vmem:[#allocation2 + $0x80] sm:$0x1] %v3188_v50  ;;  %v3728_v13 = vsel %vm7711_vm5, %v5904_v45, %v3727_v38  ;;  %6900 = vmatprep.subr.bf16.mxu0 %v7340_v24 }
 0x266   : > { %3179 = vst [vmem:[#allocation2 + $0x70] sm:$0xf] %v2948_v48  ;;  %3182 = vst [vmem:[#allocation2 + $0x74] sm:$0x1] %v3181_v21  ;;  %v3333_v19 = vsel %vm7702_vm4, %v3328_v4, %v3332_v40  ;;  %v3730_v34 = vrot.slane %v9074_v20, 5  ;;  %v3359_v29 = vshrl.u32 %v9098_v11, 16  ;;  %v9134_v6 = vcombine.low %v9098_v11, %v9105_v0  ;;  %6901 = vmatpush3.bf16.msra.mxu0 %v7341_v39 }
 0x267   : > { %v9127_v37 = vpop.f32.mrb[159].mxu0  ;;  %v9129_v2 = vcombine.low %v3323_v22, %v3333_v19  ;;  %v3362_v25 = vshll.u32 %v9098_v11, 16  ;;  %v3337_v47 = vrot.slane %v3335_v36, 4  ;;  %v10317_v45 = vshll.u32 %v9025_v42, 16  ;;  %v7342_v15 = vld [vmem:[#allocation3 + $0x1e0] sm:$0xff]   ;;  %v7344_v19 = vld [vmem:[#allocation3 + $0x178] sm:$0xff]  }
 0x268   : > { %v3731_v20 = vsel %vm7711_vm5, %v3729_v43, %v3730_v34  ;;  %v3344_v9 = vshll.u32 %v9027_v51, 16  ;;  %v10318_v61 = vshrl.u32 %v9027_v51, 16  ;;  %v3354_v36 = vshll.u32 %v9125_v16, 16  ;;  %6902 = vmatprep.subr.bf16.mxu0 %v7342_v15  ;;  %6796 = vmatprep.subr.bf16.mxu1 %v7344_v19 }
 0x269   : > { %v3340_v38 = vrot.slane %v10317_v45, 5  ;;  %4769 = vmatprep.mubr.bf16.mxu1 %v9129_v2  ;;  %v9146_v22 = vcombine.low %v3728_v13, %v3731_v20  ;;  %v2509_v4 = vadd.f32 %v9030_v32, %v8897_v23  ;;  %v2501_v40 = vadd.f32 %v9040_v55, %v8883_v49  ;;  %v7345_v13 = vld [vmem:[#allocation3 + $0x1a0] sm:$0xff]  }
 0x26a   : > { %v3350_v30 = vrot.slane %v10318_v61, 4  ;;  %4770 = vmatmul.mubr.bf16.gmra.mrb[132].mxu1 %v9038_v12  ;;  %v3346_v53 = vrot.slane %v3344_v9, 5  ;;  %v2512_v50 = vadd.f32 %v9044_v8, %v8899_v33  ;;  %v2504_v48 = vadd.f32 %v9056_v7, %v8885_v60  ;;  %6903 = vmatpush3.bf16.msra.mxu0 %v7345_v13 }
 0x26b   : > { %v3341_v43 = vor.u32 %v3340_v38, %v3337_v47  ;;  %4931 = vmatmul.mubr.bf16.gmra.mrb[164].mxu0 %v9146_v22  ;;  %v3372_v21 = vshrl.u32 %v9105_v0, 16  ;;  %v3356_v24 = vrot.slane %v3354_v36, 5  ;;  %v2569_v23 = vmax.f32 %v2509_v4, 0.0  ;;  %v7346_v38 = vld [vmem:[#allocation3 + $0x138] sm:$0xff]   ;;  %v7347_v36 = vld [vmem:[#allocation3 + $0x1e8] sm:$0xff]  }
 0x26c   : > { %v2567_v32 = vmax.f32 %v2501_v40, 0.0  ;;  %4938 = vmatprep.mubr.bf16.mxu0 %v9134_v6  ;;  %v3351_v12 = vor.u32 %v3350_v30, %v3346_v53  ;;  %v2570_v55 = vmax.f32 %v2512_v50, 0.0  ;;  %v2568_v39 = vmax.f32 %v2504_v48, 0.0  ;;  %v7348_v4 = vld [vmem:[#allocation3 + $0x1a8] sm:$0xff]   ;;  %6797 = vmatpush3.bf16.msra.mxu1 %v7346_v38  ;;  %v3194_v38 = vld [vmem:[#allocation2 + $0x8c] sm:$0x1] }
 0x26d   : > { %v3342_v49 = vrot.slane %v3341_v43, 4  ;;  %v6075_v33 = vpack.c.bf16 %v2569_v23, %v2569_v23  ;;  %v5905_v60 = vrot.slane %v9025_v42, 9  ;;  %v3734_v7 = vrot.slane %v9027_v51, 5  ;;  %v3197_v51 = vld [vmem:[#allocation2 + $0x90] sm:$0xf]  ;;  %6904 = vmatprep.subr.bf16.mxu0 %v7347_v36 }
 0x26e   : > { %v6073_v8 = vpack.c.bf16 %v2567_v32, %v2567_v32  ;;  %v3352_v34 = vrot.slane %v3351_v12, 4  ;;  %v6076_v47 = vpack.c.bf16 %v2570_v55, %v2570_v55  ;;  %v6074_v20 = vpack.c.bf16 %v2568_v39, %v2568_v39  ;;  %v3190_v12 = vld [vmem:[#allocation2 + $0x84] sm:$0xf]  ;;  %v3201_v55 = vld [vmem:[#allocation2 + $0x98] sm:$0x1]  ;;  %6905 = vmatpush3.bf16.msra.mxu0 %v7348_v4 }
 0x26f   : > { %v3737_v45 = vrot.slane %v9125_v16, 5  ;;  %v3347_v9 = vsel %vm7702_vm4, %v3342_v49, %v3346_v53  ;;  %v2985_v61 = vshrl.u32 %v6075_v33, 16  ;;  %v2988_v30 = vshll.u32 %v6075_v33, 16  ;;  %v7349_v16 = vld [vmem:[#allocation3 + $0x1f0] sm:$0xff]  }
 0x270   : > { %v2968_v15 = vshrl.u32 %v6073_v8, 16  ;;  %v3357_v42 = vsel %vm7702_vm4, %v3352_v34, %v3356_v24  ;;  %v2971_v40 = vshll.u32 %v6073_v8, 16  ;;  %v2993_v43 = vshrl.u32 %v6076_v47, 16  ;;  %6906 = vmatprep.subr.bf16.mxu0 %v7349_v16 }
 0x271   : > { %v2976_v50 = vshrl.u32 %v6074_v20, 16  ;;  %v9168_v48 = vcombine.low %v3347_v9, %v3357_v42  ;;  %v2987_v23 = vrot.slane %v2985_v61, 7  ;;  %v2996_v53 = vshll.u32 %v6076_v47, 16  ;;  %v9171_v9 = vld [vmem:[#allocation2 + $0x30] sm:$0xf] }
 0x272   : > { %v2970_v32 = vrot.slane %v2968_v15, 7  ;;  %v2995_v49 = vrot.slane %v2993_v43, 7  ;;  %v2979_v19 = vshll.u32 %v6074_v20, 16  ;;  %v3736_v13 = vrot.slane %v3734_v7, 4  ;;  %v9174_v42 = vld [vmem:[#allocation2 + $0x34] sm:$0xf] }
 0x273   : > { %v2978_v39 = vrot.slane %v2976_v50, 7  ;;  %4777 = vmatprep.mubr.bf16.mxu1 %v9168_v48  ;;  %v2990_v24 = vor.u32 %v2988_v30, %v2987_v23  ;;  %v2991_v33 = vrot.slane %v2987_v23, 4  ;;  %v7350_v20 = vld [vmem:[#allocation3 + $0x1b0] sm:$0xff]   ;;  %v7351_v50 = vld [vmem:[#allocation3 + $0x1f8] sm:$0xff]  }
 0x274   : > { %v2973_v8 = vor.u32 %v2971_v40, %v2970_v32  ;;  %v2974_v34 = vrot.slane %v2970_v32, 4  ;;  %v2998_v61 = vor.u32 %v2996_v53, %v2995_v49  ;;  %v3000_v15 = vrot.slane %v2995_v49, 4  ;;  %4778 = vmatmul.mubr.bf16.gmra.mrb[136].mxu1 %v9050_v56  ;;  %6907 = vmatpush3.bf16.msra.mxu0 %v7350_v20 }
 0x275   : > { %v2981_v47 = vor.u32 %v2979_v19, %v2978_v39  ;;  %v2983_v36 = vrot.slane %v2978_v39, 4  ;;  %v3198_v4 = vsel %vm8939_vm13, %v2990_v24, %v3197_v51  ;;  %v3735_v40 = vsel %vm7711_vm5, %v5905_v60, %v3734_v7  ;;  %v7352_v60 = vld [vmem:[#allocation3 + $0x1b8] sm:$0xff]   ;;  %6908 = vmatprep.subr.bf16.mxu0 %v7351_v50 }
 0x276   : > { %v3191_v30 = vsel %vm8939_vm13, %v2973_v8, %v3190_v12  ;;  %v3738_v43 = vsel %vm7711_vm5, %v3736_v13, %v3737_v45  ;;  %3199 = vst [vmem:[#allocation2 + $0x90] sm:$0xf] %v3198_v4  ;;  %v2999_v16 = vsel %vm8946_vm14, %v2991_v33, %v2998_v61  ;;  %v3202_v23 = vsel %vm8726_vm8, %v3000_v15, %v3201_v55  ;;  %v9192_v12 = vld [vmem:[#allocation2 + $0x2c] sm:$0x1] }
 0x277   : > { %3192 = vst [vmem:[#allocation2 + $0x84] sm:$0xf] %v3191_v30  ;;  %v2982_v51 = vsel %vm8946_vm14, %v2974_v34, %v2981_v47  ;;  %v3195_v32 = vsel %vm8726_vm8, %v2983_v36, %v3194_v38  ;;  %3200 = vst [vmem:[#allocation2 + $0x94] sm:$0xf] %v2999_v16  ;;  %v9194_v7 = vcombine.low %v3735_v40, %v3738_v43  ;;  %v3383_v45 = vshrl.u32 %v9171_v9, 16 }
 0x278   : > { %3203 = vst [vmem:[#allocation2 + $0x98] sm:$0x1] %v3202_v23  ;;  %3193 = vst [vmem:[#allocation2 + $0x88] sm:$0xf] %v2982_v51  ;;  %v3386_v53 = vshll.u32 %v9171_v9, 16  ;;  %v9200_v49 = vcombine.low %v9171_v9, %v9174_v42  ;;  %v3361_v55 = vrot.slane %v3359_v29, 4  ;;  %v2525_v33 = vadd.f32 %v9080_v58, %v8917_v52  ;;  %6909 = vmatpush3.bf16.msra.mxu0 %v7352_v60 }
 0x279   : > { %3196 = vst [vmem:[#allocation2 + $0x8c] sm:$0x1] %v3195_v32  ;;  %v3364_v39 = vrot.slane %v3362_v25, 5  ;;  %v3368_v19 = vshll.u32 %v9105_v0, 16  ;;  %v3374_v13 = vrot.slane %v3372_v21, 4  ;;  %4939 = vmatmul.mubr.bf16.gmra.mrb[168].mxu0 %v9194_v7  ;;  %v3378_v24 = vshll.u32 %v9192_v12, 16 }
 0x27a   : > { %v2517_v8 = vadd.f32 %v9082_v27, %v8903_v26  ;;  %v2528_v29 = vadd.f32 %v9086_v18, %v8919_v17  ;;  %v3396_v25 = vshrl.u32 %v9174_v42, 16  ;;  %4946 = vmatprep.mubr.bf16.mxu0 %v9200_v49  ;;  %v2520_v21 = vadd.f32 %v9089_v46, %v8905_v59  ;;  %v7353_v18 = vld [vmem:[#allocation3 + $0x200] sm:$0xff]   ;;  %v3211_v51 = vld [vmem:[#allocation2 + $0xa8] sm:$0xf] }
 0x27b   : > { %v3365_v34 = vor.u32 %v3364_v39, %v3361_v55  ;;  %v3370_v38 = vrot.slane %v3368_v19, 5  ;;  %v2573_v61 = vmax.f32 %v2525_v33, 0.0  ;;  %v5906_v52 = vrot.slane %v9098_v11, 9  ;;  %7078 = vmatprep.subr.bf16.mxu1 %v7353_v18 }
 0x27c   : > { %v2571_v15 = vmax.f32 %v2517_v8, 0.0  ;;  %v2574_v47 = vmax.f32 %v2528_v29, 0.0  ;;  %v2572_v27 = vmax.f32 %v2520_v21, 0.0  ;;  %v3741_v17 = vrot.slane %v9105_v0, 5 }
 0x27d   : > { %v3366_v58 = vrot.slane %v3365_v34, 4  ;;  %v3375_v26 = vor.u32 %v3374_v13, %v3370_v38  ;;  %v3380_v36 = vrot.slane %v3378_v24, 5  ;;  %v6079_v20 = vpack.c.bf16 %v2573_v61, %v2573_v61  ;;  %v3204_v24 = vld [vmem:[#allocation2 + $0x9c] sm:$0xf] }
 0x27e   : > { %v6077_v4 = vpack.c.bf16 %v2571_v15, %v2571_v15  ;;  %v6080_v30 = vpack.c.bf16 %v2574_v47, %v2574_v47  ;;  %v6078_v46 = vpack.c.bf16 %v2572_v27, %v2572_v27  ;;  %v3744_v43 = vrot.slane %v9192_v12, 5 }
 0x27f   : > { %v3371_v40 = vsel %vm7702_vm4, %v3366_v58, %v3370_v38  ;;  %v3376_v59 = vrot.slane %v3375_v26, 4  ;;  %v3019_v50 = vshrl.u32 %v6079_v20, 16  ;;  %v3022_v11 = vshll.u32 %v6079_v20, 16  ;;  %v9232_v38 = vld [vmem:[#allocation2 + $0x3c] sm:$0xf] }
 0x280   : > { %v3002_v16 = vshrl.u32 %v6077_v4, 16  ;;  %v3742_v23 = vsel %vm7711_vm5, %v5906_v52, %v3741_v17  ;;  %v3005_v32 = vshll.u32 %v6077_v4, 16  ;;  %v3027_v60 = vshrl.u32 %v6080_v30, 16  ;;  %v3215_v52 = vld [vmem:[#allocation2 + $0xb0] sm:$0x1] }
 0x281   : > { %v3381_v0 = vsel %vm7702_vm4, %v3376_v59, %v3380_v36  ;;  %v3010_v55 = vshrl.u32 %v6078_v46, 16  ;;  %v3021_v19 = vrot.slane %v3019_v50, 7  ;;  %v3030_v12 = vshll.u32 %v6080_v30, 16  ;;  %v3208_v58 = vld [vmem:[#allocation2 + $0xa4] sm:$0x1] }
 0x282   : > { %v9230_v39 = vcombine.low %v3371_v40, %v3381_v0  ;;  %v3004_v13 = vrot.slane %v3002_v16, 7  ;;  %v3029_v33 = vrot.slane %v3027_v60, 7  ;;  %v3013_v29 = vshll.u32 %v6078_v46, 16  ;;  %v9236_v20 = vld [vmem:[#allocation2 + $0x40] sm:$0xf] }
 0x283   : > { %v3012_v8 = vrot.slane %v3010_v55, 7  ;;  %v3743_v34 = vrot.slane %v3741_v17, 4  ;;  %v3024_v21 = vor.u32 %v3022_v11, %v3021_v19  ;;  %v3025_v61 = vrot.slane %v3021_v19, 4  ;;  %v9245_v59 = vld [vmem:[#allocation2 + $0x38] sm:$0x1] }
 0x284   : > { %4785 = vmatprep.mubr.bf16.mxu1 %v9230_v39  ;;  %v3007_v15 = vor.u32 %v3005_v32, %v3004_v13  ;;  %v3008_v47 = vrot.slane %v3004_v13, 4  ;;  %v3032_v26 = vor.u32 %v3030_v12, %v3029_v33  ;;  %v3034_v27 = vrot.slane %v3029_v33, 4 }
 0x285   : > { %v3015_v18 = vor.u32 %v3013_v29, %v3012_v8  ;;  %v3017_v36 = vrot.slane %v3012_v8, 4  ;;  %4786 = vmatmul.mubr.bf16.gmra.mrb[140].mxu1 %v9134_v6  ;;  %v3212_v17 = vsel %vm8939_vm13, %v3024_v21, %v3211_v51  ;;  %v3745_v30 = vsel %vm7711_vm5, %v3743_v34, %v3744_v43 }
 0x286   : > { %v3205_v4 = vsel %vm8939_vm13, %v3007_v15, %v3204_v24  ;;  %v3407_v40 = vshrl.u32 %v9232_v38, 16  ;;  %3213 = vst [vmem:[#allocation2 + $0xa8] sm:$0xf] %v3212_v17  ;;  %v3033_v46 = vsel %vm8946_vm14, %v3025_v61, %v3032_v26  ;;  %v3216_v50 = vsel %vm8726_vm8, %v3034_v27, %v3215_v52 }
 0x287   : > { %3206 = vst [vmem:[#allocation2 + $0x9c] sm:$0xf] %v3205_v4  ;;  %v3016_v11 = vsel %vm8946_vm14, %v3008_v47, %v3015_v18  ;;  %v3209_v16 = vsel %vm8726_vm8, %v3017_v36, %v3208_v58  ;;  %3214 = vst [vmem:[#allocation2 + $0xac] sm:$0xf] %v3033_v46  ;;  %v9255_v43 = vcombine.low %v3742_v23, %v3745_v30  ;;  %v3410_v0 = vshll.u32 %v9232_v38, 16 }
 0x288   : > { %3217 = vst [vmem:[#allocation2 + $0xb0] sm:$0x1] %v3216_v50  ;;  %3207 = vst [vmem:[#allocation2 + $0xa0] sm:$0xf] %v3016_v11  ;;  %v9260_v51 = vcombine.low %v9232_v38, %v9236_v20  ;;  %v3385_v32 = vrot.slane %v3383_v45, 4  ;;  %v3388_v60 = vrot.slane %v3386_v53, 5  ;;  %v2541_v13 = vadd.f32 %v9100_v41, %v8929_v10 }
 0x289   : > { %3210 = vst [vmem:[#allocation2 + $0xa4] sm:$0x1] %v3209_v16  ;;  %v3392_v55 = vshll.u32 %v9174_v42, 16  ;;  %v3398_v19 = vrot.slane %v3396_v25, 4  ;;  %v3402_v23 = vshll.u32 %v9245_v59, 16  ;;  %4947 = vmatmul.mubr.bf16.gmra.mrb[172].mxu0 %v9255_v43  ;;  %v2533_v24 = vadd.f32 %v9107_v3, %v8923_v57 }
 0x28a   : > { %v2544_v45 = vadd.f32 %v9117_v31, %v8931_v14  ;;  %v2536_v53 = vadd.f32 %v9127_v37, %v8925_v5  ;;  %v3420_v12 = vshrl.u32 %v9236_v20, 16  ;;  %4954 = vmatprep.mubr.bf16.mxu0 %v9260_v51  ;;  %v3389_v25 = vor.u32 %v3388_v60, %v3385_v32  ;;  %v3225_v50 = vld [vmem:[#allocation2 + $0xc0] sm:$0xf]  ;;  %v3218_v32 = vld [vmem:[#allocation2 + $0xb4] sm:$0xf] }
 0x28b   : > { %v3394_v33 = vrot.slane %v3392_v55, 5  ;;  %v3404_v8 = vrot.slane %v3402_v23, 5  ;;  %v2577_v29 = vmax.f32 %v2541_v13, 0.0  ;;  %v2575_v34 = vmax.f32 %v2533_v24, 0.0 }
 0x28c   : > { %v2578_v21 = vmax.f32 %v2544_v45, 0.0  ;;  %v2576_v10 = vmax.f32 %v2536_v53, 0.0  ;;  %v3390_v41 = vrot.slane %v3389_v25, 4  ;;  %v5907_v57 = vrot.slane %v9171_v9, 9  ;;  %v3229_v53 = vld [vmem:[#allocation2 + $0xc8] sm:$0x1] }
 0x28d   : > { %v3399_v61 = vor.u32 %v3398_v19, %v3394_v33  ;;  %v3748_v14 = vrot.slane %v9174_v42, 5  ;;  %v6083_v3 = vpack.c.bf16 %v2577_v29, %v2577_v29  ;;  %v6081_v31 = vpack.c.bf16 %v2575_v34, %v2575_v34  ;;  %v3222_v25 = vld [vmem:[#allocation2 + $0xbc] sm:$0x1] }
 0x28e   : > { %v6084_v5 = vpack.c.bf16 %v2578_v21, %v2578_v21  ;;  %v6082_v37 = vpack.c.bf16 %v2576_v10, %v2576_v10  ;;  %v3395_v15 = vsel %vm7702_vm4, %v3390_v41, %v3394_v33  ;;  %v3751_v58 = vrot.slane %v9245_v59, 5  ;;  %v9296_v21 = vld [vmem:[#allocation2 + $0x48] sm:$0xf]  ;;  %v9298_v10 = vld [vmem:[#allocation2 + $0x4c] sm:$0xf] }
 0x28f   : > { %v3400_v47 = vrot.slane %v3399_v61, 4  ;;  %v3750_v52 = vrot.slane %v3748_v14, 4  ;;  %v3053_v26 = vshrl.u32 %v6083_v3, 16  ;;  %v3056_v27 = vshll.u32 %v6083_v3, 16 }
 0x290   : > { %v3036_v18 = vshrl.u32 %v6081_v31, 16  ;;  %v3749_v36 = vsel %vm7711_vm5, %v5907_v57, %v3748_v14  ;;  %v3039_v42 = vshll.u32 %v6081_v31, 16  ;;  %v3061_v17 = vshrl.u32 %v6084_v5, 16  ;;  %v3249_v14 = vld [vmem:[#allocation2 + $0x44] sm:$0x1] }
 0x291   : > { %v3405_v9 = vsel %vm7702_vm4, %v3400_v47, %v3404_v8  ;;  %v3044_v4 = vshrl.u32 %v6082_v37, 16  ;;  %v3055_v46 = vrot.slane %v3053_v26, 7  ;;  %v3064_v16 = vshll.u32 %v6084_v5, 16 }
 0x292   : > { %v9290_v30 = vcombine.low %v3395_v15, %v3405_v9  ;;  %v3038_v11 = vrot.slane %v3036_v18, 7  ;;  %v3063_v59 = vrot.slane %v3061_v17, 7  ;;  %v3047_v55 = vshll.u32 %v6082_v37, 16 }
 0x293   : > { %v3046_v60 = vrot.slane %v3044_v4, 7  ;;  %v3752_v19 = vsel %vm7711_vm5, %v3750_v52, %v3751_v58  ;;  %v3058_v23 = vor.u32 %v3056_v27, %v3055_v46  ;;  %v3059_v13 = vrot.slane %v3055_v46, 4  ;;  %v9324_v52 = vld [vmem:[#allocation2 + $0x54] sm:$0xf]  ;;  %v3252_v46 = vld [vmem:[#allocation2 + $0x50] sm:$0x1] }
 0x294   : > { %4793 = vmatprep.mubr.bf16.mxu1 %v9290_v30  ;;  %v3041_v24 = vor.u32 %v3039_v42, %v3038_v11  ;;  %v3042_v45 = vrot.slane %v3038_v11, 4  ;;  %v3066_v33 = vor.u32 %v3064_v16, %v3063_v59  ;;  %v3068_v8 = vrot.slane %v3063_v59, 4  ;;  %v9336_v59 = vld [vmem:[#allocation2 + $0x58] sm:$0xf] }
 0x295   : > { %v3049_v29 = vor.u32 %v3047_v55, %v3046_v60  ;;  %v3051_v34 = vrot.slane %v3046_v60, 4  ;;  %4794 = vmatmul.mubr.bf16.gmra.mrb[144].mxu1 %v9200_v49  ;;  %v3226_v41 = vsel %vm8939_vm13, %v3058_v23, %v3225_v50  ;;  %v9304_v57 = vcombine.low %v3749_v36, %v3752_v19 }
 0x296   : > { %v3219_v61 = vsel %vm8939_vm13, %v3041_v24, %v3218_v32  ;;  %3227 = vst [vmem:[#allocation2 + $0xc0] sm:$0xf] %v3226_v41  ;;  %v3067_v3 = vsel %vm8946_vm14, %v3059_v13, %v3066_v33  ;;  %v3230_v31 = vsel %vm8726_vm8, %v3068_v8, %v3229_v53  ;;  %v3431_v44 = vshrl.u32 %v9296_v21, 16  ;;  %v9353_v41 = vld [vmem:[#allocation2 + $0x60] sm:$0xf] }
 0x297   : > { %3220 = vst [vmem:[#allocation2 + $0xb4] sm:$0xf] %v3219_v61  ;;  %v3050_v5 = vsel %vm8946_vm14, %v3042_v45, %v3049_v29  ;;  %v3223_v37 = vsel %vm8726_vm8, %v3051_v34, %v3222_v25  ;;  %3228 = vst [vmem:[#allocation2 + $0xc4] sm:$0xf] %v3067_v3  ;;  %4955 = vmatmul.mubr.bf16.gmra.mrb[176].mxu0 %v9304_v57  ;;  %v9318_v15 = vcombine.low %v9296_v21, %v9298_v10 }
 0x298   : > { %3231 = vst [vmem:[#allocation2 + $0xc8] sm:$0x1] %v3230_v31  ;;  %3221 = vst [vmem:[#allocation2 + $0xb8] sm:$0xf] %v3050_v5  ;;  %v3409_v47 = vrot.slane %v3407_v40, 4  ;;  %v3412_v62 = vrot.slane %v3410_v0, 5  ;;  %v9350_v29 = vcombine.low %v9324_v52, %v9336_v59 }
 0x299   : > { %3224 = vst [vmem:[#allocation2 + $0xbc] sm:$0x1] %v3223_v37  ;;  %v3434_v58 = vshll.u32 %v9296_v21, 16  ;;  %v3416_v26 = vshll.u32 %v9236_v20, 16  ;;  %v3422_v27 = vrot.slane %v3420_v12, 4  ;;  %v3426_v18 = vshll.u32 %v3249_v14, 16  ;;  %4962 = vmatprep.mubr.bf16.mxu0 %v9318_v15 }
 0x29a   : > { %v3444_v36 = vshrl.u32 %v9298_v10, 16  ;;  %v3413_v9 = vor.u32 %v3412_v62, %v3409_v47  ;;  %v3755_v40 = vrot.slane %v9236_v20, 5  ;;  %v5908_v0 = vrot.slane %v9232_v38, 9  ;;  %v3255_v47 = vld [vmem:[#allocation2 + $0x5c] sm:$0x1] }
 0x29b   : > { %v3418_v42 = vrot.slane %v3416_v26, 5  ;;  %v3758_v17 = vrot.slane %v3249_v14, 5  ;;  %v3455_v4 = vshrl.u32 %v9324_v52, 16  ;;  %v3428_v11 = vrot.slane %v3426_v18, 5 }
 0x29c   : > { %v3414_v50 = vrot.slane %v3413_v9, 4  ;;  %v3757_v16 = vrot.slane %v3755_v40, 4  ;;  %v3458_v12 = vshll.u32 %v9324_v52, 16  ;;  %v3433_v60 = vrot.slane %v3431_v44, 4 }
 0x29d   : > { %v3423_v32 = vor.u32 %v3422_v27, %v3418_v42  ;;  %v3436_v55 = vrot.slane %v3434_v58, 5  ;;  %v3440_v19 = vshll.u32 %v9298_v10, 16  ;;  %v3756_v20 = vsel %vm7711_vm5, %v5908_v0, %v3755_v40 }
 0x29e   : > { %v3759_v38 = vsel %vm7711_vm5, %v3757_v16, %v3758_v17  ;;  %v3446_v23 = vrot.slane %v3444_v36, 4  ;;  %v3450_v13 = vshll.u32 %v3252_v46, 16  ;;  %v3419_v33 = vsel %vm7702_vm4, %v3414_v50, %v3418_v42 }
 0x29f   : > { %v3424_v24 = vrot.slane %v3423_v32, 4  ;;  %v9343_v45 = vcombine.low %v3756_v20, %v3759_v38  ;;  %v3437_v53 = vor.u32 %v3436_v55, %v3433_v60  ;;  %v3442_v25 = vrot.slane %v3440_v19, 5  ;;  %v9383_v60 = vld [vmem:[#allocation2 + $0x6c] sm:$0xf] }
 0x2a0   : > { %v3468_v8 = vshrl.u32 %v9336_v59, 16  ;;  %v3762_v34 = vrot.slane %v9298_v10, 5  ;;  %v5909_v31 = vrot.slane %v9296_v21, 9  ;;  %v3765_v44 = vrot.slane %v3252_v46, 5  ;;  %v9368_v21 = vld [vmem:[#allocation2 + $0x64] sm:$0xf] }
 0x2a1   : > { %v3429_v61 = vsel %vm7702_vm4, %v3424_v24, %v3428_v11  ;;  %4963 = vmatmul.mubr.bf16.gmra.mrb[180].mxu0 %v9343_v45  ;;  %v3438_v14 = vrot.slane %v3437_v53, 4  ;;  %v3447_v3 = vor.u32 %v3446_v23, %v3442_v25  ;;  %v3452_v10 = vrot.slane %v3450_v13, 5  ;;  %v3258_v23 = vld [vmem:[#allocation2 + $0x68] sm:$0x1] }
 0x2a2   : > { %v9359_v5 = vcombine.low %v3419_v33, %v3429_v61  ;;  %4970 = vmatprep.mubr.bf16.mxu0 %v9350_v29  ;;  %v3764_v37 = vrot.slane %v3762_v34, 4  ;;  %v3763_v58 = vsel %vm7711_vm5, %v5909_v31, %v3762_v34  ;;  %v3479_v26 = vshrl.u32 %v9353_v41, 16  ;;  %v9393_v33 = vld [vmem:[#allocation2 + $0x70] sm:$0xf] }
 0x2a3   : > { %v3448_v62 = vrot.slane %v3447_v3, 4  ;;  %v3457_v18 = vrot.slane %v3455_v4, 4  ;;  %v3460_v36 = vrot.slane %v3458_v12, 5  ;;  %v3464_v9 = vshll.u32 %v9336_v59, 16 }
 0x2a4   : > { %4801 = vmatprep.mubr.bf16.mxu1 %v9359_v5  ;;  %v3766_v27 = vsel %vm7711_vm5, %v3764_v37, %v3765_v44  ;;  %v3443_v40 = vsel %vm7702_vm4, %v3438_v14, %v3442_v25  ;;  %v3470_v0 = vrot.slane %v3468_v8, 4  ;;  %v3474_v17 = vshll.u32 %v3255_v47, 16 }
 0x2a5   : > { %4802 = vmatmul.mubr.bf16.gmra.mrb[148].mxu1 %v9260_v51  ;;  %v3453_v42 = vsel %vm7702_vm4, %v3448_v62, %v3452_v10  ;;  %v3482_v50 = vshll.u32 %v9353_v41, 16  ;;  %v3461_v11 = vor.u32 %v3460_v36, %v3457_v18  ;;  %v3466_v16 = vrot.slane %v3464_v9, 5 }
 0x2a6   : > { %v9376_v46 = vcombine.low %v3443_v40, %v3453_v42  ;;  %v9379_v4 = vcombine.low %v3763_v58, %v3766_v27  ;;  %v3492_v12 = vshrl.u32 %v9368_v21, 16  ;;  %v3769_v32 = vrot.slane %v9336_v59, 5  ;;  %v9416_v40 = vld [vmem:[#allocation2 + $0x78] sm:$0xf] }
 0x2a7   : > { %v9388_v55 = vcombine.low %v9353_v41, %v9368_v21  ;;  %v3462_v19 = vrot.slane %v3461_v11, 4  ;;  %v3471_v20 = vor.u32 %v3470_v0, %v3466_v16  ;;  %v5910_v38 = vrot.slane %v9324_v52, 9 }
 0x2a8   : > { %4809 = vmatprep.mubr.bf16.mxu1 %v9376_v46  ;;  %v3476_v13 = vrot.slane %v3474_v17, 5  ;;  %v3771_v24 = vrot.slane %v3769_v32, 4  ;;  %v3772_v53 = vrot.slane %v3255_v47, 5  ;;  %v3481_v25 = vrot.slane %v3479_v26, 4 }
 0x2a9   : > { %10319 = vst [vmem:[#allocation29_spill] sm:$0xff] %v9388_v55  ;;  %4971 = vmatmul.mubr.bf16.gmra.mrb[184].mxu0 %v9379_v4  ;;  %v3472_v59 = vrot.slane %v3471_v20, 4  ;;  %v3503_v8 = vshrl.u32 %v9383_v60, 16  ;;  %v3484_v34 = vrot.slane %v3482_v50, 5  ;;  %v3488_v61 = vshll.u32 %v9368_v21, 16 }
 0x2aa   : > { %4978 = vmatprep.mubr.bf16.mxu0 %v9388_v55  ;;  %v3467_v52 = vsel %vm7702_vm4, %v3462_v19, %v3466_v16  ;;  %v3506_v14 = vshll.u32 %v9383_v60, 16  ;;  %v3494_v3 = vrot.slane %v3492_v12, 4  ;;  %v3498_v31 = vshll.u32 %v3258_v23, 16  ;;  %v9421_v12 = vld [vmem:[#allocation2 + $0x7c] sm:$0xf] }
 0x2ab   : > { %v3477_v37 = vsel %vm7702_vm4, %v3472_v59, %v3476_v13  ;;  %v3773_v44 = vsel %vm7711_vm5, %v3771_v24, %v3772_v53  ;;  %v3485_v47 = vor.u32 %v3484_v34, %v3481_v25  ;;  %v3490_v62 = vrot.slane %v3488_v61, 5 }
 0x2ac   : > { %v9405_v10 = vcombine.low %v3467_v52, %v3477_v37  ;;  %v3516_v58 = vshrl.u32 %v9393_v33, 16  ;;  %v3776_v26 = vrot.slane %v9368_v21, 5  ;;  %v3770_v27 = vsel %vm7711_vm5, %v5910_v38, %v3769_v32  ;;  %v3261_v21 = vld [vmem:[#allocation2 + $0x74] sm:$0x1]  ;;  %v3264_v37 = vld [vmem:[#allocation2 + $0x80] sm:$0x1] }
 0x2ad   : > { %4810 = vmatmul.mubr.bf16.gmra.mrb[152].mxu1 %v9318_v15  ;;  %v9413_v18 = vcombine.low %v9383_v60, %v9393_v33  ;;  %v3495_v36 = vor.u32 %v3494_v3, %v3490_v62  ;;  %v5911_v9 = vrot.slane %v9353_v41, 9  ;;  %v9419_v42 = vcombine.low %v3770_v27, %v3773_v44 }
 0x2ae   : > { %4817 = vmatprep.mubr.bf16.mxu1 %v9405_v10  ;;  %v3486_v0 = vrot.slane %v3485_v47, 4  ;;  %v3500_v17 = vrot.slane %v3498_v31, 5  ;;  %v3778_v50 = vrot.slane %v3776_v26, 4  ;;  %v3779_v16 = vrot.slane %v3258_v23, 5 }
 0x2af   : > { %10320 = vst [vmem:[#allocation21_spill] sm:$0xff] %v9413_v18  ;;  %10321 = vst [vmem:[#allocation28_spill] sm:$0xff] %v9419_v42  ;;  %v3496_v11 = vrot.slane %v3495_v36, 4  ;;  %v3505_v32 = vrot.slane %v3503_v8, 4  ;;  %v3508_v19 = vrot.slane %v3506_v14, 5  ;;  %v3527_v41 = vshrl.u32 %v9416_v40, 16 }
 0x2b0   : > { %v3530_v20 = vshll.u32 %v9416_v40, 16  ;;  %v3512_v38 = vshll.u32 %v9393_v33, 16  ;;  %v3518_v13 = vrot.slane %v3516_v58, 4  ;;  %v3780_v23 = vsel %vm7711_vm5, %v3778_v50, %v3779_v16 }
 0x2b1   : > { %4979 = vmatmul.mubr.bf16.gmra.mrb[188].mxu0 %v9419_v42  ;;  %v3501_v24 = vsel %vm7702_vm4, %v3496_v11, %v3500_v17  ;;  %v3509_v53 = vor.u32 %v3508_v19, %v3505_v32  ;;  %v3522_v25 = vshll.u32 %v3261_v21, 16  ;;  %v3491_v59 = vsel %vm7702_vm4, %v3486_v0, %v3490_v62  ;;  %v9444_v62 = vld [vmem:[#allocation2 + $0x84] sm:$0xf]  ;;  %v9446_v0 = vld [vmem:[#allocation2 + $0x88] sm:$0xf] }
 0x2b2   : > { %4986 = vmatprep.mubr.bf16.mxu0 %v9413_v18  ;;  %v3540_v8 = vshrl.u32 %v9421_v12, 16  ;;  %v3514_v34 = vrot.slane %v3512_v38, 5  ;;  %v3783_v61 = vrot.slane %v9393_v33, 5  ;;  %v9436_v52 = vcombine.low %v3491_v59, %v3501_v24 }
 0x2b3   : > { %v3777_v14 = vsel %vm7711_vm5, %v5911_v9, %v3776_v26  ;;  %v3510_v44 = vrot.slane %v3509_v53, 4  ;;  %v3524_v47 = vrot.slane %v3522_v25, 5  ;;  %v3529_v58 = vrot.slane %v3527_v41, 4 }
 0x2b4   : > { %10322 = vst [vmem:[#allocation33_spill] sm:$0xff] %v9436_v52  ;;  %v9441_v3 = vcombine.low %v3777_v14, %v3780_v23  ;;  %v3519_v31 = vor.u32 %v3518_v13, %v3514_v34  ;;  %v3532_v27 = vrot.slane %v3530_v20, 5  ;;  %v3785_v36 = vrot.slane %v3783_v61, 4 }
 0x2b5   : > { %4818 = vmatmul.mubr.bf16.gmra.mrb[156].mxu1 %v9350_v29  ;;  %v3536_v26 = vshll.u32 %v9421_v12, 16  ;;  %v3542_v9 = vrot.slane %v3540_v8, 4  ;;  %v9451_v17 = vcombine.low %v9416_v40, %v9421_v12  ;;  %v5912_v50 = vrot.slane %v9383_v60, 9  ;;  %v9471_v8 = vld [vmem:[#allocation2 + $0x90] sm:$0xf] }
 0x2b6   : > { %10323 = vst [vmem:[#allocation25_spill] sm:$0xff] %v9441_v3  ;;  %4825 = vmatprep.mubr.bf16.mxu1 %v9436_v52  ;;  %v3520_v33 = vrot.slane %v3519_v31, 4  ;;  %v3786_v16 = vrot.slane %v3261_v21, 5  ;;  %v3551_v32 = vshrl.u32 %v9444_v62, 16  ;;  %v3554_v41 = vshll.u32 %v9444_v62, 16 }
 0x2b7   : > { %10324 = vst [vmem:[#allocation34_spill] sm:$0xff] %v9451_v17  ;;  %v3538_v19 = vrot.slane %v3536_v26, 5  ;;  %v3564_v20 = vshrl.u32 %v9446_v0, 16  ;;  %v3533_v38 = vor.u32 %v3532_v27, %v3529_v58  ;;  %v3546_v13 = vshll.u32 %v3264_v37, 16  ;;  %v3267_v27 = vld [vmem:[#allocation2 + $0x8c] sm:$0x1] }
 0x2b8   : > { %v3525_v11 = vsel %vm7702_vm4, %v3520_v33, %v3524_v47  ;;  %v3515_v60 = vsel %vm7702_vm4, %v3510_v44, %v3514_v34  ;;  %v3787_v24 = vsel %vm7711_vm5, %v3785_v36, %v3786_v16  ;;  %v3790_v21 = vrot.slane %v9421_v12, 5  ;;  %v9477_v47 = vld [vmem:[#allocation2 + $0x94] sm:$0xf] }
 0x2b9   : > { %4987 = vmatmul.mubr.bf16.gmra.mrb[192].mxu0 %v9441_v3  ;;  %v3543_v23 = vor.u32 %v3542_v9, %v3538_v19  ;;  %v9466_v53 = vcombine.low %v3515_v60, %v3525_v11  ;;  %v3784_v25 = vsel %vm7711_vm5, %v5912_v50, %v3783_v61  ;;  %v3560_v14 = vshll.u32 %v9446_v0, 16 }
 0x2ba   : > { %4994 = vmatprep.mubr.bf16.mxu0 %v9451_v17  ;;  %v9475_v34 = vcombine.low %v3784_v25, %v3787_v24  ;;  %v3534_v31 = vrot.slane %v3533_v38, 4  ;;  %v3548_v44 = vrot.slane %v3546_v13, 5  ;;  %v3566_v12 = vrot.slane %v3564_v20, 4 }
 0x2bb   : > { %10325 = vst [vmem:[#allocation38_spill] sm:$0xff] %v9466_v53  ;;  %v3544_v59 = vrot.slane %v3543_v23, 4  ;;  %v3792_v58 = vrot.slane %v3790_v21, 4  ;;  %v3553_v33 = vrot.slane %v3551_v32, 4  ;;  %v3556_v36 = vrot.slane %v3554_v41, 5 }
 0x2bc   : > { %10326 = vst [vmem:[#allocation30_spill] sm:$0xff] %v9475_v34  ;;  %v3562_v26 = vrot.slane %v3560_v14, 5  ;;  %v9481_v61 = vcombine.low %v9444_v62, %v9446_v0  ;;  %v3793_v50 = vrot.slane %v3264_v37, 5  ;;  %v3588_v11 = vshrl.u32 %v9477_v47, 16  ;;  %v9502_v14 = vld [vmem:[#allocation2 + $0xa0] sm:$0xf] }
 0x2bd   : > { %4826 = vmatmul.mubr.bf16.gmra.mrb[160].mxu1 %v9388_v55  ;;  %v3549_v9 = vsel %vm7702_vm4, %v3544_v59, %v3548_v44  ;;  %v5913_v20 = vrot.slane %v9416_v40, 9  ;;  %v3575_v32 = vshrl.u32 %v9471_v8, 16  ;;  %v3578_v41 = vshll.u32 %v9471_v8, 16 }
 0x2be   : > { %4833 = vmatprep.mubr.bf16.mxu1 %v9466_v53  ;;  %10327 = vst [vmem:[#allocation39_spill] sm:$0xff] %v9481_v61  ;;  %v3567_v16 = vor.u32 %v3566_v12, %v3562_v26  ;;  %v3570_v38 = vshll.u32 %v3267_v27, 16  ;;  %v3539_v13 = vsel %vm7702_vm4, %v3534_v31, %v3538_v19  ;;  %v3794_v60 = vsel %vm7711_vm5, %v3792_v58, %v3793_v50 }
 0x2bf   : > { %v3557_v24 = vor.u32 %v3556_v36, %v3553_v33  ;;  %v3797_v37 = vrot.slane %v9446_v0, 5  ;;  %v9496_v23 = vcombine.low %v3539_v13, %v3549_v9  ;;  %v3584_v25 = vshll.u32 %v9477_v47, 16  ;;  %v9509_v33 = vld [vmem:[#allocation2 + $0x9c] sm:$0xf] }
 0x2c0   : > { %v3791_v40 = vsel %vm7711_vm5, %v5913_v20, %v3790_v21  ;;  %v3568_v59 = vrot.slane %v3567_v16, 4  ;;  %v3590_v44 = vrot.slane %v3588_v11, 4  ;;  %v3572_v31 = vrot.slane %v3570_v38, 5  ;;  %v3270_v11 = vld [vmem:[#allocation2 + $0x98] sm:$0x1] }
 0x2c1   : > { %4995 = vmatmul.mubr.bf16.gmra.mrb[196].mxu0 %v9475_v34  ;;  %10328 = vst [vmem:[#allocation43_spill] sm:$0xff] %v9496_v23  ;;  %v9505_v19 = vcombine.low %v3791_v40, %v3794_v60  ;;  %v9507_v12 = vrot.slane %v3584_v25, 5  ;;  %v3558_v0 = vrot.slane %v3557_v24, 4  ;;  %v3799_v58 = vrot.slane %v3797_v37, 4 }
 0x2c2   : > { %5002 = vmatprep.mubr.bf16.mxu0 %v9481_v61  ;;  %v3577_v36 = vrot.slane %v3575_v32, 4  ;;  %v3580_v9 = vrot.slane %v3578_v41, 5  ;;  %v9513_v21 = vcombine.low %v9471_v8, %v9477_v47  ;;  %v3612_v50 = vshrl.u32 %v9502_v14, 16 }
 0x2c3   : > { %10329 = vst [vmem:[#allocation35_spill] sm:$0xff] %v9505_v19  ;;  %v3573_v16 = vsel %vm7702_vm4, %v3568_v59, %v3572_v31  ;;  %v5914_v20 = vrot.slane %v9444_v62, 9  ;;  %v3800_v38 = vrot.slane %v3267_v27, 5  ;;  %v3591_v13 = vor.u32 %v3590_v44, %v9507_v12 }
 0x2c4   : > { %v3599_v32 = vshrl.u32 %v9509_v33, 16  ;;  %v3602_v41 = vshll.u32 %v9509_v33, 16  ;;  %v3804_v60 = vrot.slane %v9477_v47, 5  ;;  %v3608_v24 = vshll.u32 %v9502_v14, 16 }
 0x2c5   : > { %4834 = vmatmul.mubr.bf16.gmra.mrb[164].mxu1 %v9413_v18  ;;  %v3563_v25 = vsel %vm7702_vm4, %v3558_v0, %v3562_v26  ;;  %v3801_v40 = vsel %vm7711_vm5, %v3799_v58, %v3800_v38  ;;  %v3581_v62 = vor.u32 %v3580_v9, %v3577_v36  ;;  %v3594_v27 = vshll.u32 %v3270_v11, 16  ;;  %v9541_v0 = vld [vmem:[#allocation2 + $0xa8] sm:$0xf]  ;;  %v9543_v58 = vld [vmem:[#allocation2 + $0xac] sm:$0xf]  ;;  %v6574_v36 = vpop.f32.mrb[128].mxu1 }
 0x2c6   : > { %4841 = vmatprep.mubr.bf16.mxu1 %v9496_v23  ;;  %v9530_v59 = vcombine.low %v3563_v25, %v3573_v16  ;;  %v9532_v44 = vrot.slane %v3608_v24, 5  ;;  %v3614_v31 = vrot.slane %v3612_v50, 4  ;;  %v3798_v47 = vsel %vm7711_vm5, %v5914_v20, %v3797_v37  ;;  %v3273_v16 = vld [vmem:[#allocation2 + $0xa4] sm:$0x1]  ;;  %v6575_v25 = vpop.f32.mrb[129].mxu1 }
 0x2c7   : > { %v9539_v28 = vcombine.low %v9509_v33, %v9502_v14  ;;  %v3592_v26 = vrot.slane %v3591_v13, 4  ;;  %v9546_v9 = vcombine.low %v3798_v47, %v3801_v40  ;;  %v3806_v50 = vrot.slane %v3804_v60, 4 }
 0x2c8   : > { %10330 = vst [vmem:[#allocation42_spill] sm:$0xff] %v9530_v59  ;;  %v3601_v38 = vrot.slane %v3599_v32, 4  ;;  %v3604_v24 = vrot.slane %v3602_v41, 5  ;;  %v3582_v37 = vrot.slane %v3581_v62, 4  ;;  %v3596_v20 = vrot.slane %v3594_v27, 5 }
 0x2c9   : > { %5003 = vmatmul.mubr.bf16.gmra.mrb[200].mxu0 %v9505_v19  ;;  %10331 = vst [vmem:[#allocation53_spill] sm:$0xff] %v9546_v9  ;;  %v5915_v19 = vrot.slane %v9471_v8, 9  ;;  %v3811_v13 = vrot.slane %v9502_v14, 5  ;;  %v3807_v34 = vrot.slane %v3270_v11, 5  ;;  %v3636_v23 = vshrl.u32 %v9543_v58, 16 }
 0x2ca   : > { %5010 = vmatprep.mubr.bf16.mxu0 %v9513_v21  ;;  %v3615_v18 = vor.u32 %v3614_v31, %v9532_v44  ;;  %v3632_v40 = vshll.u32 %v9543_v58, 16  ;;  %v3597_v32 = vsel %vm7702_vm4, %v3592_v26, %v3596_v20  ;;  %v3623_v41 = vshrl.u32 %v9541_v0, 16 }
 0x2cb   : > { %v3626_v8 = vshll.u32 %v9541_v0, 16  ;;  %v3805_v14 = vsel %vm7711_vm5, %v5915_v19, %v3804_v60  ;;  %v3808_v11 = vsel %vm7711_vm5, %v3806_v50, %v3807_v34  ;;  %v3605_v62 = vor.u32 %v3604_v24, %v3601_v38  ;;  %v9575_v60 = vld [vmem:[#allocation2 + $0xb0] sm:$0x1]  ;;  %v9579_v38 = vld [vmem:[#allocation2 + $0xc0] sm:$0xf] }
 0x2cc   : > { %v3618_v27 = vshll.u32 %v3273_v16, 16  ;;  %v3587_v31 = vsel %vm7702_vm4, %v3582_v37, %v9507_v12  ;;  %v9568_v26 = vcombine.low %v9541_v0, %v9543_v58  ;;  %v5916_v20 = vrot.slane %v9509_v33, 9  ;;  %v9584_v37 = vld [vmem:[#allocation2 + $0xb8] sm:$0xf] }
 0x2cd   : > { %4842 = vmatmul.mubr.bf16.gmra.mrb[168].mxu1 %v9451_v17  ;;  %v6577_v17 = vpop.f32.mrb[130].mxu1  ;;  %v9573_v3 = vcombine.low %v3587_v31, %v3597_v32  ;;  %v3616_v19 = vrot.slane %v3615_v18, 4  ;;  %v9577_v34 = vrot.slane %v3632_v40, 5  ;;  %v3638_v50 = vrot.slane %v3636_v23, 4  ;;  %v9590_v31 = vld [vmem:[#allocation2 + $0xc4] sm:$0xf] }
 0x2ce   : > { %4849 = vmatprep.mubr.bf16.mxu1 %v9530_v59  ;;  %v6578_v47 = vpop.f32.mrb[131].mxu1  ;;  %v9571_v59 = vld [vmem:[#allocation2 + $0xb4] sm:$0xf]  ;;  %v9582_v12 = vcombine.low %v3805_v14, %v3808_v11  ;;  %v3814_v24 = vrot.slane %v3273_v16, 5  ;;  %v3625_v33 = vrot.slane %v3623_v41, 4  ;;  %v3628_v53 = vrot.slane %v3626_v8, 5 }
 0x2cf   : > { %10332 = vst [vmem:[#allocation54_spill] sm:$0xff] %v9573_v3  ;;  %v3606_v32 = vrot.slane %v3605_v62, 4  ;;  %v3620_v18 = vrot.slane %v3618_v27, 5  ;;  %v3812_v40 = vsel %vm7711_vm5, %v5916_v20, %v3811_v13  ;;  %v3647_v23 = vshrl.u32 %v9571_v59, 16 }
 0x2d0   : > { %10333 = vst [vmem:[#allocation55_spill] sm:$0xff] %v9582_v12  ;;  %v3650_v16 = vshll.u32 %v9571_v59, 16  ;;  %v3831_v11 = vshrl.u32 %v9579_v38, 16  ;;  %v3834_v41 = vshll.u32 %v9579_v38, 16  ;;  %v3660_v62 = vshrl.u32 %v9584_v37, 16 }
 0x2d1   : > { %5011 = vmatmul.mubr.bf16.gmra.mrb[204].mxu0 %v9546_v9  ;;  %v3813_v9 = vrot.slane %v3811_v13, 4  ;;  %v3621_v8 = vsel %vm7702_vm4, %v3616_v19, %v3620_v18  ;;  %v3639_v13 = vor.u32 %v3638_v50, %v9577_v34  ;;  %v3656_v27 = vshll.u32 %v9584_v37, 16 }
 0x2d2   : > { %5018 = vmatprep.mubr.bf16.mxu0 %v9539_v28  ;;  %v3629_v20 = vor.u32 %v3628_v53, %v3625_v33  ;;  %v3611_v19 = vsel %vm7702_vm4, %v3606_v32, %v9532_v44  ;;  %v9615_v50 = vcombine.low %v9571_v59, %v9584_v37  ;;  %v3818_v53 = vrot.slane %v9543_v58, 5 }
 0x2d3   : > { %v3815_v14 = vsel %vm7711_vm5, %v3813_v9, %v3814_v24  ;;  %v3642_v9 = vshll.u32 %v9575_v60, 16  ;;  %v3844_v24 = vshrl.u32 %v9590_v31, 16  ;;  %v9618_v33 = vcombine.low %v3611_v19, %v3621_v8 }
 0x2d4   : > { %v9611_v18 = vcombine.low %v3812_v40, %v3815_v14  ;;  %v3658_v55 = vrot.slane %v3656_v27, 5  ;;  %v3662_v42 = vrot.slane %v3660_v62, 4  ;;  %v3840_v44 = vshll.u32 %v9590_v31, 16 }
 0x2d5   : > { %4850 = vmatmul.mubr.bf16.gmra.mrb[172].mxu1 %v9481_v61  ;;  %v3836_v61 = vrot.slane %v3834_v41, 5  ;;  %v3630_v32 = vrot.slane %v3629_v20, 4  ;;  %v3644_v40 = vrot.slane %v3642_v9, 5  ;;  %v3846_v52 = vrot.slane %v3844_v24, 4  ;;  %v3279_v20 = vld [vmem:[#allocation2 + $0xbc] sm:$0x1] }
 0x2d6   : > { %4857 = vmatprep.mubr.bf16.mxu1 %v9573_v3  ;;  %v9605_v3 = vadd.f32 %v6575_v25, %v6574_v36  ;;  %v3282_v36 = vld [vmem:[#allocation2 + $0xc8] sm:$0x1]  ;;  %v3833_v25 = vrot.slane %v3831_v11, 4  ;;  %v3820_v58 = vrot.slane %v3818_v53, 4  ;;  %v3649_v8 = vrot.slane %v3647_v23, 4 }
 0x2d7   : > { %v3652_v19 = vrot.slane %v3650_v16, 5  ;;  %v5919_v41 = vrot.slane %v9579_v38, 9  ;;  %v3859_v62 = vrot.slane %v9590_v31, 5  ;;  %v3821_v27 = vrot.slane %v9575_v60, 5 }
 0x2d8   : > { %10334 = vst [vmem:[#allocation56_spill] sm:$0xff] %v9605_v3  ;;  %v3640_v3 = vrot.slane %v3639_v13, 4  ;;  %v3837_v14 = vor.u32 %v3836_v61, %v3833_v25  ;;  %v3663_v61 = vor.u32 %v3662_v42, %v3658_v55  ;;  %v3862_v25 = vrot.slane %v3282_v36, 5 }
 0x2d9   : > { %5019 = vmatmul.mubr.bf16.gmra.mrb[208].mxu0 %v9582_v12  ;;  %v9620_v12 = vadd.f32 %v6578_v47, %v6577_v17  ;;  %v3842_v17 = vrot.slane %v3840_v44, 5  ;;  %v3850_v47 = vshll.u32 %v3282_v36, 16  ;;  %v3860_v16 = vsel %vm7711_vm5, %v5919_v41, %v3859_v62 }
 0x2da   : > { %5026 = vmatprep.mubr.bf16.mxu0 %v9568_v26  ;;  %v3838_v11 = vrot.slane %v3837_v14, 4  ;;  %v3645_v13 = vsel %vm7702_vm4, %v3640_v3, %v3644_v40  ;;  %v3861_v24 = vrot.slane %v3859_v62, 4  ;;  %v3635_v3 = vsel %vm7702_vm4, %v3630_v32, %v9577_v34 }
 0x2db   : > { %v3847_v9 = vor.u32 %v3846_v52, %v3842_v17  ;;  %v5917_v60 = vrot.slane %v9541_v0, 9  ;;  %v3852_v52 = vrot.slane %v3850_v47, 5  ;;  %v3822_v44 = vsel %vm7711_vm5, %v3820_v58, %v3821_v27 }
 0x2dc   : > { %v3843_v23 = vsel %vm7702_vm4, %v3838_v11, %v3842_v17  ;;  %v3653_v40 = vor.u32 %v3652_v19, %v3649_v8  ;;  %v3666_v14 = vshll.u32 %v3279_v20, 16  ;;  %v3863_v17 = vsel %vm7711_vm5, %v3861_v24, %v3862_v25  ;;  %v9689_v24 = vld [vmem:[#allocation2 + $0xd0] sm:$0xf] }
 0x2dd   : > { %4858 = vmatmul.mubr.bf16.gmra.mrb[176].mxu1 %v9513_v21  ;;  %v3848_v42 = vrot.slane %v3847_v9, 4  ;;  %v9644_v11 = vcombine.low %v3635_v3, %v3645_v13  ;;  %v3825_v36 = vrot.slane %v9584_v37, 5  ;;  %v9649_v34 = vcombine.low %v3860_v16, %v3863_v17  ;;  %v7354_v3 = vld [vmem:[#allocation3 + $0x208] sm:$0xff]   ;;  %v7359_v17 = vld [vmem:[#allocation3 + $0x230] sm:$0xff]  }
 0x2de   : > { %4865 = vmatprep.mubr.bf16.mxu1 %v9618_v33  ;;  %v3664_v0 = vrot.slane %v3663_v61, 4  ;;  %v3819_v58 = vsel %vm7711_vm5, %v5917_v60, %v3818_v53  ;;  %v3654_v47 = vrot.slane %v3653_v40, 4  ;;  %v3668_v19 = vrot.slane %v3666_v14, 5  ;;  %v7355_v60 = vld [vmem:[#allocation3 + $0x210] sm:$0xff]   ;;  %v7356_v40 = vld [vmem:[#allocation3 + $0x218] sm:$0xff]  }
 0x2df   : > { %v3853_v41 = vsel %vm7702_vm4, %v3848_v42, %v3852_v52  ;;  %v9657_v8 = vcombine.low %v3819_v58, %v3822_v44  ;;  %v9661_v37 = vcombine.low %v9579_v38, %v9590_v31  ;;  %v3827_v62 = vrot.slane %v3825_v36, 4 }
 0x2e0   : > { %v9652_v32 = vcombine.low %v3843_v23, %v3853_v41  ;;  %v3669_v13 = vsel %vm7702_vm4, %v3664_v0, %v3668_v19  ;;  %v3828_v27 = vrot.slane %v3279_v20, 5  ;;  %v3659_v53 = vsel %vm7702_vm4, %v3654_v47, %v3658_v55  ;;  %v2640_v55 = vld [vmem:[#allocation2 + $0xcc] sm:$0x1]  ;;  %v10340_v47 = vld [vmem:[#allocation25_spill] sm:$0xff] }
 0x2e1   : > { %5027 = vmatmul.mubr.bf16.gmra.mrb[212].mxu0 %v9611_v18  ;;  %v9669_v61 = vcombine.low %v3659_v53, %v3669_v13  ;;  %v5918_v9 = vrot.slane %v9571_v59, 9  ;;  %v2696_v59 = vld [vmem:[#allocation2 + $0xd4] sm:$0x1]  ;;  %v2641_v20 = vsel %vm8726_vm8, 0, %v2640_v55  ;;  %v3893_v25 = vrot.slane %v9689_v24, 5 }
 0x2e2   : > { %5034 = vmatprep.mubr.bf16.mxu0 %v9615_v50  ;;  %v3829_v38 = vsel %vm7711_vm5, %v3827_v62, %v3828_v27  ;;  %v2697_v16 = vsel %vm8734_vm10, 0, %v2696_v59  ;;  %2642 = vst [vmem:[#allocation2 + $0xcc] sm:$0x1] %v2641_v20  ;;  %v10341_v27 = vld [vmem:[#allocation21_spill] sm:$0xff] }
 0x2e3   : > { %v3826_v31 = vsel %vm7711_vm5, %v5918_v9, %v3825_v36  ;;  %2698 = vst [vmem:[#allocation2 + $0xd4] sm:$0x1] %v2697_v16  ;;  %v3895_v1 = vrot.slane %v3893_v25, 4  ;;  %v10342_v9 = vld [vmem:[#allocation43_spill] sm:$0xff] }
 0x2e4   : > { %v9678_v23 = vcombine.low %v3826_v31, %v3829_v38  ;;  %v10344_v38 = vld [vmem:[#allocation34_spill] sm:$0xff]  ;;  %v10346_v31 = vld [vmem:[#allocation35_spill] sm:$0xff] }
 0x2e5   : > { %4866 = vmatmul.mubr.bf16.gmra.mrb[180].mxu1 %v9539_v28 }
 0x2e6   : > { %4873 = vmatprep.mubr.bf16.mxu1 %v9644_v11 }
 0x2e9   : > { %5035 = vmatmul.mubr.bf16.gmra.mrb[216].mxu0 %v9657_v8 }
 0x2ea   : > { %5042 = vmatprep.mubr.bf16.mxu0 %v9661_v37  ;;  %v9697_v42 = vld [vmem:[#allocation2 + $0xd4] sm:$0x1] }
 0x2eb   : > { %v3896_v52 = vrot.slane %v9697_v42, 5 }
 0x2ed   : > { %4874 = vmatmul.mubr.bf16.gmra.mrb[184].mxu1 %v9568_v26  ;;  %v9709_v44 = vsel %vm7711_vm5, %v3895_v1, %v3896_v52  ;;  %v10348_v52 = vld [vmem:[#allocation54_spill] sm:$0xff] }
 0x2ee   : > { %4881 = vmatprep.mubr.bf16.mxu1 %v9669_v61 }
 0x2f1   : > { %5043 = vmatmul.mubr.bf16.gmra.mrb[220].mxu0 %v9678_v23 }
 0x2f2   : > { %5244 = vmatprep.mubr.bf16.mxu0 %v9168_v48 }
 0x2f5   : > { %4882 = vmatmul.mubr.bf16.gmra.mrb[188].mxu1 %v9615_v50 }
 0x2f6   : > { %5083 = vmatprep.mubr.bf16.mxu1 %v9146_v22  ;;  %v9695_v22 = vld [vmem:[#allocation2 + $0xcc] sm:$0xf] }
 0x2f9   : > { %5245 = vmatmul.mubr.bf16.vlgmr.msra.gmra.mrb[224].mxu0 %v9050_v56  ;;  %v5920_v56 = vrot.slane %v9695_v22, 9 }
 0x2fa   : > { %5252 = vmatprep.mubr.bf16.mxu0 %v9230_v39 }
 0x2fd   : > { %5084 = vmatmul.mubr.bf16.vlgmr.msra.gmra.mrb[192].mxu1 %v9129_v2  ;;  %v9704_v2 = vsel %vm7711_vm5, %v5920_v56, %v3893_v25 }
 0x2fe   : > { %5091 = vmatprep.mubr.bf16.mxu1 %v9194_v7  ;;  %7079 = vmatpush3.bf16.msra.mxu1 %v7362_v35  ;;  %v5974_v14 = vcombine.low %v9704_v2, %v9709_v44  ;;  %v10347_v35 = vld [vmem:[#allocation39_spill] sm:$0xff] }
 0x2ff   : > { %7080 = vmatprep.subr.bf16.mxu1 %v7354_v3 }
 0x301   : > { %5253 = vmatmul.mubr.bf16.gmra.mrb[228].mxu0 %v9134_v6  ;;  %v7357_v6 = vld [vmem:[#allocation3 + $0x220] sm:$0xff]  }
 0x302   : > { %5260 = vmatprep.mubr.bf16.mxu0 %v9290_v30  ;;  %7081 = vmatpush3.bf16.msra.mxu1 %v7354_v3 }
 0x303   : > { %7082 = vmatprep.subr.bf16.mxu1 %v7355_v60 }
 0x305   : > { %5092 = vmatmul.mubr.bf16.gmra.mrb[196].mxu1 %v9168_v48  ;;  %v7360_v48 = vld [vmem:[#allocation3 + $0x238] sm:$0xff]  }
 0x306   : > { %5099 = vmatprep.mubr.bf16.mxu1 %v9255_v43  ;;  %7083 = vmatpush3.bf16.msra.mxu1 %v7355_v60 }
 0x307   : > { %7084 = vmatprep.subr.bf16.mxu1 %v7356_v40 }
 0x309   : > { %5261 = vmatmul.mubr.bf16.gmra.mrb[232].mxu0 %v9200_v49  ;;  %v10335_v49 = vld [vmem:[#allocation33_spill] sm:$0xff] }
 0x30a   : > { %5268 = vmatprep.mubr.bf16.mxu0 %v9359_v5  ;;  %7085 = vmatpush3.bf16.msra.mxu1 %v7356_v40 }
 0x30b   : > { %7086 = vmatprep.subr.bf16.mxu1 %v7357_v6 }
 0x30d   : > { %5100 = vmatmul.mubr.bf16.gmra.mrb[200].mxu1 %v9230_v39  ;;  %v10336_v39 = vld [vmem:[#allocation28_spill] sm:$0xff] }
 0x30e   : > { %5107 = vmatprep.mubr.bf16.mxu1 %v9304_v57  ;;  %7087 = vmatpush3.bf16.msra.mxu1 %v7357_v6 }
 0x30f   : > { %7088 = vmatprep.subr.bf16.mxu1 %v7358_v63 }
 0x311   : > { %5269 = vmatmul.mubr.bf16.gmra.mrb[236].mxu0 %v9260_v51  ;;  %v9734_v51 = vld [vmem:[%s10152_s4] ss:$0 sm:$0xff] }
 0x312   : > { %5276 = vmatprep.mubr.bf16.mxu0 %v9376_v46  ;;  %7089 = vmatpush3.bf16.msra.mxu1 %v7358_v63 }
 0x313   : > { %7090 = vmatprep.subr.bf16.mxu1 %v7359_v17 }
 0x315   : > { %5108 = vmatmul.mubr.bf16.gmra.mrb[204].mxu1 %v9290_v30  ;;  %v10337_v30 = vld [vmem:[#allocation29_spill] sm:$0xff] }
 0x316   : > { %5115 = vmatprep.mubr.bf16.mxu1 %v9343_v45  ;;  %7091 = vmatpush3.bf16.msra.mxu1 %v7359_v17 }
 0x317   : > { %7092 = vmatprep.subr.bf16.mxu1 %v7360_v48 }
 0x319   : > { %5277 = vmatmul.mubr.bf16.gmra.mrb[240].mxu0 %v9318_v15  ;;  %v10338_v15 = vld [vmem:[#allocation38_spill] sm:$0xff] }
 0x31a   : > { %5284 = vmatprep.mubr.bf16.mxu0 %v9405_v10  ;;  %7093 = vmatpush3.bf16.msra.mxu1 %v7360_v48 }
 0x31d   : > { %5116 = vmatmul.mubr.bf16.gmra.mrb[208].mxu1 %v9359_v5  ;;  %v10339_v5 = vld [vmem:[#allocation56_spill] sm:$0xff] }
 0x31e   : > { %5123 = vmatprep.mubr.bf16.mxu1 %v9379_v4  ;;  %v4764_v36 = vadd.f32 %v10339_v5, %v9734_v51 }
 0x321   : > { %5285 = vmatmul.mubr.bf16.gmra.mrb[244].mxu0 %v9350_v29 }
 0x322   : > { %5292 = vmatprep.mubr.bf16.mxu0 %v10335_v49 }
 0x325   : > { %5124 = vmatmul.mubr.bf16.gmra.mrb[212].mxu1 %v9376_v46  ;;  %v4767_v46 = vadd.f32 %v9620_v12, %v9734_v51  ;;  %v10345_v12 = vld [vmem:[#allocation42_spill] sm:$0xff] }
 0x326   : > { %5131 = vmatprep.mubr.bf16.mxu1 %v10336_v39 }
 0x328   : > { %v6686_v41 = vpop.f32.mrb[160].mxu0 }
 0x329   : > { %5293 = vmatmul.mubr.bf16.gmra.mrb[248].mxu0 %v10337_v30  ;;  %v6687_v29 = vpop.f32.mrb[161].mxu0  ;;  %v10349_v30 = vld [vmem:[#allocation53_spill] sm:$0xff] }
 0x32a   : > { %5300 = vmatprep.mubr.bf16.mxu0 %v10338_v15  ;;  %v6688_v0 = vadd.f32 %v6687_v29, %v6686_v41  ;;  %v6689_v58 = vpop.f32.mrb[162].mxu0 }
 0x32b   : > { %v6690_v19 = vpop.f32.mrb[163].mxu0 }
 0x32c   : > { %v9744_v62 = vadd.f32 %v6688_v0, %v4764_v36  ;;  %v6691_v13 = vadd.f32 %v6690_v19, %v6689_v58 }
 0x32d   : > { %5132 = vmatmul.mubr.bf16.gmra.mrb[216].mxu1 %v9405_v10  ;;  %v10343_v10 = vld [vmem:[#allocation30_spill] sm:$0xff] }
 0x32e   : > { %5139 = vmatprep.mubr.bf16.mxu1 %v10340_v47  ;;  %v9747_v53 = vadd.f32 %v6691_v13, %v4767_v46  ;;  %v10350_v13 = vld [vmem:[#allocation55_spill] sm:$0xff] }
 0x331   : > { %5301 = vmatmul.mubr.bf16.gmra.mrb[252].mxu0 %v10341_v27 }
 0x332   : > { %5308 = vmatprep.mubr.bf16.mxu0 %v10342_v9 }
 0x335   : > { %5140 = vmatmul.mubr.bf16.gmra.mrb[220].mxu1 %v10335_v49 }
 0x336   : > { %5147 = vmatprep.mubr.bf16.mxu1 %v10343_v10 }
 0x339   : > { %5309 = vmatmul.mubr.bf16.gmra.mrb[0].mxu0 %v10344_v38 }
 0x33a   : > { %5316 = vmatprep.mubr.bf16.mxu0 %v10345_v12 }
 0x33d   : > { %5148 = vmatmul.mubr.bf16.gmra.mrb[224].mxu1 %v10338_v15  ;;  %v6580_v55 = vpop.f32.mrb[132].mxu1 }
 0x33e   : > { %5155 = vmatprep.mubr.bf16.mxu1 %v10346_v31  ;;  %v6692_v59 = vpop.f32.mrb[164].mxu0  ;;  %v6581_v20 = vpop.f32.mrb[133].mxu1 }
 0x33f   : > { %v6693_v16 = vpop.f32.mrb[165].mxu0  ;;  %v6582_v25 = vadd.f32 %v6581_v20, %v6580_v55  ;;  %v6583_v3 = vpop.f32.mrb[134].mxu1 }
 0x340   : > { %v6694_v1 = vadd.f32 %v6693_v16, %v6692_v59  ;;  %v6695_v60 = vpop.f32.mrb[166].mxu0  ;;  %v6584_v56 = vpop.f32.mrb[135].mxu1  ;;  %v3878_v16 = vshrl.u32 %v9689_v24, 16 }
 0x341   : > { %5317 = vmatmul.mubr.bf16.gmra.mrb[4].mxu0 %v10347_v35  ;;  %v4772_v40 = vadd.f32 %v6582_v25, %v9734_v51  ;;  %v6696_v6 = vpop.f32.mrb[167].mxu0  ;;  %v6585_v63 = vadd.f32 %v6584_v56, %v6583_v3  ;;  %v3865_v25 = vshrl.u32 %v9695_v22, 16  ;;  %v3868_v3 = vshll.u32 %v9695_v22, 16 }
 0x342   : > { %5324 = vmatprep.mubr.bf16.mxu0 %v10348_v52  ;;  %v6697_v17 = vadd.f32 %v6696_v6, %v6695_v60 }
 0x343   : > { %v4775_v48 = vadd.f32 %v6585_v63, %v9734_v51  ;;  %v9760_v49 = vadd.f32 %v6694_v1, %v4772_v40  ;;  %v3880_v1 = vrot.slane %v3878_v16, 4  ;;  %v3867_v60 = vrot.slane %v3865_v25, 4 }
 0x344   : > { %v3870_v56 = vrot.slane %v3868_v3, 5 }
 0x345   : > { %5156 = vmatmul.mubr.bf16.gmra.mrb[228].mxu1 %v10342_v9  ;;  %v9764_v15 = vadd.f32 %v6697_v17, %v4775_v48 }
 0x346   : > { %5163 = vmatprep.mubr.bf16.mxu1 %v10349_v30 }
 0x347   : > { %v6586_v5 = vpop.f32.mrb[136].mxu1 }
 0x348   : > { %v6587_v36 = vpop.f32.mrb[137].mxu1 }
 0x349   : > { %5325 = vmatmul.mubr.bf16.gmra.mrb[8].mxu0 %v9513_v21  ;;  %v6588_v41 = vadd.f32 %v6587_v36, %v6586_v5  ;;  %v6589_v29 = vpop.f32.mrb[138].mxu1  ;;  %v3871_v36 = vor.u32 %v3870_v56, %v3867_v60 }
 0x34a   : > { %5332 = vmatprep.mubr.bf16.mxu0 %v9618_v33  ;;  %v6590_v46 = vpop.f32.mrb[139].mxu1 }
 0x34b   : > { %v6591_v0 = vadd.f32 %v6590_v46, %v6589_v29  ;;  %v4780_v19 = vadd.f32 %v6588_v41, %v9734_v51  ;;  %v3884_v41 = vshll.u32 %v9697_v42, 16 }
 0x34c   : > { %v6698_v58 = vpop.f32.mrb[168].mxu0 }
 0x34d   : > { %5164 = vmatmul.mubr.bf16.gmra.mrb[232].mxu1 %v10345_v12  ;;  %v6699_v27 = vpop.f32.mrb[169].mxu0  ;;  %v4783_v55 = vadd.f32 %v6591_v0, %v9734_v51  ;;  %v3874_v12 = vshll.u32 %v9689_v24, 16 }
 0x34e   : > { %5171 = vmatprep.mubr.bf16.mxu1 %v10350_v13  ;;  %v6700_v9 = vadd.f32 %v6699_v27, %v6698_v58  ;;  %v6701_v38 = vpop.f32.mrb[170].mxu0 }
 0x34f   : > { %v6702_v21 = vpop.f32.mrb[171].mxu0 }
 0x350   : > { %v6703_v59 = vadd.f32 %v6702_v21, %v6701_v38  ;;  %v9773_v20 = vadd.f32 %v6700_v9, %v4780_v19  ;;  %v3872_v9 = vrot.slane %v3871_v36, 4  ;;  %v3886_v38 = vrot.slane %v3884_v41, 5 }
 0x351   : > { %5333 = vmatmul.mubr.bf16.gmra.mrb[12].mxu0 %v9539_v28  ;;  %v3876_v28 = vrot.slane %v3874_v12, 5 }
 0x352   : > { %5340 = vmatprep.mubr.bf16.mxu0 %v9644_v11  ;;  %v9780_v35 = vadd.f32 %v6703_v59, %v4783_v55 }
 0x353   : > { %v3881_v48 = vor.u32 %v3880_v1, %v3876_v28 }
 0x355   : > { %5172 = vmatmul.mubr.bf16.gmra.mrb[236].mxu1 %v10348_v52 }
 0x356   : > { %5179 = vmatprep.mubr.bf16.mxu1 %v9611_v18 }
 0x358   : > { %v6592_v40 = vpop.f32.mrb[140].mxu1 }
 0x359   : > { %5341 = vmatmul.mubr.bf16.gmra.mrb[16].mxu0 %v9568_v26  ;;  %v6593_v6 = vpop.f32.mrb[141].mxu1  ;;  %v3882_v26 = vrot.slane %v3881_v48, 4 }
 0x35a   : > { %5348 = vmatprep.mubr.bf16.mxu0 %v9669_v61  ;;  %v6594_v63 = vadd.f32 %v6593_v6, %v6592_v40  ;;  %v6595_v17 = vpop.f32.mrb[142].mxu1 }
 0x35b   : > { %v6596_v5 = vpop.f32.mrb[143].mxu1  ;;  %v3887_v59 = vsel %vm7702_vm4, %v3882_v26, %v3886_v38 }
 0x35c   : > { %v6597_v52 = vadd.f32 %v6596_v5, %v6595_v17  ;;  %v6704_v29 = vpop.f32.mrb[172].mxu0  ;;  %v4788_v46 = vadd.f32 %v6594_v63, %v9734_v51  ;;  %v5972_v63 = vcombine.low %v9695_v22, %v9689_v24 }
 0x35d   : > { %5180 = vmatmul.mubr.bf16.gmra.mrb[240].mxu1 %v9618_v33  ;;  %v6705_v0 = vpop.f32.mrb[173].mxu0  ;;  %v3877_v33 = vsel %vm7702_vm4, %v3872_v9, %v3876_v28 }
 0x35e   : > { %5187 = vmatprep.mubr.bf16.mxu1 %v9657_v8  ;;  %v6706_v58 = vadd.f32 %v6705_v0, %v6704_v29  ;;  %v6707_v19 = vpop.f32.mrb[174].mxu0  ;;  %v4791_v27 = vadd.f32 %v6597_v52, %v9734_v51  ;;  %v5973_v16 = vcombine.low %v3877_v33, %v3887_v59 }
 0x35f   : > { %v6708_v55 = vpop.f32.mrb[175].mxu0 }
 0x360   : > { %v6709_v42 = vadd.f32 %v6708_v55, %v6707_v19  ;;  %v9792_v21 = vadd.f32 %v6706_v58, %v4788_v46 }
 0x361   : > { %5349 = vmatmul.mubr.bf16.gmra.mrb[20].mxu0 %v9615_v50 }
 0x362   : > { %5356 = vmatprep.mubr.bf16.mxu0 %v9652_v32  ;;  %v9799_v12 = vadd.f32 %v6709_v42, %v4791_v27 }
 0x365   : > { %5188 = vmatmul.mubr.bf16.gmra.mrb[244].mxu1 %v9644_v11 }
 0x366   : > { %5195 = vmatprep.mubr.bf16.mxu1 %v9678_v23 }
 0x368   : > { %v6598_v25 = vpop.f32.mrb[144].mxu1 }
 0x369   : > { %5357 = vmatmul.mubr.bf16.gmra.mrb[24].mxu0 %v9661_v37  ;;  %v6599_v50 = vpop.f32.mrb[145].mxu1 }
 0x36a   : > { %v6600_v3 = vadd.f32 %v6599_v50, %v6598_v25  ;;  %v6601_v1 = vpop.f32.mrb[146].mxu1  ;;  %5364 = vmatprep.mubr.bf16.mxu0 %v5973_v16  ;;  %v6710_v60 = vpop.f32.mrb[176].mxu0 }
 0x36b   : > { %v6602_v56 = vpop.f32.mrb[147].mxu1  ;;  %v6711_v28 = vpop.f32.mrb[177].mxu0 }
 0x36c   : > { %v4796_v54 = vadd.f32 %v6600_v3, %v9734_v51  ;;  %v6603_v40 = vadd.f32 %v6602_v56, %v6601_v1  ;;  %v6712_v6 = vadd.f32 %v6711_v28, %v6710_v60  ;;  %v6713_v11 = vpop.f32.mrb[178].mxu0 }
 0x36d   : > { %5196 = vmatmul.mubr.bf16.gmra.mrb[248].mxu1 %v9669_v61  ;;  %v6714_v37 = vpop.f32.mrb[179].mxu0 }
 0x36e   : > { %5203 = vmatprep.mubr.bf16.mxu1 %v9649_v34  ;;  %v4799_v17 = vadd.f32 %v6603_v40, %v9734_v51  ;;  %v6715_v48 = vadd.f32 %v6714_v37, %v6713_v11  ;;  %v9810_v5 = vadd.f32 %v6712_v6, %v4796_v54 }
 0x370   : > { %v9812_v36 = vadd.f32 %v6715_v48, %v4799_v17 }
 0x371   : > { %5365 = vmatmul.mubr.bf16.gmra.mrb[28].mxu0 %v5972_v63 }
 0x374   : > { %v6716_v41 = vpop.f32.mrb[180].mxu0 }
 0x375   : > { %5204 = vmatmul.mubr.bf16.gmra.mrb[252].mxu1 %v9652_v32  ;;  %v6717_v61 = vpop.f32.mrb[181].mxu0 }
 0x376   : > { %7094 = vmatprep.mubr.bf16.mxu1 %v9194_v7  ;;  %v6718_v52 = vadd.f32 %v6717_v61, %v6716_v41  ;;  %v6719_v29 = vpop.f32.mrb[182].mxu0 }
 0x377   : > { %v6720_v24 = vpop.f32.mrb[183].mxu0 }
 0x378   : > { %v6604_v22 = vpop.f32.mrb[148].mxu1  ;;  %v6721_v46 = vadd.f32 %v6720_v24, %v6719_v29 }
 0x379   : > { %v6605_v0 = vpop.f32.mrb[149].mxu1 }
 0x37a   : > { %v6606_v26 = vadd.f32 %v6605_v0, %v6604_v22  ;;  %v6607_v58 = vpop.f32.mrb[150].mxu1 }
 0x37b   : > { %v6608_v19 = vpop.f32.mrb[151].mxu1 }
 0x37c   : > { %v4804_v27 = vadd.f32 %v6606_v26, %v9734_v51  ;;  %v6609_v9 = vadd.f32 %v6608_v19, %v6607_v58  ;;  %v6722_v38 = vpop.f32.mrb[184].mxu0 }
 0x37d   : > { %7095 = vmatmul.mubr.bf16.vlgmr.msra.gmra.mrb[0].mxu1 %v9255_v43  ;;  %v6723_v55 = vpop.f32.mrb[185].mxu0 }
 0x37e   : > { %v4807_v32 = vadd.f32 %v6609_v9, %v9734_v51  ;;  %7098 = vmatprep.mubr.bf16.mxu1 %v9304_v57  ;;  %v6724_v7 = vadd.f32 %v6723_v55, %v6722_v38  ;;  %v6725_v42 = vpop.f32.mrb[186].mxu0  ;;  %v9820_v33 = vadd.f32 %v6718_v52, %v4804_v27 }
 0x37f   : > { %v6726_v59 = vpop.f32.mrb[187].mxu0 }
 0x380   : > { %v6610_v16 = vpop.f32.mrb[152].mxu1  ;;  %v6727_v25 = vadd.f32 %v6726_v59, %v6725_v42  ;;  %v9822_v50 = vadd.f32 %v6721_v46, %v4807_v32 }
 0x381   : > { %v6611_v3 = vpop.f32.mrb[153].mxu1 }
 0x382   : > { %v6612_v1 = vadd.f32 %v6611_v3, %v6610_v16  ;;  %v6613_v60 = vpop.f32.mrb[154].mxu1 }
 0x383   : > { %v6614_v56 = vpop.f32.mrb[155].mxu1 }
 0x384   : > { %v4812_v43 = vadd.f32 %v6612_v1, %v9734_v51  ;;  %v6615_v28 = vadd.f32 %v6614_v56, %v6613_v60  ;;  %v6728_v54 = vpop.f32.mrb[188].mxu0 }
 0x385   : > { %7099 = vmatmul.mubr.bf16.gmra.mrb[4].mxu1 %v9343_v45  ;;  %v6729_v57 = vpop.f32.mrb[189].mxu0 }
 0x386   : > { %v4815_v40 = vadd.f32 %v6615_v28, %v9734_v51  ;;  %7102 = vmatprep.mubr.bf16.mxu1 %v9379_v4  ;;  %v6730_v6 = vadd.f32 %v6729_v57, %v6728_v54  ;;  %v6731_v11 = vpop.f32.mrb[190].mxu0  ;;  %v9828_v63 = vadd.f32 %v6724_v7, %v4812_v43 }
 0x387   : > { %v6732_v37 = vpop.f32.mrb[191].mxu0 }
 0x388   : > { %v6616_v17 = vpop.f32.mrb[156].mxu1  ;;  %v6733_v48 = vadd.f32 %v6732_v37, %v6731_v11  ;;  %v9830_v41 = vadd.f32 %v6727_v25, %v4815_v40 }
 0x389   : > { %v6617_v61 = vpop.f32.mrb[157].mxu1 }
 0x38a   : > { %v6618_v52 = vadd.f32 %v6617_v61, %v6616_v17  ;;  %v6619_v29 = vpop.f32.mrb[158].mxu1 }
 0x38b   : > { %v6620_v24 = vpop.f32.mrb[159].mxu1 }
 0x38c   : > { %v4820_v45 = vadd.f32 %v6618_v52, %v9734_v51  ;;  %v6621_v22 = vadd.f32 %v6620_v24, %v6619_v29  ;;  %v6734_v46 = vpop.f32.mrb[192].mxu0 }
 0x38d   : > { %7103 = vmatmul.mubr.bf16.gmra.mrb[8].mxu1 %v10336_v39  ;;  %v6735_v4 = vpop.f32.mrb[193].mxu0 }
 0x38e   : > { %v4823_v0 = vadd.f32 %v6621_v22, %v9734_v51  ;;  %7106 = vmatprep.mubr.bf16.mxu1 %v10340_v47  ;;  %v6736_v26 = vadd.f32 %v6735_v4, %v6734_v46  ;;  %v6737_v58 = vpop.f32.mrb[194].mxu0  ;;  %v9836_v19 = vadd.f32 %v6730_v6, %v4820_v45 }
 0x38f   : > { %v6738_v27 = vpop.f32.mrb[195].mxu0 }
 0x390   : > { %v6622_v9 = vpop.f32.mrb[160].mxu1  ;;  %v6739_v38 = vadd.f32 %v6738_v27, %v6737_v58  ;;  %v9838_v55 = vadd.f32 %v6733_v48, %v4823_v0 }
 0x391   : > { %v6623_v32 = vpop.f32.mrb[161].mxu1 }
 0x392   : > { %v6624_v7 = vadd.f32 %v6623_v32, %v6622_v9  ;;  %v6625_v42 = vpop.f32.mrb[162].mxu1 }
 0x393   : > { %v6626_v59 = vpop.f32.mrb[163].mxu1 }
 0x394   : > { %v4828_v39 = vadd.f32 %v6624_v7, %v9734_v51  ;;  %v6627_v16 = vadd.f32 %v6626_v59, %v6625_v42  ;;  %v6740_v25 = vpop.f32.mrb[196].mxu0 }
 0x395   : > { %7107 = vmatmul.mubr.bf16.gmra.mrb[12].mxu1 %v10343_v10  ;;  %v6741_v47 = vpop.f32.mrb[197].mxu0 }
 0x396   : > { %v4831_v3 = vadd.f32 %v6627_v16, %v9734_v51  ;;  %7110 = vmatprep.mubr.bf16.mxu1 %v10346_v31  ;;  %v6742_v1 = vadd.f32 %v6741_v47, %v6740_v25  ;;  %v6743_v60 = vpop.f32.mrb[198].mxu0  ;;  %v9844_v56 = vadd.f32 %v6736_v26, %v4828_v39 }
 0x397   : > { %v6744_v43 = vpop.f32.mrb[199].mxu0 }
 0x398   : > { %v6628_v28 = vpop.f32.mrb[164].mxu1  ;;  %v6745_v54 = vadd.f32 %v6744_v43, %v6743_v60  ;;  %v9846_v57 = vadd.f32 %v6739_v38, %v4831_v3 }
 0x399   : > { %v6629_v40 = vpop.f32.mrb[165].mxu1 }
 0x39a   : > { %v6630_v6 = vadd.f32 %v6629_v40, %v6628_v28  ;;  %v6631_v11 = vpop.f32.mrb[166].mxu1 }
 0x39b   : > { %v6632_v37 = vpop.f32.mrb[167].mxu1 }
 0x39c   : > { %v4836_v10 = vadd.f32 %v6630_v6, %v9734_v51  ;;  %v6633_v17 = vadd.f32 %v6632_v37, %v6631_v11  ;;  %v6746_v48 = vpop.f32.mrb[200].mxu0 }
 0x39d   : > { %7111 = vmatmul.mubr.bf16.gmra.mrb[16].mxu1 %v10349_v30  ;;  %v6747_v31 = vpop.f32.mrb[201].mxu0 }
 0x39e   : > { %v4839_v61 = vadd.f32 %v6633_v17, %v9734_v51  ;;  %7114 = vmatprep.mubr.bf16.mxu1 %v10350_v13  ;;  %v6748_v52 = vadd.f32 %v6747_v31, %v6746_v48  ;;  %v6749_v29 = vpop.f32.mrb[202].mxu0  ;;  %v9852_v24 = vadd.f32 %v6742_v1, %v4836_v10 }
 0x39f   : > { %v6750_v45 = vpop.f32.mrb[203].mxu0 }
 0x3a0   : > { %v6634_v22 = vpop.f32.mrb[168].mxu1  ;;  %v6751_v46 = vadd.f32 %v6750_v45, %v6749_v29  ;;  %v9854_v4 = vadd.f32 %v6745_v54, %v4839_v61 }
 0x3a1   : > { %v6635_v0 = vpop.f32.mrb[169].mxu1 }
 0x3a2   : > { %v6636_v26 = vadd.f32 %v6635_v0, %v6634_v22  ;;  %v6637_v58 = vpop.f32.mrb[170].mxu1 }
 0x3a3   : > { %v6638_v27 = vpop.f32.mrb[171].mxu1 }
 0x3a4   : > { %v4844_v30 = vadd.f32 %v6636_v26, %v9734_v51  ;;  %v6639_v9 = vadd.f32 %v6638_v27, %v6637_v58  ;;  %v6752_v38 = vpop.f32.mrb[204].mxu0 }
 0x3a5   : > { %7115 = vmatmul.mubr.bf16.gmra.mrb[20].mxu1 %v9611_v18  ;;  %v6753_v13 = vpop.f32.mrb[205].mxu0 }
 0x3a6   : > { %v4847_v32 = vadd.f32 %v6639_v9, %v9734_v51  ;;  %7118 = vmatprep.mubr.bf16.mxu1 %v9657_v8  ;;  %v6754_v7 = vadd.f32 %v6753_v13, %v6752_v38  ;;  %v6755_v42 = vpop.f32.mrb[206].mxu0  ;;  %v9860_v59 = vadd.f32 %v6748_v52, %v4844_v30 }
 0x3a7   : > { %v6756_v39 = vpop.f32.mrb[207].mxu0 }
 0x3a8   : > { %v6640_v16 = vpop.f32.mrb[172].mxu1  ;;  %v6757_v25 = vadd.f32 %v6756_v39, %v6755_v42  ;;  %v9862_v47 = vadd.f32 %v6751_v46, %v4847_v32 }
 0x3a9   : > { %v6641_v3 = vpop.f32.mrb[173].mxu1 }
 0x3aa   : > { %v6642_v1 = vadd.f32 %v6641_v3, %v6640_v16  ;;  %v6643_v60 = vpop.f32.mrb[174].mxu1 }
 0x3ab   : > { %v6644_v43 = vpop.f32.mrb[175].mxu1 }
 0x3ac   : > { %v4852_v18 = vadd.f32 %v6642_v1, %v9734_v51  ;;  %v6645_v28 = vadd.f32 %v6644_v43, %v6643_v60  ;;  %v6758_v54 = vpop.f32.mrb[208].mxu0 }
 0x3ad   : > { %7119 = vmatmul.mubr.bf16.gmra.mrb[24].mxu1 %v9678_v23  ;;  %v6759_v8 = vpop.f32.mrb[209].mxu0 }
 0x3ae   : > { %v4855_v40 = vadd.f32 %v6645_v28, %v9734_v51  ;;  %7122 = vmatprep.mubr.bf16.mxu1 %v9649_v34  ;;  %v6760_v6 = vadd.f32 %v6759_v8, %v6758_v54  ;;  %v6761_v11 = vpop.f32.mrb[210].mxu0  ;;  %v9868_v37 = vadd.f32 %v6754_v7, %v4852_v18 }
 0x3af   : > { %v6762_v10 = vpop.f32.mrb[211].mxu0 }
 0x3b0   : > { %v6646_v17 = vpop.f32.mrb[176].mxu1  ;;  %v6763_v48 = vadd.f32 %v6762_v10, %v6761_v11  ;;  %v9870_v31 = vadd.f32 %v6757_v25, %v4855_v40 }
 0x3b1   : > { %v6647_v61 = vpop.f32.mrb[177].mxu1 }
 0x3b2   : > { %v6648_v52 = vadd.f32 %v6647_v61, %v6646_v17  ;;  %v6649_v29 = vpop.f32.mrb[178].mxu1 }
 0x3b3   : > { %v6650_v45 = vpop.f32.mrb[179].mxu1 }
 0x3b4   : > { %v4860_v23 = vadd.f32 %v6648_v52, %v9734_v51  ;;  %v6651_v22 = vadd.f32 %v6650_v45, %v6649_v29  ;;  %v6764_v46 = vpop.f32.mrb[212].mxu0 }
 0x3b5   : > { %7123 = vmatmul.mubr.bf16.gmra.mrb[28].mxu1 %v5974_v14  ;;  %v6765_v34 = vpop.f32.mrb[213].mxu0 }
 0x3b6   : > { %v4863_v0 = vadd.f32 %v6651_v22, %v9734_v51  ;;  %v6766_v26 = vadd.f32 %v6765_v34, %v6764_v46  ;;  %v6767_v58 = vpop.f32.mrb[214].mxu0  ;;  %v9877_v27 = vadd.f32 %v6760_v6, %v4860_v23 }
 0x3b7   : > { %v6768_v30 = vpop.f32.mrb[215].mxu0 }
 0x3b8   : > { %v6652_v9 = vpop.f32.mrb[180].mxu1  ;;  %v6769_v38 = vadd.f32 %v6768_v30, %v6767_v58  ;;  %v9879_v13 = vadd.f32 %v6763_v48, %v4863_v0 }
 0x3b9   : > { %v6653_v32 = vpop.f32.mrb[181].mxu1 }
 0x3ba   : > { %v6654_v7 = vadd.f32 %v6653_v32, %v6652_v9  ;;  %v6655_v42 = vpop.f32.mrb[182].mxu1 }
 0x3bb   : > { %v6656_v39 = vpop.f32.mrb[183].mxu1 }
 0x3bc   : > { %v4868_v16 = vadd.f32 %v6654_v7, %v9734_v51  ;;  %v6657_v2 = vadd.f32 %v6656_v39, %v6655_v42  ;;  %v6770_v44 = vpop.f32.mrb[216].mxu0 }
 0x3bd   : > { %v6771_v14 = vpop.f32.mrb[217].mxu0 }
 0x3be   : > { %v4871_v25 = vadd.f32 %v6657_v2, %v9734_v51  ;;  %v6772_v3 = vadd.f32 %v6771_v14, %v6770_v44  ;;  %v6773_v1 = vpop.f32.mrb[218].mxu0  ;;  %v9883_v60 = vadd.f32 %v6766_v26, %v4868_v16 }
 0x3bf   : > { %v6774_v43 = vpop.f32.mrb[219].mxu0 }
 0x3c0   : > { %v6658_v18 = vpop.f32.mrb[184].mxu1  ;;  %v6775_v28 = vadd.f32 %v6774_v43, %v6773_v1  ;;  %v9885_v54 = vadd.f32 %v6769_v38, %v4871_v25 }
 0x3c1   : > { %v6659_v8 = vpop.f32.mrb[185].mxu1 }
 0x3c2   : > { %v6660_v40 = vadd.f32 %v6659_v8, %v6658_v18  ;;  %v6661_v6 = vpop.f32.mrb[186].mxu1 }
 0x3c3   : > { %v6662_v11 = vpop.f32.mrb[187].mxu1 }
 0x3c4   : > { %v4876_v10 = vadd.f32 %v6660_v40, %v9734_v51  ;;  %v6663_v17 = vadd.f32 %v6662_v11, %v6661_v6  ;;  %v6776_v48 = vpop.f32.mrb[220].mxu0 }
 0x3c5   : > { %v6777_v61 = vpop.f32.mrb[221].mxu0 }
 0x3c6   : > { %v4879_v52 = vadd.f32 %v6663_v17, %v9734_v51  ;;  %v6778_v29 = vadd.f32 %v6777_v61, %v6776_v48  ;;  %v6779_v45 = vpop.f32.mrb[222].mxu0  ;;  %v9889_v23 = vadd.f32 %v6772_v3, %v4876_v10 }
 0x3c7   : > { %v6780_v22 = vpop.f32.mrb[223].mxu0 }
 0x3c8   : > { %v6664_v46 = vpop.f32.mrb[188].mxu1  ;;  %v6781_v34 = vadd.f32 %v6780_v22, %v6779_v45  ;;  %v9891_v0 = vadd.f32 %v6775_v28, %v4879_v52 }
 0x3c9   : > { %v6665_v26 = vpop.f32.mrb[189].mxu1 }
 0x3ca   : > { %v6666_v58 = vadd.f32 %v6665_v26, %v6664_v46  ;;  %v6667_v30 = vpop.f32.mrb[190].mxu1 }
 0x3cb   : > { %v6668_v9 = vpop.f32.mrb[191].mxu1 }
 0x3cc   : > { %v4884_v38 = vadd.f32 %v6666_v58, %v9734_v51  ;;  %v6669_v32 = vadd.f32 %v6668_v9, %v6667_v30  ;;  %v6910_v7 = vpop.f32.mrb[224].mxu0 }
 0x3cd   : > { %v6911_v42 = vpop.f32.mrb[225].mxu0 }
 0x3ce   : > { %v4887_v39 = vadd.f32 %v6669_v32, %v9734_v51  ;;  %v6912_v16 = vadd.f32 %v6911_v42, %v6910_v7  ;;  %v6913_v2 = vpop.f32.mrb[226].mxu0  ;;  %v9895_v44 = vadd.f32 %v6778_v29, %v4884_v38 }
 0x3cf   : > { %v6914_v14 = vpop.f32.mrb[227].mxu0 }
 0x3d0   : > { %v6798_v25 = vpop.f32.mrb[192].mxu1  ;;  %v6915_v3 = vadd.f32 %v6914_v14, %v6913_v2  ;;  %v9897_v1 = vadd.f32 %v6781_v34, %v4887_v39 }
 0x3d1   : > { %v6799_v43 = vpop.f32.mrb[193].mxu1 }
 0x3d2   : > { %v6800_v18 = vadd.f32 %v6799_v43, %v6798_v25  ;;  %v6801_v28 = vpop.f32.mrb[194].mxu1 }
 0x3d3   : > { %v6802_v8 = vpop.f32.mrb[195].mxu1 }
 0x3d4   : > { %v5086_v40 = vadd.f32 %v6800_v18, %v9744_v62  ;;  %v6803_v6 = vadd.f32 %v6802_v8, %v6801_v28  ;;  %v6916_v11 = vpop.f32.mrb[228].mxu0 }
 0x3d5   : > { %v6917_v10 = vpop.f32.mrb[229].mxu0 }
 0x3d6   : > { %v5089_v51 = vadd.f32 %v6803_v6, %v9747_v53  ;;  %v6918_v17 = vadd.f32 %v6917_v10, %v6916_v11  ;;  %v6919_v48 = vpop.f32.mrb[230].mxu0  ;;  %v9901_v61 = vadd.f32 %v6912_v16, %v5086_v40 }
 0x3d7   : > { %v6920_v52 = vpop.f32.mrb[231].mxu0 }
 0x3d8   : > { %v6804_v29 = vpop.f32.mrb[196].mxu1  ;;  %v6921_v45 = vadd.f32 %v6920_v52, %v6919_v48  ;;  %v9903_v22 = vadd.f32 %v6915_v3, %v5089_v51 }
 0x3d9   : > { %v6805_v46 = vpop.f32.mrb[197].mxu1 }
 0x3da   : > { %v6806_v34 = vadd.f32 %v6805_v46, %v6804_v29  ;;  %v6807_v26 = vpop.f32.mrb[198].mxu1 }
 0x3db   : > { %v6808_v58 = vpop.f32.mrb[199].mxu1 }
 0x3dc   : > { %v5094_v62 = vadd.f32 %v6806_v34, %v9760_v49  ;;  %v6809_v30 = vadd.f32 %v6808_v58, %v6807_v26  ;;  %v6922_v9 = vpop.f32.mrb[232].mxu0 }
 0x3dd   : > { %v6923_v38 = vpop.f32.mrb[233].mxu0 }
 0x3de   : > { %v5097_v53 = vadd.f32 %v6809_v30, %v9764_v15  ;;  %v6924_v32 = vadd.f32 %v6923_v38, %v6922_v9  ;;  %v6925_v7 = vpop.f32.mrb[234].mxu0  ;;  %v9907_v42 = vadd.f32 %v6918_v17, %v5094_v62 }
 0x3df   : > { %v6926_v39 = vpop.f32.mrb[235].mxu0 }
 0x3e0   : > { %v6810_v16 = vpop.f32.mrb[200].mxu1  ;;  %v6927_v2 = vadd.f32 %v6926_v39, %v6925_v7  ;;  %v9909_v14 = vadd.f32 %v6921_v45, %v5097_v53 }
 0x3e1   : > { %v6811_v25 = vpop.f32.mrb[201].mxu1 }
 0x3e2   : > { %v6812_v3 = vadd.f32 %v6811_v25, %v6810_v16  ;;  %v6813_v43 = vpop.f32.mrb[202].mxu1 }
 0x3e3   : > { %v6814_v18 = vpop.f32.mrb[203].mxu1 }
 0x3e4   : > { %v5102_v49 = vadd.f32 %v6812_v3, %v9773_v20  ;;  %v6815_v28 = vadd.f32 %v6814_v18, %v6813_v43  ;;  %v6928_v8 = vpop.f32.mrb[236].mxu0 }
 0x3e5   : > { %v6929_v40 = vpop.f32.mrb[237].mxu0 }
 0x3e6   : > { %v5105_v15 = vadd.f32 %v6815_v28, %v9780_v35  ;;  %v6930_v6 = vadd.f32 %v6929_v40, %v6928_v8  ;;  %v6931_v11 = vpop.f32.mrb[238].mxu0  ;;  %v9913_v10 = vadd.f32 %v6924_v32, %v5102_v49 }
 0x3e7   : > { %v6932_v51 = vpop.f32.mrb[239].mxu0 }
 0x3e8   : > { %v6816_v17 = vpop.f32.mrb[204].mxu1  ;;  %v6933_v48 = vadd.f32 %v6932_v51, %v6931_v11  ;;  %v9915_v52 = vadd.f32 %v6927_v2, %v5105_v15 }
 0x3e9   : > { %v6817_v29 = vpop.f32.mrb[205].mxu1 }
 0x3ea   : > { %v6818_v45 = vadd.f32 %v6817_v29, %v6816_v17  ;;  %v6819_v46 = vpop.f32.mrb[206].mxu1 }
 0x3eb   : > { %v6820_v34 = vpop.f32.mrb[207].mxu1 }
 0x3ec   : > { %v5110_v20 = vadd.f32 %v6818_v45, %v9792_v21  ;;  %v6821_v26 = vadd.f32 %v6820_v34, %v6819_v46  ;;  %v6934_v58 = vpop.f32.mrb[240].mxu0 }
 0x3ed   : > { %v6935_v62 = vpop.f32.mrb[241].mxu0 }
 0x3ee   : > { %v5113_v35 = vadd.f32 %v6821_v26, %v9799_v12  ;;  %v6936_v30 = vadd.f32 %v6935_v62, %v6934_v58  ;;  %v6937_v9 = vpop.f32.mrb[242].mxu0  ;;  %v9919_v38 = vadd.f32 %v6930_v6, %v5110_v20 }
 0x3ef   : > { %v6938_v53 = vpop.f32.mrb[243].mxu0 }
 0x3f0   : > { %v6822_v32 = vpop.f32.mrb[208].mxu1  ;;  %v6939_v7 = vadd.f32 %v6938_v53, %v6937_v9  ;;  %v9921_v39 = vadd.f32 %v6933_v48, %v5113_v35 }
 0x3f1   : > { %v6823_v16 = vpop.f32.mrb[209].mxu1 }
 0x3f2   : > { %v6824_v2 = vadd.f32 %v6823_v16, %v6822_v32  ;;  %v6825_v25 = vpop.f32.mrb[210].mxu1 }
 0x3f3   : > { %v6826_v3 = vpop.f32.mrb[211].mxu1 }
 0x3f4   : > { %v5118_v21 = vadd.f32 %v6824_v2, %v9810_v5  ;;  %v6827_v43 = vadd.f32 %v6826_v3, %v6825_v25  ;;  %v6940_v18 = vpop.f32.mrb[244].mxu0 }
 0x3f5   : > { %v6941_v49 = vpop.f32.mrb[245].mxu0 }
 0x3f6   : > { %v5121_v12 = vadd.f32 %v6827_v43, %v9812_v36  ;;  %v6942_v28 = vadd.f32 %v6941_v49, %v6940_v18  ;;  %v6943_v8 = vpop.f32.mrb[246].mxu0  ;;  %v9925_v40 = vadd.f32 %v6936_v30, %v5118_v21 }
 0x3f7   : > { %v6944_v15 = vpop.f32.mrb[247].mxu0 }
 0x3f8   : > { %v6828_v6 = vpop.f32.mrb[212].mxu1  ;;  %v6945_v11 = vadd.f32 %v6944_v15, %v6943_v8  ;;  %v9927_v51 = vadd.f32 %v6939_v7, %v5121_v12 }
 0x3f9   : > { %v6829_v17 = vpop.f32.mrb[213].mxu1 }
 0x3fa   : > { %v6830_v48 = vadd.f32 %v6829_v17, %v6828_v6  ;;  %v6831_v29 = vpop.f32.mrb[214].mxu1 }
 0x3fb   : > { %v6832_v45 = vpop.f32.mrb[215].mxu1 }
 0x3fc   : > { %v5126_v5 = vadd.f32 %v6830_v48, %v9820_v33  ;;  %v6833_v46 = vadd.f32 %v6832_v45, %v6831_v29  ;;  %v6946_v34 = vpop.f32.mrb[248].mxu0 }
 0x3fd   : > { %v6947_v20 = vpop.f32.mrb[249].mxu0 }
 0x3fe   : > { %v5129_v36 = vadd.f32 %v6833_v46, %v9822_v50  ;;  %v6948_v26 = vadd.f32 %v6947_v20, %v6946_v34  ;;  %v6949_v58 = vpop.f32.mrb[250].mxu0  ;;  %v9931_v62 = vadd.f32 %v6942_v28, %v5126_v5 }
 0x3ff   : > { %v6950_v35 = vpop.f32.mrb[251].mxu0 }
 0x400   : > { %v6834_v30 = vpop.f32.mrb[216].mxu1  ;;  %v6951_v9 = vadd.f32 %v6950_v35, %v6949_v58  ;;  %v9933_v53 = vadd.f32 %v6945_v11, %v5129_v36 }
 0x401   : > { %v6835_v32 = vpop.f32.mrb[217].mxu1 }
 0x402   : > { %v6836_v7 = vadd.f32 %v6835_v32, %v6834_v30  ;;  %v6837_v16 = vpop.f32.mrb[218].mxu1 }
 0x403   : > { %v6838_v2 = vpop.f32.mrb[219].mxu1 }
 0x404   : > { %v5134_v33 = vadd.f32 %v6836_v7, %v9828_v63  ;;  %v6839_v25 = vadd.f32 %v6838_v2, %v6837_v16  ;;  %v6952_v3 = vpop.f32.mrb[252].mxu0 }
 0x405   : > { %v6953_v21 = vpop.f32.mrb[253].mxu0 }
 0x406   : > { %v5137_v50 = vadd.f32 %v6839_v25, %v9830_v41  ;;  %v6954_v43 = vadd.f32 %v6953_v21, %v6952_v3  ;;  %v6955_v18 = vpop.f32.mrb[254].mxu0  ;;  %v9937_v49 = vadd.f32 %v6948_v26, %v5134_v33 }
 0x407   : > { %v6956_v12 = vpop.f32.mrb[255].mxu0 }
 0x408   : > { %v6840_v28 = vpop.f32.mrb[220].mxu1  ;;  %v6957_v8 = vadd.f32 %v6956_v12, %v6955_v18  ;;  %v9939_v15 = vadd.f32 %v6951_v9, %v5137_v50 }
 0x409   : > { %v6841_v6 = vpop.f32.mrb[221].mxu1 }
 0x40a   : > { %v6842_v11 = vadd.f32 %v6841_v6, %v6840_v28  ;;  %v6843_v17 = vpop.f32.mrb[222].mxu1 }
 0x40b   : > { %v6844_v48 = vpop.f32.mrb[223].mxu1 }
 0x40c   : > { %v5142_v63 = vadd.f32 %v6842_v11, %v9836_v19  ;;  %v6845_v29 = vadd.f32 %v6844_v48, %v6843_v17  ;;  %v6958_v45 = vpop.f32.mrb[0].mxu0 }
 0x40d   : > { %v6959_v5 = vpop.f32.mrb[1].mxu0 }
 0x40e   : > { %v5145_v41 = vadd.f32 %v6845_v29, %v9838_v55  ;;  %v6960_v46 = vadd.f32 %v6959_v5, %v6958_v45  ;;  %v6961_v34 = vpop.f32.mrb[2].mxu0  ;;  %v9943_v20 = vadd.f32 %v6954_v43, %v5142_v63 }
 0x40f   : > { %v6962_v36 = vpop.f32.mrb[3].mxu0 }
 0x410   : > { %v6846_v26 = vpop.f32.mrb[224].mxu1  ;;  %v6963_v58 = vadd.f32 %v6962_v36, %v6961_v34  ;;  %v9945_v35 = vadd.f32 %v6957_v8, %v5145_v41 }
 0x411   : > { %v6847_v30 = vpop.f32.mrb[225].mxu1 }
 0x412   : > { %v6848_v9 = vadd.f32 %v6847_v30, %v6846_v26  ;;  %v6849_v32 = vpop.f32.mrb[226].mxu1 }
 0x413   : > { %v6850_v7 = vpop.f32.mrb[227].mxu1 }
 0x414   : > { %v5150_v19 = vadd.f32 %v6848_v9, %v9844_v56  ;;  %v6851_v16 = vadd.f32 %v6850_v7, %v6849_v32  ;;  %v6964_v2 = vpop.f32.mrb[4].mxu0 }
 0x415   : > { %v6965_v33 = vpop.f32.mrb[5].mxu0 }
 0x416   : > { %v5153_v55 = vadd.f32 %v6851_v16, %v9846_v57  ;;  %v6966_v25 = vadd.f32 %v6965_v33, %v6964_v2  ;;  %v6967_v3 = vpop.f32.mrb[6].mxu0  ;;  %v9949_v21 = vadd.f32 %v6960_v46, %v5150_v19 }
 0x417   : > { %v6968_v50 = vpop.f32.mrb[7].mxu0 }
 0x418   : > { %v6852_v43 = vpop.f32.mrb[228].mxu1  ;;  %v6969_v18 = vadd.f32 %v6968_v50, %v6967_v3  ;;  %v9951_v12 = vadd.f32 %v6963_v58, %v5153_v55 }
 0x419   : > { %v6853_v28 = vpop.f32.mrb[229].mxu1 }
 0x41a   : > { %v6854_v8 = vadd.f32 %v6853_v28, %v6852_v43  ;;  %v6855_v6 = vpop.f32.mrb[230].mxu1 }
 0x41b   : > { %v6856_v11 = vpop.f32.mrb[231].mxu1 }
 0x41c   : > { %v5158_v56 = vadd.f32 %v6854_v8, %v9852_v24  ;;  %v6857_v17 = vadd.f32 %v6856_v11, %v6855_v6  ;;  %v6970_v48 = vpop.f32.mrb[8].mxu0 }
 0x41d   : > { %v6971_v63 = vpop.f32.mrb[9].mxu0 }
 0x41e   : > { %v5161_v57 = vadd.f32 %v6857_v17, %v9854_v4  ;;  %v6972_v29 = vadd.f32 %v6971_v63, %v6970_v48  ;;  %v6973_v45 = vpop.f32.mrb[10].mxu0  ;;  %v9955_v5 = vadd.f32 %v6966_v25, %v5158_v56 }
 0x41f   : > { %v6974_v41 = vpop.f32.mrb[11].mxu0 }
 0x420   : > { %v6858_v46 = vpop.f32.mrb[232].mxu1  ;;  %v6975_v34 = vadd.f32 %v6974_v41, %v6973_v45  ;;  %v9957_v36 = vadd.f32 %v6969_v18, %v5161_v57 }
 0x421   : > { %v6859_v26 = vpop.f32.mrb[233].mxu1 }
 0x422   : > { %v6860_v58 = vadd.f32 %v6859_v26, %v6858_v46  ;;  %v6861_v30 = vpop.f32.mrb[234].mxu1 }
 0x423   : > { %v6862_v9 = vpop.f32.mrb[235].mxu1 }
 0x424   : > { %v5166_v24 = vadd.f32 %v6860_v58, %v9860_v59  ;;  %v6863_v32 = vadd.f32 %v6862_v9, %v6861_v30  ;;  %v6976_v7 = vpop.f32.mrb[12].mxu0 }
 0x425   : > { %v6977_v19 = vpop.f32.mrb[13].mxu0 }
 0x426   : > { %v5169_v4 = vadd.f32 %v6863_v32, %v9862_v47  ;;  %v6978_v16 = vadd.f32 %v6977_v19, %v6976_v7  ;;  %v6979_v2 = vpop.f32.mrb[14].mxu0  ;;  %v9961_v33 = vadd.f32 %v6972_v29, %v5166_v24 }
 0x427   : > { %v6980_v55 = vpop.f32.mrb[15].mxu0 }
 0x428   : > { %v6864_v25 = vpop.f32.mrb[236].mxu1  ;;  %v6981_v3 = vadd.f32 %v6980_v55, %v6979_v2  ;;  %v9963_v50 = vadd.f32 %v6975_v34, %v5169_v4 }
 0x429   : > { %v6865_v43 = vpop.f32.mrb[237].mxu1 }
 0x42a   : > { %v6866_v18 = vadd.f32 %v6865_v43, %v6864_v25  ;;  %v6867_v28 = vpop.f32.mrb[238].mxu1 }
 0x42b   : > { %v6868_v8 = vpop.f32.mrb[239].mxu1 }
 0x42c   : > { %v5174_v59 = vadd.f32 %v6866_v18, %v9868_v37  ;;  %v6869_v6 = vadd.f32 %v6868_v8, %v6867_v28  ;;  %v6982_v11 = vpop.f32.mrb[16].mxu0 }
 0x42d   : > { %v6983_v56 = vpop.f32.mrb[17].mxu0 }
 0x42e   : > { %v5177_v47 = vadd.f32 %v6869_v6, %v9870_v31  ;;  %v6984_v17 = vadd.f32 %v6983_v56, %v6982_v11  ;;  %v6985_v48 = vpop.f32.mrb[18].mxu0  ;;  %v9967_v63 = vadd.f32 %v6978_v16, %v5174_v59 }
 0x42f   : > { %v6986_v57 = vpop.f32.mrb[19].mxu0 }
 0x430   : > { %v6870_v29 = vpop.f32.mrb[240].mxu1  ;;  %v6987_v45 = vadd.f32 %v6986_v57, %v6985_v48  ;;  %v9969_v41 = vadd.f32 %v6981_v3, %v5177_v47 }
 0x431   : > { %v6871_v46 = vpop.f32.mrb[241].mxu1 }
 0x432   : > { %v6872_v34 = vadd.f32 %v6871_v46, %v6870_v29  ;;  %v6873_v26 = vpop.f32.mrb[242].mxu1 }
 0x433   : > { %v6874_v58 = vpop.f32.mrb[243].mxu1 }
 0x434   : > { %v5182_v37 = vadd.f32 %v6872_v34, %v9877_v27  ;;  %v6875_v30 = vadd.f32 %v6874_v58, %v6873_v26  ;;  %v6988_v9 = vpop.f32.mrb[20].mxu0 }
 0x435   : > { %v6989_v24 = vpop.f32.mrb[21].mxu0 }
 0x436   : > { %v5185_v31 = vadd.f32 %v6875_v30, %v9879_v13  ;;  %v6990_v32 = vadd.f32 %v6989_v24, %v6988_v9  ;;  %v6991_v7 = vpop.f32.mrb[22].mxu0  ;;  %v9973_v19 = vadd.f32 %v6984_v17, %v5182_v37 }
 0x437   : > { %v6992_v4 = vpop.f32.mrb[23].mxu0 }
 0x438   : > { %v6876_v16 = vpop.f32.mrb[244].mxu1  ;;  %v6993_v2 = vadd.f32 %v6992_v4, %v6991_v7  ;;  %v9975_v55 = vadd.f32 %v6987_v45, %v5185_v31 }
 0x439   : > { %v6877_v25 = vpop.f32.mrb[245].mxu1 }
 0x43a   : > { %v6878_v3 = vadd.f32 %v6877_v25, %v6876_v16  ;;  %v6879_v43 = vpop.f32.mrb[246].mxu1 }
 0x43b   : > { %v6880_v18 = vpop.f32.mrb[247].mxu1 }
 0x43c   : > { %v5190_v27 = vadd.f32 %v6878_v3, %v9883_v60  ;;  %v6881_v28 = vadd.f32 %v6880_v18, %v6879_v43  ;;  %v6994_v8 = vpop.f32.mrb[24].mxu0 }
 0x43d   : > { %v6995_v59 = vpop.f32.mrb[25].mxu0 }
 0x43e   : > { %v5193_v13 = vadd.f32 %v6881_v28, %v9885_v54  ;;  %v6996_v6 = vadd.f32 %v6995_v59, %v6994_v8  ;;  %v6997_v11 = vpop.f32.mrb[26].mxu0  ;;  %v9979_v56 = vadd.f32 %v6990_v32, %v5190_v27  ;;  %v10351_v27 = vld [vmem:[#allocation11_spill] sm:$0xff]  ;;  %v10352_v59 = vld [vmem:[#allocation9_spill] sm:$0xff] }
 0x43f   : > { %v6998_v47 = vpop.f32.mrb[27].mxu0  ;;  %v4260_v28 = vunpack.c.l.bf16 %v10351_v27 }
 0x440   : > { %v6882_v17 = vpop.f32.mrb[248].mxu1  ;;  %v6999_v48 = vadd.f32 %v6998_v47, %v6997_v11  ;;  %v9981_v57 = vadd.f32 %v6993_v2, %v5193_v13  ;;  %v4258_v13 = vunpack.c.l.bf16 %v10352_v59 }
 0x441   : > { %v6883_v29 = vpop.f32.mrb[249].mxu1 }
 0x442   : > { %v6884_v45 = vadd.f32 %v6883_v29, %v6882_v17  ;;  %v6885_v46 = vpop.f32.mrb[250].mxu1  ;;  %v10353_v17 = vld [vmem:[#allocation12_spill] sm:$0xff]  ;;  %v10354_v29 = vld [vmem:[#allocation10_spill] sm:$0xff] }
 0x443   : > { %v6886_v34 = vpop.f32.mrb[251].mxu1 }
 0x444   : > { %v5198_v60 = vadd.f32 %v6884_v45, %v9889_v23  ;;  %v6887_v26 = vadd.f32 %v6886_v34, %v6885_v46  ;;  %v7000_v58 = vpop.f32.mrb[28].mxu0  ;;  %v4259_v45 = vunpack.c.l.bf16 %v10354_v29 }
 0x445   : > { %v7001_v37 = vpop.f32.mrb[29].mxu0 }
 0x446   : > { %v5201_v54 = vadd.f32 %v6887_v26, %v9891_v0  ;;  %v7002_v30 = vadd.f32 %v7001_v37, %v7000_v58  ;;  %v7003_v9 = vpop.f32.mrb[30].mxu0  ;;  %v9985_v24 = vadd.f32 %v6996_v6, %v5198_v60 }
 0x447   : > { %v7004_v31 = vpop.f32.mrb[31].mxu0 }
 0x448   : > { %v6888_v32 = vpop.f32.mrb[252].mxu1  ;;  %v7005_v7 = vadd.f32 %v7004_v31, %v7003_v9  ;;  %v9987_v4 = vadd.f32 %v6999_v48, %v5201_v54 }
 0x449   : > { %v6889_v16 = vpop.f32.mrb[253].mxu1 }
 0x44a   : > { %v6890_v2 = vadd.f32 %v6889_v16, %v6888_v32  ;;  %v6891_v25 = vpop.f32.mrb[254].mxu1 }
 0x44b   : > { %v6892_v23 = vpop.f32.mrb[255].mxu1 }
 0x44c   : > { %v5206_v3 = vadd.f32 %v6890_v2, %v9895_v44  ;;  %v6893_v43 = vadd.f32 %v6892_v23, %v6891_v25  ;;  %v4261_v44 = vunpack.c.l.bf16 %v10353_v17  ;;  %v10357_v25 = vld [vmem:[#allocation16_spill] sm:$0xff] }
 0x44d   : > { %v4265_v23 = vunpack.c.l.bf16 %v10357_v25 }
 0x44e   : > { %v5209_v18 = vadd.f32 %v6893_v43, %v9897_v1  ;;  %v9992_v0 = vadd.f32 %v7002_v30, %v5206_v3 }
 0x450   : > { %v7096_v8 = vpop.f32.mrb[0].mxu1  ;;  %v9996_v6 = vadd.f32 %v7005_v7, %v5209_v18  ;;  %v10356_v7 = vld [vmem:[#allocation13_spill] sm:$0xff]  ;;  %v10358_v18 = vld [vmem:[#allocation14_spill] sm:$0xff] }
 0x451   : > { %v5416_v11 = vadd.f32 %v7096_v8, %v9907_v42  ;;  %v5407_v47 = vpop.f32.mrb[1].mxu1  ;;  %v10355_v42 = vld [vmem:[#allocation15_spill] sm:$0xff]  ;;  %v4262_v16 = vunpack.c.l.bf16 %v10356_v7  ;;  %v4263_v27 = vunpack.c.l.bf16 %v10358_v18 }
 0x452   : > { %v5408_v48 = vadd.f32 %v5407_v47, %v9901_v61  ;;  %v7097_v1 = vpop.f32.mrb[2].mxu1  ;;  %v4264_v31 = vunpack.c.l.bf16 %v10355_v42 }
 0x453   : > { %v5536_v46 = vadd.f32 %v5416_v11, %v4260_v28  ;;  %v5419_v34 = vadd.f32 %v7097_v1, %v9909_v14  ;;  %v5410_v60 = vpop.f32.mrb[3].mxu1  ;;  %v10359_v1 = vld [vmem:[#allocation19_spill] sm:$0xff] }
 0x454   : > { %v5534_v26 = vadd.f32 %v5408_v48, %v4258_v13  ;;  %v5411_v58 = vadd.f32 %v5410_v60, %v9903_v22 }
 0x455   : > { %v5568_v37 = vmax.f32 %v5536_v46, 0.0  ;;  %v5537_v54 = vadd.f32 %v5419_v34, %v4261_v44  ;;  %v10360_v46 = vld [vmem:[#allocation17_spill] sm:$0xff] }
 0x456   : > { %v5566_v30 = vmax.f32 %v5534_v26, 0.0  ;;  %v5535_v9 = vadd.f32 %v5411_v58, %v4259_v45  ;;  %v4266_v34 = vunpack.c.l.bf16 %v10360_v46 }
 0x457   : > { %5600 = vst [vmem:[%s10006_s6 + $0x10] sm:$0xff] %v5568_v37  ;;  %v5569_v61 = vmax.f32 %v5537_v54, 0.0  ;;  %v10362_v54 = vld [vmem:[#allocation18_spill] sm:$0xff] }
 0x458   : > { %5598 = vst [vmem:[%s10006_s6] sm:$0xff] %v5566_v30  ;;  %v5567_v14 = vmax.f32 %v5535_v9, 0.0  ;;  %v7100_v32 = vpop.f32.mrb[4].mxu1  ;;  %v4267_v30 = vunpack.c.l.bf16 %v10362_v54  ;;  %v10370_v54 = vld [vmem:[#allocation32_spill] sm:$0xff] }
 0x459   : > { %5601 = vst [vmem:[%s10006_s6 + $0x18] sm:$0xff] %v5569_v61  ;;  %v5432_v22 = vadd.f32 %v7100_v32, %v9919_v38  ;;  %v5423_v2 = vpop.f32.mrb[5].mxu1 }
 0x45a   : > { %5599 = vst [vmem:[%s10006_s6 + $0x8] sm:$0xff] %v5567_v14  ;;  %v5424_v3 = vadd.f32 %v5423_v2, %v9913_v10  ;;  %v7101_v43 = vpop.f32.mrb[6].mxu1  ;;  %v4268_v10 = vunpack.c.l.bf16 %v10359_v1  ;;  %v10363_v2 = vld [vmem:[#allocation26_spill] sm:$0xff] }
 0x45b   : > { %v5540_v28 = vadd.f32 %v5432_v22, %v4264_v31  ;;  %v5435_v8 = vadd.f32 %v7101_v43, %v9921_v39  ;;  %v5426_v59 = vpop.f32.mrb[7].mxu1 }
 0x45c   : > { %v5538_v13 = vadd.f32 %v5424_v3, %v4262_v16  ;;  %v5427_v11 = vadd.f32 %v5426_v59, %v9915_v52  ;;  %v10361_v52 = vld [vmem:[#allocation20_spill] sm:$0xff]  ;;  %v10364_v3 = vld [vmem:[#allocation22_spill] sm:$0xff]  ;;  %v10366_v59 = vld [vmem:[#allocation23_spill] sm:$0xff] }
 0x45d   : > { %v5572_v38 = vmax.f32 %v5540_v28, 0.0  ;;  %v5541_v47 = vadd.f32 %v5435_v8, %v4265_v23  ;;  %v4269_v26 = vunpack.c.l.bf16 %v10361_v52  ;;  %v4270_v43 = vunpack.c.l.bf16 %v10364_v3 }
 0x45e   : > { %v5570_v17 = vmax.f32 %v5538_v13, 0.0  ;;  %v5539_v44 = vadd.f32 %v5427_v11, %v4263_v27  ;;  %v4271_v13 = vunpack.c.l.bf16 %v10366_v59 }
 0x45f   : > { %5604 = vst [vmem:[%s10006_s6 + $0x30] sm:$0xff] %v5572_v38  ;;  %v5573_v48 = vmax.f32 %v5541_v47, 0.0 }
 0x460   : > { %5602 = vst [vmem:[%s10006_s6 + $0x20] sm:$0xff] %v5570_v17  ;;  %v5571_v29 = vmax.f32 %v5539_v44, 0.0  ;;  %v7104_v45 = vpop.f32.mrb[8].mxu1 }
 0x461   : > { %5605 = vst [vmem:[%s10006_s6 + $0x38] sm:$0xff] %v5573_v48  ;;  %v5448_v39 = vadd.f32 %v7104_v45, %v9931_v62  ;;  %v5439_v60 = vpop.f32.mrb[9].mxu1  ;;  %v10367_v45 = vld [vmem:[#allocation36_spill] sm:$0xff] }
 0x462   : > { %5603 = vst [vmem:[%s10006_s6 + $0x28] sm:$0xff] %v5571_v29  ;;  %v5440_v58 = vadd.f32 %v5439_v60, %v9925_v40  ;;  %v7105_v37 = vpop.f32.mrb[10].mxu1  ;;  %v4272_v40 = vunpack.c.l.bf16 %v10363_v2 }
 0x463   : > { %v5544_v9 = vadd.f32 %v5448_v39, %v4268_v10  ;;  %v5451_v61 = vadd.f32 %v7105_v37, %v9933_v53  ;;  %v5442_v42 = vpop.f32.mrb[11].mxu1  ;;  %v10368_v39 = vld [vmem:[#allocation31_spill] sm:$0xff] }
 0x464   : > { %v5542_v31 = vadd.f32 %v5440_v58, %v4266_v34  ;;  %v5443_v14 = vadd.f32 %v5442_v42, %v9927_v51  ;;  %v10365_v51 = vld [vmem:[#allocation27_spill] sm:$0xff]  ;;  %v4274_v60 = vunpack.c.l.bf16 %v10368_v39 }
 0x465   : > { %v5576_v62 = vmax.f32 %v5544_v9, 0.0  ;;  %v5545_v32 = vadd.f32 %v5451_v61, %v4269_v26  ;;  %v4273_v27 = vunpack.c.l.bf16 %v10365_v51  ;;  %v10374_v51 = vld [vmem:[#allocation41_spill] sm:$0xff]  ;;  %v10378_v39 = vld [vmem:[#allocation47_spill] sm:$0xff] }
 0x466   : > { %v5574_v7 = vmax.f32 %v5542_v31, 0.0  ;;  %v5543_v16 = vadd.f32 %v5443_v14, %v4267_v30  ;;  %v4275_v30 = vunpack.c.l.bf16 %v10370_v54 }
 0x467   : > { %5608 = vst [vmem:[%s10006_s6 + $0x50] sm:$0xff] %v5576_v62  ;;  %v5577_v22 = vmax.f32 %v5545_v32, 0.0 }
 0x468   : > { %5606 = vst [vmem:[%s10006_s6 + $0x40] sm:$0xff] %v5574_v7  ;;  %v5575_v25 = vmax.f32 %v5543_v16, 0.0  ;;  %v7108_v23 = vpop.f32.mrb[12].mxu1 }
 0x469   : > { %5609 = vst [vmem:[%s10006_s6 + $0x58] sm:$0xff] %v5577_v22  ;;  %v5464_v53 = vadd.f32 %v7108_v23, %v9943_v20  ;;  %v5455_v18 = vpop.f32.mrb[13].mxu1  ;;  %v10371_v22 = vld [vmem:[#allocation44_spill] sm:$0xff] }
 0x46a   : > { %5607 = vst [vmem:[%s10006_s6 + $0x48] sm:$0xff] %v5575_v25  ;;  %v5456_v28 = vadd.f32 %v5455_v18, %v9937_v49  ;;  %v7109_v8 = vpop.f32.mrb[14].mxu1  ;;  %v4276_v49 = vunpack.c.l.bf16 %v10367_v45  ;;  %v10372_v25 = vld [vmem:[#allocation40_spill] sm:$0xff] }
 0x46b   : > { %v5548_v11 = vadd.f32 %v5464_v53, %v4272_v40  ;;  %v5467_v38 = vadd.f32 %v7109_v8, %v9945_v35  ;;  %v5458_v47 = vpop.f32.mrb[15].mxu1  ;;  %v4278_v23 = vunpack.c.l.bf16 %v10372_v25 }
 0x46c   : > { %v5546_v17 = vadd.f32 %v5456_v28, %v4270_v43  ;;  %v5459_v44 = vadd.f32 %v5458_v47, %v9939_v15  ;;  %v10369_v15 = vld [vmem:[#allocation37_spill] sm:$0xff] }
 0x46d   : > { %v5580_v20 = vmax.f32 %v5548_v11, 0.0  ;;  %v5549_v48 = vadd.f32 %v5467_v38, %v4273_v27  ;;  %v4277_v26 = vunpack.c.l.bf16 %v10369_v15  ;;  %v4279_v27 = vunpack.c.l.bf16 %v10374_v51 }
 0x46e   : > { %v5578_v1 = vmax.f32 %v5546_v17, 0.0  ;;  %v5547_v10 = vadd.f32 %v5459_v44, %v4271_v13 }
 0x46f   : > { %5612 = vst [vmem:[%s10006_s6 + $0x70] sm:$0xff] %v5580_v20  ;;  %v5581_v29 = vmax.f32 %v5549_v48, 0.0  ;;  %v10375_v20 = vld [vmem:[#allocation48_spill] sm:$0xff] }
 0x470   : > { %5610 = vst [vmem:[%s10006_s6 + $0x60] sm:$0xff] %v5578_v1  ;;  %v5579_v46 = vmax.f32 %v5547_v10, 0.0  ;;  %v7112_v34 = vpop.f32.mrb[16].mxu1  ;;  %v10376_v10 = vld [vmem:[#allocation46_spill] sm:$0xff] }
 0x471   : > { %5613 = vst [vmem:[%s10006_s6 + $0x78] sm:$0xff] %v5581_v29  ;;  %v5480_v35 = vadd.f32 %v7112_v34, %v9955_v5  ;;  %v5471_v52 = vpop.f32.mrb[17].mxu1  ;;  %v4282_v29 = vunpack.c.l.bf16 %v10376_v10 }
 0x472   : > { %5611 = vst [vmem:[%s10006_s6 + $0x68] sm:$0xff] %v5579_v46  ;;  %v5472_v58 = vadd.f32 %v5471_v52, %v9949_v21  ;;  %v7113_v37 = vpop.f32.mrb[18].mxu1  ;;  %v4280_v21 = vunpack.c.l.bf16 %v10371_v22  ;;  %v10382_v22 = vld [vmem:[#allocation51_spill] sm:$0xff] }
 0x473   : > { %v5552_v9 = vadd.f32 %v5480_v35, %v4276_v49  ;;  %v5483_v61 = vadd.f32 %v7113_v37, %v9957_v36  ;;  %v5474_v42 = vpop.f32.mrb[19].mxu1 }
 0x474   : > { %v5550_v31 = vadd.f32 %v5472_v58, %v4274_v60  ;;  %v5475_v14 = vadd.f32 %v5474_v42, %v9951_v12  ;;  %v10373_v12 = vld [vmem:[#allocation45_spill] sm:$0xff]  ;;  %v4283_v60 = vunpack.c.l.bf16 %v10378_v39 }
 0x475   : > { %v5584_v5 = vmax.f32 %v5552_v9, 0.0  ;;  %v5553_v62 = vadd.f32 %v5483_v61, %v4277_v26  ;;  %v4281_v43 = vunpack.c.l.bf16 %v10373_v12  ;;  %v10379_v61 = vld [vmem:[#allocation52_spill] sm:$0xff] }
 0x476   : > { %v5582_v32 = vmax.f32 %v5550_v31, 0.0  ;;  %v5551_v7 = vadd.f32 %v5475_v14, %v4275_v30  ;;  %v10380_v14 = vld [vmem:[#allocation50_spill] sm:$0xff] }
 0x477   : > { %5616 = vst [vmem:[%s10006_s6 + $0x90] sm:$0xff] %v5584_v5  ;;  %v5585_v16 = vmax.f32 %v5553_v62, 0.0  ;;  %v10381_v62 = vld [vmem:[#allocation24_spill] sm:$0xff] }
 0x478   : > { %5614 = vst [vmem:[%s10006_s6 + $0x80] sm:$0xff] %v5582_v32  ;;  %v5583_v2 = vmax.f32 %v5551_v7, 0.0  ;;  %v7116_v40 = vpop.f32.mrb[20].mxu1  ;;  %v4289_v32 = vunpack.c.l.bf16 %v10381_v62 }
 0x479   : > { %5617 = vst [vmem:[%s10006_s6 + $0x98] sm:$0xff] %v5585_v16  ;;  %v5496_v36 = vadd.f32 %v7116_v40, %v9967_v63  ;;  %v5487_v3 = vpop.f32.mrb[21].mxu1 }
 0x47a   : > { %5615 = vst [vmem:[%s10006_s6 + $0x88] sm:$0xff] %v5583_v2  ;;  %v5488_v53 = vadd.f32 %v5487_v3, %v9961_v33  ;;  %v7117_v18 = vpop.f32.mrb[22].mxu1  ;;  %v4284_v33 = vunpack.c.l.bf16 %v10375_v20 }
 0x47b   : > { %v5556_v28 = vadd.f32 %v5496_v36, %v4280_v21  ;;  %v5499_v8 = vadd.f32 %v7117_v18, %v9969_v41  ;;  %v5490_v59 = vpop.f32.mrb[23].mxu1  ;;  %v4287_v21 = vunpack.c.l.bf16 %v10382_v22 }
 0x47c   : > { %v5554_v13 = vadd.f32 %v5488_v53, %v4278_v23  ;;  %v5491_v11 = vadd.f32 %v5490_v59, %v9963_v50  ;;  %v10377_v50 = vld [vmem:[#allocation49_spill] sm:$0xff] }
 0x47d   : > { %v5588_v63 = vmax.f32 %v5556_v28, 0.0  ;;  %v5557_v38 = vadd.f32 %v5499_v8, %v4281_v43  ;;  %v4285_v49 = vunpack.c.l.bf16 %v10377_v50 }
 0x47e   : > { %v5586_v47 = vmax.f32 %v5554_v13, 0.0  ;;  %v5555_v17 = vadd.f32 %v5491_v11, %v4279_v27 }
 0x47f   : > { %5620 = vst [vmem:[%s10006_s6 + $0xb0] sm:$0xff] %v5588_v63  ;;  %v5589_v44 = vmax.f32 %v5557_v38, 0.0 }
 0x480   : > { %5618 = vst [vmem:[%s10006_s6 + $0xa0] sm:$0xff] %v5586_v47  ;;  %v5587_v48 = vmax.f32 %v5555_v17, 0.0  ;;  %v7120_v1 = vpop.f32.mrb[24].mxu1 }
 0x481   : > { %5621 = vst [vmem:[%s10006_s6 + $0xb8] sm:$0xff] %v5589_v44  ;;  %v5512_v41 = vadd.f32 %v7120_v1, %v9979_v56  ;;  %v5503_v45 = vpop.f32.mrb[25].mxu1 }
 0x482   : > { %5619 = vst [vmem:[%s10006_s6 + $0xa8] sm:$0xff] %v5587_v48  ;;  %v5504_v46 = vadd.f32 %v5503_v45, %v9973_v19  ;;  %v7121_v34 = vpop.f32.mrb[26].mxu1  ;;  %v4288_v19 = vunpack.c.l.bf16 %v10379_v61 }
 0x483   : > { %v5560_v35 = vadd.f32 %v5512_v41, %v4284_v33  ;;  %v5515_v52 = vadd.f32 %v7121_v34, %v9981_v57  ;;  %v5506_v15 = vpop.f32.mrb[27].mxu1  ;;  %v4286_v57 = vunpack.c.l.bf16 %v10380_v14 }
 0x484   : > { %v5558_v26 = vadd.f32 %v5504_v46, %v4282_v29  ;;  %v5507_v58 = vadd.f32 %v5506_v15, %v9975_v55 }
 0x485   : > { %v5592_v56 = vmax.f32 %v5560_v35, 0.0  ;;  %v5561_v37 = vadd.f32 %v5515_v52, %v4285_v49 }
 0x486   : > { %v5590_v54 = vmax.f32 %v5558_v26, 0.0  ;;  %v5559_v30 = vadd.f32 %v5507_v58, %v4283_v60 }
 0x487   : > { %5624 = vst [vmem:[%s10006_s6 + $0xd0] sm:$0xff] %v5592_v56  ;;  %v5593_v9 = vmax.f32 %v5561_v37, 0.0 }
 0x488   : > { %5622 = vst [vmem:[%s10006_s6 + $0xc0] sm:$0xff] %v5590_v54  ;;  %v5591_v42 = vmax.f32 %v5559_v30, 0.0  ;;  %v7124_v31 = vpop.f32.mrb[28].mxu1 }
 0x489   : > { %5625 = vst [vmem:[%s10006_s6 + $0xd8] sm:$0xff] %v5593_v9  ;;  %v5528_v5 = vadd.f32 %v7124_v31, %v9992_v0  ;;  %v5519_v55 = vpop.f32.mrb[29].mxu1 }
 0x48a   : > { %5623 = vst [vmem:[%s10006_s6 + $0xc8] sm:$0xff] %v5591_v42  ;;  %v5520_v7 = vadd.f32 %v5519_v55, %v9985_v24  ;;  %v7125_v16 = vpop.f32.mrb[30].mxu1 }
 0x48b   : > { %v5564_v2 = vadd.f32 %v5528_v5, %v4288_v19  ;;  %v5531_v40 = vadd.f32 %v7125_v16, %v9996_v6  ;;  %v5522_v25 = vpop.f32.mrb[31].mxu1 }
 0x48c   : > { %v5562_v23 = vadd.f32 %v5520_v7, %v4286_v57  ;;  %v5523_v0 = vadd.f32 %v5522_v25, %v9987_v4 }
 0x48d   : > { %v5596_v36 = vmax.f32 %v5564_v2, 0.0  ;;  %v5565_v3 = vadd.f32 %v5531_v40, %v4289_v32 }
 0x48e   : > { %v5594_v24 = vmax.f32 %v5562_v23, 0.0  ;;  %v5563_v12 = vadd.f32 %v5523_v0, %v4287_v21 }
 0x48f   : > { %5628 = vst [vmem:[%s10006_s6 + $0xf0] sm:$0xff] %v5596_v36  ;;  %v5597_v43 = vmax.f32 %v5565_v3, 0.0 }
 0x490   : > { %5626 = vst [vmem:[%s10006_s6 + $0xe0] sm:$0xff] %v5594_v24  ;;  %v5595_v4 = vmax.f32 %v5563_v12, 0.0 }
 0x491   : > { %5629 = vst [vmem:[%s10006_s6 + $0xf8] sm:$0xff] %v5597_v43 }
 0x492   : > { %5627 = vst [vmem:[%s10006_s6 + $0xe8] sm:$0xff] %v5595_v4 }
 0x493   : > { %7404 = shalt.err (!%p7401_p7)
}
 0x494   : > { %s7405_s16 = scalar_lea.hbm %s10098_s7, 4096  ;;  %s7409_s17 = scalar_lea.hbm %s10153_s5, 8192 }
 0x495   : > { %p7406_p8 = scmp.ne.s32.totalorder %s10098_s7, %s7405_s16  ;;  %p7410_p1 = scmp.lt.u32.totalorder %s10098_s7, %s10153_s5 }
 0x496   : > { %p7411_p0 = scmp.lt.u32.totalorder %s7409_s17, %s7405_s16  ;;  %p7413_p6 = scmp.lt.u32.totalorder %s7405_s16, %s10098_s7 }
 0x497   : > { %p7407_p11 = pnand %p7406_p8, %p10383_p9 }
 0x498   : > { %p7412_p5 = por %p7411_p0, %p7410_p1 }
 0x499   : > { %p7408_p13 = pneg %p7407_p11 }
 0x49a   : > { %p7414_p10 = por %p7413_p6, %p7412_p5 }
 0x49c   : > { %p7415_p12 = pnand %p7414_p10, %p7408_p13 }
 0x49e   : > { %7418 = shalt.err (!%p7415_p12)
}
 0x49f   : > { %s7464_s6 = smov 128   ;;  %s7465_s9 = smov 8  }
 0x4a0   : > { %7131 = dma.vmem_to_hbm [thread:$0]  (%p10383_p9), %s10100_s10, 4096, %s10098_s7, %s10107_s22, %s7464_s6, %s7464_s6, %s7465_s9  }
 0x4a1 PF: > { %p7143_p2 = scmp.ge.s32.totalorder %s7457_s21, 2  ;;  %s5659_s11 = sand.u32 1, %s7445_s18  }
 0x4a2   : > { %p10384_p3 = scmp.ne.s32.totalorder %s10239_s29, 0  ;;  %s5660_s8 = scalar_lea.sflag [#allocation5], %s5659_s11 }
 0x4a4   : > { %p7138_p4 = pnand %p7143_p2, %p10384_p3 }
 0x4a6   : > { %7440 = dma.done.wait (!%p7138_p4), %s5660_s8, 4096  }
 0x4a7   : > { %7442 = vsyncadd (!%p7138_p4), %s5660_s8, 4294963200  ;;  %p16_p7 = scmp.ge.s32.totalorder %s7521_s24, 4   ;;  %s10385_s18 = smov %s7449_s19 }
 0x4a8   : > { %s10386_s19 = smov %s7453_s20  ;;  %s10387_s20 = smov %s7532_s27 }
 0x4a9   : > { %s10388_s21 = smov %s7521_s24  ;;  %18 = sbr.rel (!%p16_p7) target bundleno = 4 (0x4), region = 82 }
 0x4b0   :  { %5665 = vsyncpa [#allocation4], 1 }
 0x4b1   :  { %5667 = vsyncpa [#allocation4 + $0x1], 1 }
 0x4b2   :  { %5668 = vsyncpa [#allocation5], 1 }
 0x4b3   :  { %5670 = vsyncpa [#allocation5 + $0x1], 1 }

</bundles_post_ra>
